<compile_context>
chip_gen: v5e
topology: v5e:2x2
jax: 0.10.0
libtpu: 0.0.40
codegen_flags: <defaults>
</compile_context>

<pallas_src>
import functools
import math

import jax
import jax.numpy as jnp
from jax.experimental import pallas as pl
from jax.experimental.pallas import tpu as pltpu

# --- model hyperparameters (nn.TransformerDecoderLayer defaults, small vocab) ---
VOCAB = 50
VOCAB_PAD = ((VOCAB + 127) // 128) * 128   # lane-dense logits / one-hot contraction
D_MODEL = 128
NHEAD = 4
HEAD_DIM = D_MODEL // NHEAD
NUM_LAYERS = 2
D_FF = 512
MAX_POS = 100
LN_EPS = 1e-5
NEG_INF = -1e30


# ---------------- the fused kernel (one grid step == one decoder layer) ----------------

def decoder_layer_kernel(tok_ref, emb_ref, pos_ref,
                         sa_wqkv_ref, sa_bqkv_ref, sa_wo_ref, sa_bo_ref,
                         ca_wq_ref, ca_bq_ref, ca_wkv_ref, ca_bkv_ref,
                         ca_wo_ref, ca_bo_ref,
                         ln_g_ref, ln_b_ref,
                         ff_w1_ref, ff_b1_ref, ff_w2_ref, ff_b2_ref,
                         fc_w_ref, fc_b_ref,
                         o_ref,
                         x_scr, mem_scr, *, batch, seq):
    B, S, D, H, HD = batch, seq, D_MODEL, NHEAD, HEAD_DIM
    BS = B * S
    l = pl.program_id(0)

    # ---- embedding gather (one-hot matmul) + positional add, first layer only ----
    @pl.when(l == 0)
    def _embed():
        tok = tok_ref[...]                                                  # (BS, 1) i32
        vocab_iota = jax.lax.broadcasted_iota(jnp.int32, (BS, VOCAB_PAD), 1)
        onehot = (vocab_iota == tok).astype(jnp.bfloat16)                   # (BS, VP)
        x0 = jnp.dot(onehot, emb_ref[...], preferred_element_type=jnp.float32)
        x0 = x0 + pos_ref[...]                                              # (BS, D) f32
        x_scr[...] = x0
        mem_scr[...] = x0   # nn.TransformerDecoder feeds the same memory to every layer

    x = x_scr[...]                                                          # (BS, D) f32
    memory = mem_scr[...]

    # ---- in-kernel causal mask (no DMA'd mask input) ----
    row = jax.lax.broadcasted_iota(jnp.int32, (S, S), 0)
    col = jax.lax.broadcasted_iota(jnp.int32, (S, S), 1)
    causal = col > row                                                      # (S, S) bool

    def split_heads(t):   # (BS, D) f32 -> (H*B, S, HD) bf16, head-major batch
        return jnp.concatenate(
            [t[:, h * HD:(h + 1) * HD].reshape(B, S, HD) for h in range(H)],
            axis=0).astype(jnp.bfloat16)

    def merge_heads(t):   # (H*B, S, HD) -> (BS, D)
        return jnp.concatenate(
            [t[h * B:(h + 1) * B].reshape(BS, HD) for h in range(H)], axis=1)

    def mha(q, k, v, wo, bo, mask):
        qh, kh, vh = split_heads(q), split_heads(k), split_heads(v)
        # single batched score einsum over the H*B head batch (scale folded into Wq/bq)
        s = jnp.einsum('bqe,bke->bqk', qh, kh,
                       preferred_element_type=jnp.float32)                  # (HB, S, S)
        if mask is not None:
            s = jnp.where(mask, NEG_INF, s)
        s = s - jnp.max(s, axis=-1, keepdims=True)
        p = jnp.exp(s)
        p = p * pl.reciprocal(jnp.sum(p, axis=-1, keepdims=True), approx=True)
        o = jnp.einsum('bqk,bke->bqe', p.astype(jnp.bfloat16), vh,
                       preferred_element_type=jnp.float32)                  # (HB, S, HD)
        cat = merge_heads(o)                                                # (BS, D)
        return jnp.dot(cat.astype(jnp.bfloat16), wo,
                       preferred_element_type=jnp.float32) + bo

    def add_ln(x_, r, g, b):
        y = x_ + r
        mu = jnp.mean(y, axis=-1, keepdims=True)
        c = y - mu
        var = jnp.mean(c * c, axis=-1, keepdims=True)
        return c * jax.lax.rsqrt(var + LN_EPS) * g + b

    lng = ln_g_ref[0]        # (3, D)
    lnb = ln_b_ref[0]

    # ---- self-attention (packed QKV projection, causal mask) ----
    qkv = jnp.dot(x.astype(jnp.bfloat16), sa_wqkv_ref[0],
                  preferred_element_type=jnp.float32) + sa_bqkv_ref[0]      # (BS, 3D)
    sa = mha(qkv[:, :D], qkv[:, D:2 * D], qkv[:, 2 * D:],
             sa_wo_ref[0], sa_bo_ref[0], causal)
    x = add_ln(x, sa, lng[0:1], lnb[0:1])

    # ---- cross-attention over the embedded memory (no mask work at all) ----
    qc = jnp.dot(x.astype(jnp.bfloat16), ca_wq_ref[0],
                 preferred_element_type=jnp.float32) + ca_bq_ref[0]         # (BS, D)
    kvc = jnp.dot(memory.astype(jnp.bfloat16), ca_wkv_ref[0],
                  preferred_element_type=jnp.float32) + ca_bkv_ref[0]       # (BS, 2D)
    ca = mha(qc, kvc[:, :D], kvc[:, D:], ca_wo_ref[0], ca_bo_ref[0], None)
    x = add_ln(x, ca, lng[1:2], lnb[1:2])

    # ---- feed-forward (ReLU) ----
    h1 = jnp.maximum(
        jnp.dot(x.astype(jnp.bfloat16), ff_w1_ref[0],
                preferred_element_type=jnp.float32) + ff_b1_ref[0], 0.0)    # (BS, F)
    ff = jnp.dot(h1.astype(jnp.bfloat16), ff_w2_ref[0],
                 preferred_element_type=jnp.float32) + ff_b2_ref[0]
    x = add_ln(x, ff, lng[2:3], lnb[2:3])

    x_scr[...] = x

    # ---- output head (lane-dense padded-vocab logits), last layer only ----
    @pl.when(l == NUM_LAYERS - 1)
    def _head():
        o_ref[...] = jnp.dot(x.astype(jnp.bfloat16), fc_w_ref[...],
                             preferred_element_type=jnp.float32) + fc_b_ref[...]


# ---------------- wrapper (one pallas_call, grid over layers) ----------------

def forward(params, tokens):
    B, S = tokens.shape
    BS = B * S
    D, F, VP = D_MODEL, D_FF, VOCAB_PAD
    tok2 = tokens.reshape(BS, 1).astype(jnp.int32)
    pos = jnp.tile(params['pos'][0, :S, :], (B, 1))          # (BS, D) f32

    def fixed(shape):        # layer-invariant input, single resident block
        zeros = (0,) * len(shape)
        return pl.BlockSpec(shape, lambda l: zeros)

    def per_layer(shape):    # (L, *shape) input, one layer slice per grid step
        zeros = (0,) * len(shape)
        return pl.BlockSpec((1,) + shape, lambda l: (l,) + zeros)

    kernel = functools.partial(decoder_layer_kernel, batch=B, seq=S)

    grid_spec = pltpu.PrefetchScalarGridSpec(
        num_scalar_prefetch=0,
        grid=(NUM_LAYERS,),
        in_specs=[
            fixed((BS, 1)),                                     # tokens
            fixed((VP, D)),                                     # embedding (bf16)
            fixed((BS, D)),                                     # positional encoding
            per_layer((D, 3 * D)), per_layer((1, 3 * D)),       # self-attn packed QKV
            per_layer((D, D)), per_layer((1, D)),               # self-attn out proj
            per_layer((D, D)), per_layer((1, D)),               # cross-attn Q
            per_layer((D, 2 * D)), per_layer((1, 2 * D)),       # cross-attn packed KV
            per_layer((D, D)), per_layer((1, D)),               # cross-attn out proj
            per_layer((3, D)), per_layer((3, D)),               # layer norms (g, b)
            per_layer((D, F)), per_layer((1, F)),               # FFN 1
            per_layer((F, D)), per_layer((1, D)),               # FFN 2
            fixed((D, VP)), fixed((1, VP)),                     # fc_out
        ],
        out_specs=pl.BlockSpec((BS, VP), lambda l: (0, 0)),
        scratch_shapes=[pltpu.VMEM((BS, D), jnp.float32),       # running hidden state
                        pltpu.VMEM((BS, D), jnp.float32)],      # cross-attn memory
    )

    logits = pl.pallas_call(
        kernel,
        out_shape=jax.ShapeDtypeStruct((BS, VP), jnp.float32),
        grid_spec=grid_spec,
        compiler_params=pltpu.CompilerParams(dimension_semantics=("arbitrary",)),
    )(tok2, params['embedding'], pos,
      params['sa_wqkv'], params['sa_bqkv'], params['sa_wo'], params['sa_bo'],
      params['ca_wq'], params['ca_bq'], params['ca_wkv'], params['ca_bkv'],
      params['ca_wo'], params['ca_bo'],
      params['ln_g'], params['ln_b'],
      params['ff_w1'], params['ff_b1'], params['ff_w2'], params['ff_b2'],
      params['fc_w'], params['fc_b'])

    # lane-dense kernel output -> (B, S, VOCAB) in plain XLA (no in-kernel relayout)
    return logits.reshape(B, S, VP)[:, :, :VOCAB]


# ---------------- parameters (deterministic, in-script) ----------------

def init_params(key):
    ks = iter(jax.random.split(key, 16))
    scale = 1.0 / math.sqrt(HEAD_DIM)
    L, D, F, VP = NUM_LAYERS, D_MODEL, D_FF, VOCAB_PAD

    def dense(shape, s=0.05):
        return s * jax.random.normal(next(ks), shape, jnp.float32)

    bf16 = lambda a: a.astype(jnp.bfloat16)

    # embedding padded to VP rows; rows >= VOCAB are zero (never hit by the one-hot)
    emb = jnp.zeros((VP, D), jnp.float32).at[:VOCAB].set(dense((VOCAB, D), 1.0))

    # self-attn packed QKV: fold 1/sqrt(head_dim) into the Q columns AND the Q bias
    sa_wqkv = dense((L, D, 3 * D)).at[:, :, :D].multiply(scale)
    sa_bqkv = jnp.zeros((L, 1, 3 * D), jnp.float32).at[:, :, :D].multiply(scale)

    # cross-attn: separate Q (scale folded into weight and bias), packed KV
    ca_wq = dense((L, D, D)) * scale
    ca_bq = jnp.zeros((L, 1, D), jnp.float32) * scale

    # output head padded to VP columns
    fc_w = jnp.zeros((D, VP), jnp.float32).at[:, :VOCAB].set(dense((D, VOCAB)))
    fc_b = jnp.zeros((1, VP), jnp.float32)

    return dict(
        embedding=bf16(emb),
        pos=jnp.zeros((1, MAX_POS, D), jnp.float32),          # matches torch.zeros init
        sa_wqkv=bf16(sa_wqkv), sa_bqkv=sa_bqkv,
        sa_wo=bf16(dense((L, D, D))), sa_bo=jnp.zeros((L, 1, D), jnp.float32),
        ca_wq=bf16(ca_wq), ca_bq=ca_bq,
        ca_wkv=bf16(dense((L, D, 2 * D))), ca_bkv=jnp.zeros((L, 1, 2 * D), jnp.float32),
        ca_wo=bf16(dense((L, D, D))), ca_bo=jnp.zeros((L, 1, D), jnp.float32),
        ln_g=jnp.ones((L, 3, D), jnp.float32), ln_b=jnp.zeros((L, 3, D), jnp.float32),
        ff_w1=bf16(dense((L, D, F))), ff_b1=jnp.zeros((L, 1, F), jnp.float32),
        ff_w2=bf16(dense((L, F, D))), ff_b2=jnp.zeros((L, 1, D), jnp.float32),
        fc_w=bf16(fc_w), fc_b=fc_b,
    )


if __name__ == "__main__":
    key = jax.random.PRNGKey(0)
    pkey, xkey = jax.random.split(key)

    B, S = 2, 8
    params = init_params(pkey)
    tokens = jax.random.randint(xkey, (B, S), 0, VOCAB, dtype=jnp.int32)

    logits = jax.block_until_ready(forward(params, tokens))

    assert logits.shape == (B, S, VOCAB), logits.shape
    assert bool(jnp.all(jnp.isfinite(logits)))
    print("KERNEL_OK")
</pallas_src>

<mosaic_0001>
module attributes {stable_mosaic.version = 11 : i64} {
  func.func @decoder_layer_kernel(%arg0: i32, %arg1: memref<16x1xi32, #tpu.memory_space<vmem>>, %arg2: memref<128x128xbf16, #tpu.memory_space<vmem>>, %arg3: memref<16x128xf32, #tpu.memory_space<vmem>>, %arg4: memref<1x128x384xbf16, #tpu.memory_space<vmem>>, %arg5: memref<1x1x384xf32, #tpu.memory_space<vmem>>, %arg6: memref<1x128x128xbf16, #tpu.memory_space<vmem>>, %arg7: memref<1x1x128xf32, #tpu.memory_space<vmem>>, %arg8: memref<1x128x128xbf16, #tpu.memory_space<vmem>>, %arg9: memref<1x1x128xf32, #tpu.memory_space<vmem>>, %arg10: memref<1x128x256xbf16, #tpu.memory_space<vmem>>, %arg11: memref<1x1x256xf32, #tpu.memory_space<vmem>>, %arg12: memref<1x128x128xbf16, #tpu.memory_space<vmem>>, %arg13: memref<1x1x128xf32, #tpu.memory_space<vmem>>, %arg14: memref<1x3x128xf32, #tpu.memory_space<vmem>>, %arg15: memref<1x3x128xf32, #tpu.memory_space<vmem>>, %arg16: memref<1x128x512xbf16, #tpu.memory_space<vmem>>, %arg17: memref<1x1x512xf32, #tpu.memory_space<vmem>>, %arg18: memref<1x512x128xbf16, #tpu.memory_space<vmem>>, %arg19: memref<1x1x128xf32, #tpu.memory_space<vmem>>, %arg20: memref<128x128xbf16, #tpu.memory_space<vmem>>, %arg21: memref<1x128xf32, #tpu.memory_space<vmem>>, %arg22: memref<16x128xf32, #tpu.memory_space<vmem>>, %arg23: memref<16x128xf32, #tpu.memory_space<vmem>>, %arg24: memref<16x128xf32, #tpu.memory_space<vmem>>) attributes {dimension_semantics = [#tpu.dimension_semantics<arbitrary>], iteration_bounds = array<i64: 2>, scalar_prefetch = 0 : i64, scratch_operands = 2 : i64, tpu.core_type = #tpu.core_type<tc>, window_params = [{pipeline_mode = #tpu.pipeline_mode<synchronous>, transform_indices = @transform_0, window_bounds = array<i64: 16, 1>}, {pipeline_mode = #tpu.pipeline_mode<synchronous>, transform_indices = @transform_1, window_bounds = array<i64: 128, 128>}, {pipeline_mode = #tpu.pipeline_mode<synchronous>, transform_indices = @transform_2, window_bounds = array<i64: 16, 128>}, {transform_indices = @transform_3, window_bounds = array<i64: 1, 128, 384>}, {transform_indices = @transform_4, window_bounds = array<i64: 1, 1, 384>}, {transform_indices = @transform_5, window_bounds = array<i64: 1, 128, 128>}, {transform_indices = @transform_6, window_bounds = array<i64: 1, 1, 128>}, {transform_indices = @transform_7, window_bounds = array<i64: 1, 128, 128>}, {transform_indices = @transform_8, window_bounds = array<i64: 1, 1, 128>}, {transform_indices = @transform_9, window_bounds = array<i64: 1, 128, 256>}, {transform_indices = @transform_10, window_bounds = array<i64: 1, 1, 256>}, {transform_indices = @transform_11, window_bounds = array<i64: 1, 128, 128>}, {transform_indices = @transform_12, window_bounds = array<i64: 1, 1, 128>}, {transform_indices = @transform_13, window_bounds = array<i64: 1, 3, 128>}, {transform_indices = @transform_14, window_bounds = array<i64: 1, 3, 128>}, {transform_indices = @transform_15, window_bounds = array<i64: 1, 128, 512>}, {transform_indices = @transform_16, window_bounds = array<i64: 1, 1, 512>}, {transform_indices = @transform_17, window_bounds = array<i64: 1, 512, 128>}, {transform_indices = @transform_18, window_bounds = array<i64: 1, 1, 128>}, {pipeline_mode = #tpu.pipeline_mode<synchronous>, transform_indices = @transform_19, window_bounds = array<i64: 128, 128>}, {pipeline_mode = #tpu.pipeline_mode<synchronous>, transform_indices = @transform_20, window_bounds = array<i64: 1, 128>}, {pipeline_mode = #tpu.pipeline_mode<synchronous>, transform_indices = @transform_21, window_bounds = array<i64: 16, 128>}]} {
    %c0_i32 = arith.constant 0 : i32
    %0 = arith.cmpi eq, %arg0, %c0_i32 : i32
    %1 = arith.extui %0 : i1 to i32
    %c0_i32_0 = arith.constant 0 : i32
    %2 = arith.cmpi ne, %1, %c0_i32_0 : i32
    scf.if %2 {
      %c0_86 = arith.constant 0 : index
      %c0_87 = arith.constant 0 : index
      %256 = vector.load %arg1[%c0_86, %c0_87] : memref<16x1xi32, #tpu.memory_space<vmem>>, vector<16x1xi32>
      %257 = tpu.iota {dimensions = array<i32: 1>} : vector<16x128xi32>
      %258 = vector.broadcast %256 : vector<16x1xi32> to vector<16x128xi32>
      %259 = arith.cmpi eq, %257, %258 : vector<16x128xi32>
      %260 = arith.extui %259 : vector<16x128xi1> to vector<16x128xi32>
      %261 = arith.sitofp %260 : vector<16x128xi32> to vector<16x128xf32>
      %262 = arith.truncf %261 : vector<16x128xf32> to vector<16x128xbf16>
      %c0_88 = arith.constant 0 : index
      %c0_89 = arith.constant 0 : index
      %263 = vector.load %arg2[%c0_88, %c0_89] : memref<128x128xbf16, #tpu.memory_space<vmem>>, vector<128x128xbf16>
      %cst_90 = arith.constant dense<0.000000e+00> : vector<16x128xf32>
      %264 = tpu.matmul %262, %263, %cst_90 {dimension_numbers = #tpu.dot_dimension_numbers<[1], [0], [0], [1], [0, 0, 1, 1], [], []>} : vector<16x128xbf16>, vector<128x128xbf16>, vector<16x128xf32> -> vector<16x128xf32>
      %c0_91 = arith.constant 0 : index
      %c0_92 = arith.constant 0 : index
      %265 = vector.load %arg3[%c0_91, %c0_92] : memref<16x128xf32, #tpu.memory_space<vmem>>, vector<16x128xf32>
      %266 = arith.addf %264, %265 : vector<16x128xf32>
      %c0_93 = arith.constant 0 : index
      %c0_94 = arith.constant 0 : index
      %267 = vector.load %arg23[%c0_93, %c0_94] : memref<16x128xf32, #tpu.memory_space<vmem>>, vector<16x128xf32>
      tpu.vector_store %arg23[%c0_93, %c0_94], %266 {strides = array<i32>} : memref<16x128xf32, #tpu.memory_space<vmem>>, vector<16x128xf32>,
      %c0_95 = arith.constant 0 : index
      %c0_96 = arith.constant 0 : index
      %268 = vector.load %arg24[%c0_95, %c0_96] : memref<16x128xf32, #tpu.memory_space<vmem>>, vector<16x128xf32>
      tpu.vector_store %arg24[%c0_95, %c0_96], %266 {strides = array<i32>} : memref<16x128xf32, #tpu.memory_space<vmem>>, vector<16x128xf32>,
    } else {
    }
    %c0 = arith.constant 0 : index
    %c0_1 = arith.constant 0 : index
    %3 = vector.load %arg23[%c0, %c0_1] : memref<16x128xf32, #tpu.memory_space<vmem>>, vector<16x128xf32>
    %c0_2 = arith.constant 0 : index
    %c0_3 = arith.constant 0 : index
    %4 = vector.load %arg24[%c0_2, %c0_3] : memref<16x128xf32, #tpu.memory_space<vmem>>, vector<16x128xf32>
    %5 = tpu.iota {dimensions = array<i32: 0>} : vector<8x8xi32>
    %6 = tpu.iota {dimensions = array<i32: 1>} : vector<8x8xi32>
    %7 = arith.cmpi sgt, %6, %5 : vector<8x8xi32>
    %c0_4 = arith.constant 0 : index
    %c0_5 = arith.constant 0 : index
    %c0_6 = arith.constant 0 : index
    %8 = vector.load %arg14[%c0_4, %c0_5, %c0_6] : memref<1x3x128xf32, #tpu.memory_space<vmem>>, vector<1x3x128xf32>
    %9 = vector.shape_cast %8 : vector<1x3x128xf32> to vector<3x128xf32>
    %c0_7 = arith.constant 0 : index
    %c0_8 = arith.constant 0 : index
    %c0_9 = arith.constant 0 : index
    %10 = vector.load %arg15[%c0_7, %c0_8, %c0_9] : memref<1x3x128xf32, #tpu.memory_space<vmem>>, vector<1x3x128xf32>
    %11 = vector.shape_cast %10 : vector<1x3x128xf32> to vector<3x128xf32>
    %12 = arith.truncf %3 : vector<16x128xf32> to vector<16x128xbf16>
    %c0_10 = arith.constant 0 : index
    %c0_11 = arith.constant 0 : index
    %c0_12 = arith.constant 0 : index
    %13 = vector.load %arg4[%c0_10, %c0_11, %c0_12] : memref<1x128x384xbf16, #tpu.memory_space<vmem>>, vector<1x128x384xbf16>
    %14 = vector.shape_cast %13 : vector<1x128x384xbf16> to vector<128x384xbf16>
    %cst = arith.constant dense<0.000000e+00> : vector<16x384xf32>
    %15 = tpu.matmul %12, %14, %cst {dimension_numbers = #tpu.dot_dimension_numbers<[1], [0], [0], [1], [0, 0, 1, 1], [], []>} : vector<16x128xbf16>, vector<128x384xbf16>, vector<16x384xf32> -> vector<16x384xf32>
    %c0_13 = arith.constant 0 : index
    %c0_14 = arith.constant 0 : index
    %c0_15 = arith.constant 0 : index
    %16 = vector.load %arg5[%c0_13, %c0_14, %c0_15] : memref<1x1x384xf32, #tpu.memory_space<vmem>>, vector<1x1x384xf32>
    %17 = vector.shape_cast %16 : vector<1x1x384xf32> to vector<1x384xf32>
    %18 = vector.broadcast %17 : vector<1x384xf32> to vector<16x384xf32>
    %19 = arith.addf %15, %18 : vector<16x384xf32>
    %20 = vector.extract_strided_slice %19 {offsets = [0, 0], sizes = [16, 128], strides = [1, 1]} : vector<16x384xf32> to vector<16x128xf32>
    %21 = vector.extract_strided_slice %19 {offsets = [0, 128], sizes = [16, 128], strides = [1, 1]} : vector<16x384xf32> to vector<16x128xf32>
    %22 = vector.extract_strided_slice %19 {offsets = [0, 256], sizes = [16, 128], strides = [1, 1]} : vector<16x384xf32> to vector<16x128xf32>
    %c0_16 = arith.constant 0 : index
    %c0_17 = arith.constant 0 : index
    %c0_18 = arith.constant 0 : index
    %23 = vector.load %arg6[%c0_16, %c0_17, %c0_18] : memref<1x128x128xbf16, #tpu.memory_space<vmem>>, vector<1x128x128xbf16>
    %24 = vector.shape_cast %23 : vector<1x128x128xbf16> to vector<128x128xbf16>
    %c0_19 = arith.constant 0 : index
    %c0_20 = arith.constant 0 : index
    %c0_21 = arith.constant 0 : index
    %25 = vector.load %arg7[%c0_19, %c0_20, %c0_21] : memref<1x1x128xf32, #tpu.memory_space<vmem>>, vector<1x1x128xf32>
    %26 = vector.shape_cast %25 : vector<1x1x128xf32> to vector<1x128xf32>
    %27 = vector.extract_strided_slice %20 {offsets = [0, 0], sizes = [16, 32], strides = [1, 1]} : vector<16x128xf32> to vector<16x32xf32>
    %28 = vector.shape_cast %27 : vector<16x32xf32> to vector<2x8x32xf32>
    %29 = vector.extract_strided_slice %20 {offsets = [0, 32], sizes = [16, 32], strides = [1, 1]} : vector<16x128xf32> to vector<16x32xf32>
    %30 = vector.shape_cast %29 : vector<16x32xf32> to vector<2x8x32xf32>
    %31 = vector.extract_strided_slice %20 {offsets = [0, 64], sizes = [16, 32], strides = [1, 1]} : vector<16x128xf32> to vector<16x32xf32>
    %32 = vector.shape_cast %31 : vector<16x32xf32> to vector<2x8x32xf32>
    %33 = vector.extract_strided_slice %20 {offsets = [0, 96], sizes = [16, 32], strides = [1, 1]} : vector<16x128xf32> to vector<16x32xf32>
    %34 = vector.shape_cast %33 : vector<16x32xf32> to vector<2x8x32xf32>
    %35 = tpu.concatenate %28, %30, %32, %34 in 0 : vector<2x8x32xf32>, vector<2x8x32xf32>, vector<2x8x32xf32>, vector<2x8x32xf32> -> vector<8x8x32xf32>
    %36 = arith.truncf %35 : vector<8x8x32xf32> to vector<8x8x32xbf16>
    %37 = vector.extract_strided_slice %21 {offsets = [0, 0], sizes = [16, 32], strides = [1, 1]} : vector<16x128xf32> to vector<16x32xf32>
    %38 = vector.shape_cast %37 : vector<16x32xf32> to vector<2x8x32xf32>
    %39 = vector.extract_strided_slice %21 {offsets = [0, 32], sizes = [16, 32], strides = [1, 1]} : vector<16x128xf32> to vector<16x32xf32>
    %40 = vector.shape_cast %39 : vector<16x32xf32> to vector<2x8x32xf32>
    %41 = vector.extract_strided_slice %21 {offsets = [0, 64], sizes = [16, 32], strides = [1, 1]} : vector<16x128xf32> to vector<16x32xf32>
    %42 = vector.shape_cast %41 : vector<16x32xf32> to vector<2x8x32xf32>
    %43 = vector.extract_strided_slice %21 {offsets = [0, 96], sizes = [16, 32], strides = [1, 1]} : vector<16x128xf32> to vector<16x32xf32>
    %44 = vector.shape_cast %43 : vector<16x32xf32> to vector<2x8x32xf32>
    %45 = tpu.concatenate %38, %40, %42, %44 in 0 : vector<2x8x32xf32>, vector<2x8x32xf32>, vector<2x8x32xf32>, vector<2x8x32xf32> -> vector<8x8x32xf32>
    %46 = arith.truncf %45 : vector<8x8x32xf32> to vector<8x8x32xbf16>
    %47 = vector.extract_strided_slice %22 {offsets = [0, 0], sizes = [16, 32], strides = [1, 1]} : vector<16x128xf32> to vector<16x32xf32>
    %48 = vector.shape_cast %47 : vector<16x32xf32> to vector<2x8x32xf32>
    %49 = vector.extract_strided_slice %22 {offsets = [0, 32], sizes = [16, 32], strides = [1, 1]} : vector<16x128xf32> to vector<16x32xf32>
    %50 = vector.shape_cast %49 : vector<16x32xf32> to vector<2x8x32xf32>
    %51 = vector.extract_strided_slice %22 {offsets = [0, 64], sizes = [16, 32], strides = [1, 1]} : vector<16x128xf32> to vector<16x32xf32>
    %52 = vector.shape_cast %51 : vector<16x32xf32> to vector<2x8x32xf32>
    %53 = vector.extract_strided_slice %22 {offsets = [0, 96], sizes = [16, 32], strides = [1, 1]} : vector<16x128xf32> to vector<16x32xf32>
    %54 = vector.shape_cast %53 : vector<16x32xf32> to vector<2x8x32xf32>
    %55 = tpu.concatenate %48, %50, %52, %54 in 0 : vector<2x8x32xf32>, vector<2x8x32xf32>, vector<2x8x32xf32>, vector<2x8x32xf32> -> vector<8x8x32xf32>
    %56 = arith.truncf %55 : vector<8x8x32xf32> to vector<8x8x32xbf16>
    "tpu.trace_start"() <{level = 10 : i32, message = "bqe,bke->bqk"}> : () -> ()
    %cst_22 = arith.constant dense<0.000000e+00> : vector<8x8x8xf32>
    %57 = tpu.matmul %36, %46, %cst_22 {dimension_numbers = #tpu.dot_dimension_numbers<[2], [2], [1], [1], [0, 0, 0, 1, 1, 1], [0], [0]>} : vector<8x8x32xbf16>, vector<8x8x32xbf16>, vector<8x8x8xf32> -> vector<8x8x8xf32>
    %cst_23 = arith.constant -1.000000e+30 : f32
    "tpu.trace_stop"() : () -> ()
    %58 = vector.shape_cast %7 : vector<8x8xi1> to vector<1x8x8xi1>
    %59 = vector.broadcast %58 : vector<1x8x8xi1> to vector<8x8x8xi1>
    %60 = vector.broadcast %cst_23 : f32 to vector<8x8x8xf32>
    %61 = arith.select %59, %60, %57 : vector<8x8x8xi1>, vector<8x8x8xf32>
    %cst_24 = arith.constant dense<0xFF800000> : vector<8x8xf32>
    %62 = vector.multi_reduction <maximumf>, %61, %cst_24 [2] : vector<8x8x8xf32> to vector<8x8xf32>
    %63 = vector.shape_cast %62 : vector<8x8xf32> to vector<8x8x1xf32>
    %64 = vector.broadcast %63 : vector<8x8x1xf32> to vector<8x8x8xf32>
    %65 = arith.subf %61, %64 : vector<8x8x8xf32>
    %66 = math.exp %65 : vector<8x8x8xf32>
    %cst_25 = arith.constant dense<0.000000e+00> : vector<8x8xf32>
    %67 = vector.multi_reduction <add>, %66, %cst_25 [2] : vector<8x8x8xf32> to vector<8x8xf32>
    %68 = vector.shape_cast %67 : vector<8x8xf32> to vector<8x8x1xf32>
    %69 = tpu.reciprocal %68 {approx = true} : vector<8x8x1xf32> -> vector<8x8x1xf32>
    %70 = vector.broadcast %69 : vector<8x8x1xf32> to vector<8x8x8xf32>
    %71 = arith.mulf %66, %70 : vector<8x8x8xf32>
    %72 = arith.truncf %71 : vector<8x8x8xf32> to vector<8x8x8xbf16>
    "tpu.trace_start"() <{level = 10 : i32, message = "bqk,bke->bqe"}> : () -> ()
    %cst_26 = arith.constant dense<0.000000e+00> : vector<8x8x32xf32>
    %73 = tpu.matmul %72, %56, %cst_26 {dimension_numbers = #tpu.dot_dimension_numbers<[2], [1], [1], [2], [0, 0, 0, 1, 1, 2], [0], [0]>} : vector<8x8x8xbf16>, vector<8x8x32xbf16>, vector<8x8x32xf32> -> vector<8x8x32xf32>
    "tpu.trace_stop"() : () -> ()
    %74 = vector.extract_strided_slice %73 {offsets = [0, 0, 0], sizes = [2, 8, 32], strides = [1, 1, 1]} : vector<8x8x32xf32> to vector<2x8x32xf32>
    %75 = vector.shape_cast %74 : vector<2x8x32xf32> to vector<16x32xf32>
    %76 = vector.extract_strided_slice %73 {offsets = [2, 0, 0], sizes = [2, 8, 32], strides = [1, 1, 1]} : vector<8x8x32xf32> to vector<2x8x32xf32>
    %77 = vector.shape_cast %76 : vector<2x8x32xf32> to vector<16x32xf32>
    %78 = vector.extract_strided_slice %73 {offsets = [4, 0, 0], sizes = [2, 8, 32], strides = [1, 1, 1]} : vector<8x8x32xf32> to vector<2x8x32xf32>
    %79 = vector.shape_cast %78 : vector<2x8x32xf32> to vector<16x32xf32>
    %80 = vector.extract_strided_slice %73 {offsets = [6, 0, 0], sizes = [2, 8, 32], strides = [1, 1, 1]} : vector<8x8x32xf32> to vector<2x8x32xf32>
    %81 = vector.shape_cast %80 : vector<2x8x32xf32> to vector<16x32xf32>
    %82 = tpu.concatenate %75, %77, %79, %81 in 1 : vector<16x32xf32>, vector<16x32xf32>, vector<16x32xf32>, vector<16x32xf32> -> vector<16x128xf32>
    %83 = arith.truncf %82 : vector<16x128xf32> to vector<16x128xbf16>
    %cst_27 = arith.constant dense<0.000000e+00> : vector<16x128xf32>
    %84 = tpu.matmul %83, %24, %cst_27 {dimension_numbers = #tpu.dot_dimension_numbers<[1], [0], [0], [1], [0, 0, 1, 1], [], []>} : vector<16x128xbf16>, vector<128x128xbf16>, vector<16x128xf32> -> vector<16x128xf32>
    %85 = vector.broadcast %26 : vector<1x128xf32> to vector<16x128xf32>
    %86 = arith.addf %84, %85 : vector<16x128xf32>
    %87 = vector.extract_strided_slice %9 {offsets = [0, 0], sizes = [1, 128], strides = [1, 1]} : vector<3x128xf32> to vector<1x128xf32>
    %88 = vector.extract_strided_slice %11 {offsets = [0, 0], sizes = [1, 128], strides = [1, 1]} : vector<3x128xf32> to vector<1x128xf32>
    %89 = arith.addf %3, %86 : vector<16x128xf32>
    %cst_28 = arith.constant dense<0.000000e+00> : vector<16xf32>
    %90 = vector.multi_reduction <add>, %89, %cst_28 [1] : vector<16x128xf32> to vector<16xf32>
    %91 = vector.shape_cast %90 : vector<16xf32> to vector<16x1xf32>
    %cst_29 = arith.constant 1.280000e+02 : f32
    %92 = vector.broadcast %cst_29 : f32 to vector<16x1xf32>
    %93 = arith.divf %91, %92 : vector<16x1xf32>
    %94 = vector.broadcast %93 : vector<16x1xf32> to vector<16x128xf32>
    %95 = arith.subf %89, %94 : vector<16x128xf32>
    %96 = arith.mulf %95, %95 : vector<16x128xf32>
    %cst_30 = arith.constant dense<0.000000e+00> : vector<16xf32>
    %97 = vector.multi_reduction <add>, %96, %cst_30 [1] : vector<16x128xf32> to vector<16xf32>
    %98 = vector.shape_cast %97 : vector<16xf32> to vector<16x1xf32>
    %cst_31 = arith.constant 1.280000e+02 : f32
    %99 = vector.broadcast %cst_31 : f32 to vector<16x1xf32>
    %100 = arith.divf %98, %99 : vector<16x1xf32>
    %cst_32 = arith.constant 9.99999974E-6 : f32
    %101 = vector.broadcast %cst_32 : f32 to vector<16x1xf32>
    %102 = arith.addf %100, %101 : vector<16x1xf32>
    %103 = math.rsqrt %102 : vector<16x1xf32>
    %104 = vector.broadcast %103 : vector<16x1xf32> to vector<16x128xf32>
    %105 = arith.mulf %95, %104 : vector<16x128xf32>
    %106 = vector.broadcast %87 : vector<1x128xf32> to vector<16x128xf32>
    %107 = arith.mulf %105, %106 : vector<16x128xf32>
    %108 = vector.broadcast %88 : vector<1x128xf32> to vector<16x128xf32>
    %109 = arith.addf %107, %108 : vector<16x128xf32>
    %110 = arith.truncf %109 : vector<16x128xf32> to vector<16x128xbf16>
    %c0_33 = arith.constant 0 : index
    %c0_34 = arith.constant 0 : index
    %c0_35 = arith.constant 0 : index
    %111 = vector.load %arg8[%c0_33, %c0_34, %c0_35] : memref<1x128x128xbf16, #tpu.memory_space<vmem>>, vector<1x128x128xbf16>
    %112 = vector.shape_cast %111 : vector<1x128x128xbf16> to vector<128x128xbf16>
    %cst_36 = arith.constant dense<0.000000e+00> : vector<16x128xf32>
    %113 = tpu.matmul %110, %112, %cst_36 {dimension_numbers = #tpu.dot_dimension_numbers<[1], [0], [0], [1], [0, 0, 1, 1], [], []>} : vector<16x128xbf16>, vector<128x128xbf16>, vector<16x128xf32> -> vector<16x128xf32>
    %c0_37 = arith.constant 0 : index
    %c0_38 = arith.constant 0 : index
    %c0_39 = arith.constant 0 : index
    %114 = vector.load %arg9[%c0_37, %c0_38, %c0_39] : memref<1x1x128xf32, #tpu.memory_space<vmem>>, vector<1x1x128xf32>
    %115 = vector.shape_cast %114 : vector<1x1x128xf32> to vector<1x128xf32>
    %116 = vector.broadcast %115 : vector<1x128xf32> to vector<16x128xf32>
    %117 = arith.addf %113, %116 : vector<16x128xf32>
    %118 = arith.truncf %4 : vector<16x128xf32> to vector<16x128xbf16>
    %c0_40 = arith.constant 0 : index
    %c0_41 = arith.constant 0 : index
    %c0_42 = arith.constant 0 : index
    %119 = vector.load %arg10[%c0_40, %c0_41, %c0_42] : memref<1x128x256xbf16, #tpu.memory_space<vmem>>, vector<1x128x256xbf16>
    %120 = vector.shape_cast %119 : vector<1x128x256xbf16> to vector<128x256xbf16>
    %cst_43 = arith.constant dense<0.000000e+00> : vector<16x256xf32>
    %121 = tpu.matmul %118, %120, %cst_43 {dimension_numbers = #tpu.dot_dimension_numbers<[1], [0], [0], [1], [0, 0, 1, 1], [], []>} : vector<16x128xbf16>, vector<128x256xbf16>, vector<16x256xf32> -> vector<16x256xf32>
    %c0_44 = arith.constant 0 : index
    %c0_45 = arith.constant 0 : index
    %c0_46 = arith.constant 0 : index
    %122 = vector.load %arg11[%c0_44, %c0_45, %c0_46] : memref<1x1x256xf32, #tpu.memory_space<vmem>>, vector<1x1x256xf32>
    %123 = vector.shape_cast %122 : vector<1x1x256xf32> to vector<1x256xf32>
    %124 = vector.broadcast %123 : vector<1x256xf32> to vector<16x256xf32>
    %125 = arith.addf %121, %124 : vector<16x256xf32>
    %126 = vector.extract_strided_slice %125 {offsets = [0, 0], sizes = [16, 128], strides = [1, 1]} : vector<16x256xf32> to vector<16x128xf32>
    %127 = vector.extract_strided_slice %125 {offsets = [0, 128], sizes = [16, 128], strides = [1, 1]} : vector<16x256xf32> to vector<16x128xf32>
    %c0_47 = arith.constant 0 : index
    %c0_48 = arith.constant 0 : index
    %c0_49 = arith.constant 0 : index
    %128 = vector.load %arg12[%c0_47, %c0_48, %c0_49] : memref<1x128x128xbf16, #tpu.memory_space<vmem>>, vector<1x128x128xbf16>
    %129 = vector.shape_cast %128 : vector<1x128x128xbf16> to vector<128x128xbf16>
    %c0_50 = arith.constant 0 : index
    %c0_51 = arith.constant 0 : index
    %c0_52 = arith.constant 0 : index
    %130 = vector.load %arg13[%c0_50, %c0_51, %c0_52] : memref<1x1x128xf32, #tpu.memory_space<vmem>>, vector<1x1x128xf32>
    %131 = vector.shape_cast %130 : vector<1x1x128xf32> to vector<1x128xf32>
    %132 = vector.extract_strided_slice %117 {offsets = [0, 0], sizes = [16, 32], strides = [1, 1]} : vector<16x128xf32> to vector<16x32xf32>
    %133 = vector.shape_cast %132 : vector<16x32xf32> to vector<2x8x32xf32>
    %134 = vector.extract_strided_slice %117 {offsets = [0, 32], sizes = [16, 32], strides = [1, 1]} : vector<16x128xf32> to vector<16x32xf32>
    %135 = vector.shape_cast %134 : vector<16x32xf32> to vector<2x8x32xf32>
    %136 = vector.extract_strided_slice %117 {offsets = [0, 64], sizes = [16, 32], strides = [1, 1]} : vector<16x128xf32> to vector<16x32xf32>
    %137 = vector.shape_cast %136 : vector<16x32xf32> to vector<2x8x32xf32>
    %138 = vector.extract_strided_slice %117 {offsets = [0, 96], sizes = [16, 32], strides = [1, 1]} : vector<16x128xf32> to vector<16x32xf32>
    %139 = vector.shape_cast %138 : vector<16x32xf32> to vector<2x8x32xf32>
    %140 = tpu.concatenate %133, %135, %137, %139 in 0 : vector<2x8x32xf32>, vector<2x8x32xf32>, vector<2x8x32xf32>, vector<2x8x32xf32> -> vector<8x8x32xf32>
    %141 = arith.truncf %140 : vector<8x8x32xf32> to vector<8x8x32xbf16>
    %142 = vector.extract_strided_slice %126 {offsets = [0, 0], sizes = [16, 32], strides = [1, 1]} : vector<16x128xf32> to vector<16x32xf32>
    %143 = vector.shape_cast %142 : vector<16x32xf32> to vector<2x8x32xf32>
    %144 = vector.extract_strided_slice %126 {offsets = [0, 32], sizes = [16, 32], strides = [1, 1]} : vector<16x128xf32> to vector<16x32xf32>
    %145 = vector.shape_cast %144 : vector<16x32xf32> to vector<2x8x32xf32>
    %146 = vector.extract_strided_slice %126 {offsets = [0, 64], sizes = [16, 32], strides = [1, 1]} : vector<16x128xf32> to vector<16x32xf32>
    %147 = vector.shape_cast %146 : vector<16x32xf32> to vector<2x8x32xf32>
    %148 = vector.extract_strided_slice %126 {offsets = [0, 96], sizes = [16, 32], strides = [1, 1]} : vector<16x128xf32> to vector<16x32xf32>
    %149 = vector.shape_cast %148 : vector<16x32xf32> to vector<2x8x32xf32>
    %150 = tpu.concatenate %143, %145, %147, %149 in 0 : vector<2x8x32xf32>, vector<2x8x32xf32>, vector<2x8x32xf32>, vector<2x8x32xf32> -> vector<8x8x32xf32>
    %151 = arith.truncf %150 : vector<8x8x32xf32> to vector<8x8x32xbf16>
    %152 = vector.extract_strided_slice %127 {offsets = [0, 0], sizes = [16, 32], strides = [1, 1]} : vector<16x128xf32> to vector<16x32xf32>
    %153 = vector.shape_cast %152 : vector<16x32xf32> to vector<2x8x32xf32>
    %154 = vector.extract_strided_slice %127 {offsets = [0, 32], sizes = [16, 32], strides = [1, 1]} : vector<16x128xf32> to vector<16x32xf32>
    %155 = vector.shape_cast %154 : vector<16x32xf32> to vector<2x8x32xf32>
    %156 = vector.extract_strided_slice %127 {offsets = [0, 64], sizes = [16, 32], strides = [1, 1]} : vector<16x128xf32> to vector<16x32xf32>
    %157 = vector.shape_cast %156 : vector<16x32xf32> to vector<2x8x32xf32>
    %158 = vector.extract_strided_slice %127 {offsets = [0, 96], sizes = [16, 32], strides = [1, 1]} : vector<16x128xf32> to vector<16x32xf32>
    %159 = vector.shape_cast %158 : vector<16x32xf32> to vector<2x8x32xf32>
    %160 = tpu.concatenate %153, %155, %157, %159 in 0 : vector<2x8x32xf32>, vector<2x8x32xf32>, vector<2x8x32xf32>, vector<2x8x32xf32> -> vector<8x8x32xf32>
    %161 = arith.truncf %160 : vector<8x8x32xf32> to vector<8x8x32xbf16>
    "tpu.trace_start"() <{level = 10 : i32, message = "bqe,bke->bqk"}> : () -> ()
    %cst_53 = arith.constant dense<0.000000e+00> : vector<8x8x8xf32>
    %162 = tpu.matmul %141, %151, %cst_53 {dimension_numbers = #tpu.dot_dimension_numbers<[2], [2], [1], [1], [0, 0, 0, 1, 1, 1], [0], [0]>} : vector<8x8x32xbf16>, vector<8x8x32xbf16>, vector<8x8x8xf32> -> vector<8x8x8xf32>
    "tpu.trace_stop"() : () -> ()
    %cst_54 = arith.constant dense<0xFF800000> : vector<8x8xf32>
    %163 = vector.multi_reduction <maximumf>, %162, %cst_54 [2] : vector<8x8x8xf32> to vector<8x8xf32>
    %164 = vector.shape_cast %163 : vector<8x8xf32> to vector<8x8x1xf32>
    %165 = vector.broadcast %164 : vector<8x8x1xf32> to vector<8x8x8xf32>
    %166 = arith.subf %162, %165 : vector<8x8x8xf32>
    %167 = math.exp %166 : vector<8x8x8xf32>
    %cst_55 = arith.constant dense<0.000000e+00> : vector<8x8xf32>
    %168 = vector.multi_reduction <add>, %167, %cst_55 [2] : vector<8x8x8xf32> to vector<8x8xf32>
    %169 = vector.shape_cast %168 : vector<8x8xf32> to vector<8x8x1xf32>
    %170 = tpu.reciprocal %169 {approx = true} : vector<8x8x1xf32> -> vector<8x8x1xf32>
    %171 = vector.broadcast %170 : vector<8x8x1xf32> to vector<8x8x8xf32>
    %172 = arith.mulf %167, %171 : vector<8x8x8xf32>
    %173 = arith.truncf %172 : vector<8x8x8xf32> to vector<8x8x8xbf16>
    "tpu.trace_start"() <{level = 10 : i32, message = "bqk,bke->bqe"}> : () -> ()
    %cst_56 = arith.constant dense<0.000000e+00> : vector<8x8x32xf32>
    %174 = tpu.matmul %173, %161, %cst_56 {dimension_numbers = #tpu.dot_dimension_numbers<[2], [1], [1], [2], [0, 0, 0, 1, 1, 2], [0], [0]>} : vector<8x8x8xbf16>, vector<8x8x32xbf16>, vector<8x8x32xf32> -> vector<8x8x32xf32>
    "tpu.trace_stop"() : () -> ()
    %175 = vector.extract_strided_slice %174 {offsets = [0, 0, 0], sizes = [2, 8, 32], strides = [1, 1, 1]} : vector<8x8x32xf32> to vector<2x8x32xf32>
    %176 = vector.shape_cast %175 : vector<2x8x32xf32> to vector<16x32xf32>
    %177 = vector.extract_strided_slice %174 {offsets = [2, 0, 0], sizes = [2, 8, 32], strides = [1, 1, 1]} : vector<8x8x32xf32> to vector<2x8x32xf32>
    %178 = vector.shape_cast %177 : vector<2x8x32xf32> to vector<16x32xf32>
    %179 = vector.extract_strided_slice %174 {offsets = [4, 0, 0], sizes = [2, 8, 32], strides = [1, 1, 1]} : vector<8x8x32xf32> to vector<2x8x32xf32>
    %180 = vector.shape_cast %179 : vector<2x8x32xf32> to vector<16x32xf32>
    %181 = vector.extract_strided_slice %174 {offsets = [6, 0, 0], sizes = [2, 8, 32], strides = [1, 1, 1]} : vector<8x8x32xf32> to vector<2x8x32xf32>
    %182 = vector.shape_cast %181 : vector<2x8x32xf32> to vector<16x32xf32>
    %183 = tpu.concatenate %176, %178, %180, %182 in 1 : vector<16x32xf32>, vector<16x32xf32>, vector<16x32xf32>, vector<16x32xf32> -> vector<16x128xf32>
    %184 = arith.truncf %183 : vector<16x128xf32> to vector<16x128xbf16>
    %cst_57 = arith.constant dense<0.000000e+00> : vector<16x128xf32>
    %185 = tpu.matmul %184, %129, %cst_57 {dimension_numbers = #tpu.dot_dimension_numbers<[1], [0], [0], [1], [0, 0, 1, 1], [], []>} : vector<16x128xbf16>, vector<128x128xbf16>, vector<16x128xf32> -> vector<16x128xf32>
    %186 = vector.broadcast %131 : vector<1x128xf32> to vector<16x128xf32>
    %187 = arith.addf %185, %186 : vector<16x128xf32>
    %188 = vector.extract_strided_slice %9 {offsets = [1, 0], sizes = [1, 128], strides = [1, 1]} : vector<3x128xf32> to vector<1x128xf32>
    %189 = vector.extract_strided_slice %11 {offsets = [1, 0], sizes = [1, 128], strides = [1, 1]} : vector<3x128xf32> to vector<1x128xf32>
    %190 = arith.addf %109, %187 : vector<16x128xf32>
    %cst_58 = arith.constant dense<0.000000e+00> : vector<16xf32>
    %191 = vector.multi_reduction <add>, %190, %cst_58 [1] : vector<16x128xf32> to vector<16xf32>
    %192 = vector.shape_cast %191 : vector<16xf32> to vector<16x1xf32>
    %cst_59 = arith.constant 1.280000e+02 : f32
    %193 = vector.broadcast %cst_59 : f32 to vector<16x1xf32>
    %194 = arith.divf %192, %193 : vector<16x1xf32>
    %195 = vector.broadcast %194 : vector<16x1xf32> to vector<16x128xf32>
    %196 = arith.subf %190, %195 : vector<16x128xf32>
    %197 = arith.mulf %196, %196 : vector<16x128xf32>
    %cst_60 = arith.constant dense<0.000000e+00> : vector<16xf32>
    %198 = vector.multi_reduction <add>, %197, %cst_60 [1] : vector<16x128xf32> to vector<16xf32>
    %199 = vector.shape_cast %198 : vector<16xf32> to vector<16x1xf32>
    %cst_61 = arith.constant 1.280000e+02 : f32
    %200 = vector.broadcast %cst_61 : f32 to vector<16x1xf32>
    %201 = arith.divf %199, %200 : vector<16x1xf32>
    %cst_62 = arith.constant 9.99999974E-6 : f32
    %202 = vector.broadcast %cst_62 : f32 to vector<16x1xf32>
    %203 = arith.addf %201, %202 : vector<16x1xf32>
    %204 = math.rsqrt %203 : vector<16x1xf32>
    %205 = vector.broadcast %204 : vector<16x1xf32> to vector<16x128xf32>
    %206 = arith.mulf %196, %205 : vector<16x128xf32>
    %207 = vector.broadcast %188 : vector<1x128xf32> to vector<16x128xf32>
    %208 = arith.mulf %206, %207 : vector<16x128xf32>
    %209 = vector.broadcast %189 : vector<1x128xf32> to vector<16x128xf32>
    %210 = arith.addf %208, %209 : vector<16x128xf32>
    %211 = arith.truncf %210 : vector<16x128xf32> to vector<16x128xbf16>
    %c0_63 = arith.constant 0 : index
    %c0_64 = arith.constant 0 : index
    %c0_65 = arith.constant 0 : index
    %212 = vector.load %arg16[%c0_63, %c0_64, %c0_65] : memref<1x128x512xbf16, #tpu.memory_space<vmem>>, vector<1x128x512xbf16>
    %213 = vector.shape_cast %212 : vector<1x128x512xbf16> to vector<128x512xbf16>
    %cst_66 = arith.constant dense<0.000000e+00> : vector<16x512xf32>
    %214 = tpu.matmul %211, %213, %cst_66 {dimension_numbers = #tpu.dot_dimension_numbers<[1], [0], [0], [1], [0, 0, 1, 1], [], []>} : vector<16x128xbf16>, vector<128x512xbf16>, vector<16x512xf32> -> vector<16x512xf32>
    %c0_67 = arith.constant 0 : index
    %c0_68 = arith.constant 0 : index
    %c0_69 = arith.constant 0 : index
    %215 = vector.load %arg17[%c0_67, %c0_68, %c0_69] : memref<1x1x512xf32, #tpu.memory_space<vmem>>, vector<1x1x512xf32>
    %216 = vector.shape_cast %215 : vector<1x1x512xf32> to vector<1x512xf32>
    %217 = vector.broadcast %216 : vector<1x512xf32> to vector<16x512xf32>
    %218 = arith.addf %214, %217 : vector<16x512xf32>
    %cst_70 = arith.constant 0.000000e+00 : f32
    %219 = vector.broadcast %cst_70 : f32 to vector<16x512xf32>
    %220 = arith.maximumf %218, %219 : vector<16x512xf32>
    %221 = arith.truncf %220 : vector<16x512xf32> to vector<16x512xbf16>
    %c0_71 = arith.constant 0 : index
    %c0_72 = arith.constant 0 : index
    %c0_73 = arith.constant 0 : index
    %222 = vector.load %arg18[%c0_71, %c0_72, %c0_73] : memref<1x512x128xbf16, #tpu.memory_space<vmem>>, vector<1x512x128xbf16>
    %223 = vector.shape_cast %222 : vector<1x512x128xbf16> to vector<512x128xbf16>
    %cst_74 = arith.constant dense<0.000000e+00> : vector<16x128xf32>
    %224 = tpu.matmul %221, %223, %cst_74 {dimension_numbers = #tpu.dot_dimension_numbers<[1], [0], [0], [1], [0, 0, 1, 1], [], []>} : vector<16x512xbf16>, vector<512x128xbf16>, vector<16x128xf32> -> vector<16x128xf32>
    %c0_75 = arith.constant 0 : index
    %c0_76 = arith.constant 0 : index
    %c0_77 = arith.constant 0 : index
    %225 = vector.load %arg19[%c0_75, %c0_76, %c0_77] : memref<1x1x128xf32, #tpu.memory_space<vmem>>, vector<1x1x128xf32>
    %226 = vector.shape_cast %225 : vector<1x1x128xf32> to vector<1x128xf32>
    %227 = vector.broadcast %226 : vector<1x128xf32> to vector<16x128xf32>
    %228 = arith.addf %224, %227 : vector<16x128xf32>
    %229 = vector.extract_strided_slice %9 {offsets = [2, 0], sizes = [1, 128], strides = [1, 1]} : vector<3x128xf32> to vector<1x128xf32>
    %230 = vector.extract_strided_slice %11 {offsets = [2, 0], sizes = [1, 128], strides = [1, 1]} : vector<3x128xf32> to vector<1x128xf32>
    %231 = arith.addf %210, %228 : vector<16x128xf32>
    %cst_78 = arith.constant dense<0.000000e+00> : vector<16xf32>
    %232 = vector.multi_reduction <add>, %231, %cst_78 [1] : vector<16x128xf32> to vector<16xf32>
    %233 = vector.shape_cast %232 : vector<16xf32> to vector<16x1xf32>
    %cst_79 = arith.constant 1.280000e+02 : f32
    %234 = vector.broadcast %cst_79 : f32 to vector<16x1xf32>
    %235 = arith.divf %233, %234 : vector<16x1xf32>
    %236 = vector.broadcast %235 : vector<16x1xf32> to vector<16x128xf32>
    %237 = arith.subf %231, %236 : vector<16x128xf32>
    %238 = arith.mulf %237, %237 : vector<16x128xf32>
    %cst_80 = arith.constant dense<0.000000e+00> : vector<16xf32>
    %239 = vector.multi_reduction <add>, %238, %cst_80 [1] : vector<16x128xf32> to vector<16xf32>
    %240 = vector.shape_cast %239 : vector<16xf32> to vector<16x1xf32>
    %cst_81 = arith.constant 1.280000e+02 : f32
    %241 = vector.broadcast %cst_81 : f32 to vector<16x1xf32>
    %242 = arith.divf %240, %241 : vector<16x1xf32>
    %cst_82 = arith.constant 9.99999974E-6 : f32
    %243 = vector.broadcast %cst_82 : f32 to vector<16x1xf32>
    %244 = arith.addf %242, %243 : vector<16x1xf32>
    %245 = math.rsqrt %244 : vector<16x1xf32>
    %246 = vector.broadcast %245 : vector<16x1xf32> to vector<16x128xf32>
    %247 = arith.mulf %237, %246 : vector<16x128xf32>
    %248 = vector.broadcast %229 : vector<1x128xf32> to vector<16x128xf32>
    %249 = arith.mulf %247, %248 : vector<16x128xf32>
    %250 = vector.broadcast %230 : vector<1x128xf32> to vector<16x128xf32>
    %251 = arith.addf %249, %250 : vector<16x128xf32>
    %c0_83 = arith.constant 0 : index
    %c0_84 = arith.constant 0 : index
    %252 = vector.load %arg23[%c0_83, %c0_84] : memref<16x128xf32, #tpu.memory_space<vmem>>, vector<16x128xf32>
    tpu.vector_store %arg23[%c0_83, %c0_84], %251 {strides = array<i32>} : memref<16x128xf32, #tpu.memory_space<vmem>>, vector<16x128xf32>,
    %c1_i32 = arith.constant 1 : i32
    %253 = arith.cmpi eq, %arg0, %c1_i32 : i32
    %254 = arith.extui %253 : i1 to i32
    %c0_i32_85 = arith.constant 0 : i32
    %255 = arith.cmpi ne, %254, %c0_i32_85 : i32
    scf.if %255 {
      %256 = arith.truncf %251 : vector<16x128xf32> to vector<16x128xbf16>
      %c0_86 = arith.constant 0 : index
      %c0_87 = arith.constant 0 : index
      %257 = vector.load %arg20[%c0_86, %c0_87] : memref<128x128xbf16, #tpu.memory_space<vmem>>, vector<128x128xbf16>
      %cst_88 = arith.constant dense<0.000000e+00> : vector<16x128xf32>
      %258 = tpu.matmul %256, %257, %cst_88 {dimension_numbers = #tpu.dot_dimension_numbers<[1], [0], [0], [1], [0, 0, 1, 1], [], []>} : vector<16x128xbf16>, vector<128x128xbf16>, vector<16x128xf32> -> vector<16x128xf32>
      %c0_89 = arith.constant 0 : index
      %c0_90 = arith.constant 0 : index
      %259 = vector.load %arg21[%c0_89, %c0_90] : memref<1x128xf32, #tpu.memory_space<vmem>>, vector<1x128xf32>
      %260 = vector.broadcast %259 : vector<1x128xf32> to vector<16x128xf32>
      %261 = arith.addf %258, %260 : vector<16x128xf32>
      %c0_91 = arith.constant 0 : index
      %c0_92 = arith.constant 0 : index
      %262 = vector.load %arg22[%c0_91, %c0_92] : memref<16x128xf32, #tpu.memory_space<vmem>>, vector<16x128xf32>
      tpu.vector_store %arg22[%c0_91, %c0_92], %261 {strides = array<i32>} : memref<16x128xf32, #tpu.memory_space<vmem>>, vector<16x128xf32>,
    } else {
    }
    return
  }
  func.func @transform_0(%arg0: i32) -> (i32, i32) {
    %c0_i32 = arith.constant 0 : i32
    %c0_i32_0 = arith.constant 0 : i32
    %c0_i32_1 = arith.constant 0 : i32
    return %c0_i32, %c0_i32_0 : i32, i32
  }
  func.func @transform_1(%arg0: i32) -> (i32, i32) {
    %c0_i32 = arith.constant 0 : i32
    %c0_i32_0 = arith.constant 0 : i32
    %c0_i32_1 = arith.constant 0 : i32
    return %c0_i32, %c0_i32_0 : i32, i32
  }
  func.func @transform_2(%arg0: i32) -> (i32, i32) {
    %c0_i32 = arith.constant 0 : i32
    %c0_i32_0 = arith.constant 0 : i32
    %c0_i32_1 = arith.constant 0 : i32
    return %c0_i32, %c0_i32_0 : i32, i32
  }
  func.func @transform_3(%arg0: i32) -> (i32, i32, i32) {
    %c0_i32 = arith.constant 0 : i32
    %c0_i32_0 = arith.constant 0 : i32
    %c0_i32_1 = arith.constant 0 : i32
    return %arg0, %c0_i32, %c0_i32_0 : i32, i32, i32
  }
  func.func @transform_4(%arg0: i32) -> (i32, i32, i32) {
    %c0_i32 = arith.constant 0 : i32
    %c0_i32_0 = arith.constant 0 : i32
    %c0_i32_1 = arith.constant 0 : i32
    return %arg0, %c0_i32, %c0_i32_0 : i32, i32, i32
  }
  func.func @transform_5(%arg0: i32) -> (i32, i32, i32) {
    %c0_i32 = arith.constant 0 : i32
    %c0_i32_0 = arith.constant 0 : i32
    %c0_i32_1 = arith.constant 0 : i32
    return %arg0, %c0_i32, %c0_i32_0 : i32, i32, i32
  }
  func.func @transform_6(%arg0: i32) -> (i32, i32, i32) {
    %c0_i32 = arith.constant 0 : i32
    %c0_i32_0 = arith.constant 0 : i32
    %c0_i32_1 = arith.constant 0 : i32
    return %arg0, %c0_i32, %c0_i32_0 : i32, i32, i32
  }
  func.func @transform_7(%arg0: i32) -> (i32, i32, i32) {
    %c0_i32 = arith.constant 0 : i32
    %c0_i32_0 = arith.constant 0 : i32
    %c0_i32_1 = arith.constant 0 : i32
    return %arg0, %c0_i32, %c0_i32_0 : i32, i32, i32
  }
  func.func @transform_8(%arg0: i32) -> (i32, i32, i32) {
    %c0_i32 = arith.constant 0 : i32
    %c0_i32_0 = arith.constant 0 : i32
    %c0_i32_1 = arith.constant 0 : i32
    return %arg0, %c0_i32, %c0_i32_0 : i32, i32, i32
  }
  func.func @transform_9(%arg0: i32) -> (i32, i32, i32) {
    %c0_i32 = arith.constant 0 : i32
    %c0_i32_0 = arith.constant 0 : i32
    %c0_i32_1 = arith.constant 0 : i32
    return %arg0, %c0_i32, %c0_i32_0 : i32, i32, i32
  }
  func.func @transform_10(%arg0: i32) -> (i32, i32, i32) {
    %c0_i32 = arith.constant 0 : i32
    %c0_i32_0 = arith.constant 0 : i32
    %c0_i32_1 = arith.constant 0 : i32
    return %arg0, %c0_i32, %c0_i32_0 : i32, i32, i32
  }
  func.func @transform_11(%arg0: i32) -> (i32, i32, i32) {
    %c0_i32 = arith.constant 0 : i32
    %c0_i32_0 = arith.constant 0 : i32
    %c0_i32_1 = arith.constant 0 : i32
    return %arg0, %c0_i32, %c0_i32_0 : i32, i32, i32
  }
  func.func @transform_12(%arg0: i32) -> (i32, i32, i32) {
    %c0_i32 = arith.constant 0 : i32
    %c0_i32_0 = arith.constant 0 : i32
    %c0_i32_1 = arith.constant 0 : i32
    return %arg0, %c0_i32, %c0_i32_0 : i32, i32, i32
  }
  func.func @transform_13(%arg0: i32) -> (i32, i32, i32) {
    %c0_i32 = arith.constant 0 : i32
    %c0_i32_0 = arith.constant 0 : i32
    %c0_i32_1 = arith.constant 0 : i32
    return %arg0, %c0_i32, %c0_i32_0 : i32, i32, i32
  }
  func.func @transform_14(%arg0: i32) -> (i32, i32, i32) {
    %c0_i32 = arith.constant 0 : i32
    %c0_i32_0 = arith.constant 0 : i32
    %c0_i32_1 = arith.constant 0 : i32
    return %arg0, %c0_i32, %c0_i32_0 : i32, i32, i32
  }
  func.func @transform_15(%arg0: i32) -> (i32, i32, i32) {
    %c0_i32 = arith.constant 0 : i32
    %c0_i32_0 = arith.constant 0 : i32
    %c0_i32_1 = arith.constant 0 : i32
    return %arg0, %c0_i32, %c0_i32_0 : i32, i32, i32
  }
  func.func @transform_16(%arg0: i32) -> (i32, i32, i32) {
    %c0_i32 = arith.constant 0 : i32
    %c0_i32_0 = arith.constant 0 : i32
    %c0_i32_1 = arith.constant 0 : i32
    return %arg0, %c0_i32, %c0_i32_0 : i32, i32, i32
  }
  func.func @transform_17(%arg0: i32) -> (i32, i32, i32) {
    %c0_i32 = arith.constant 0 : i32
    %c0_i32_0 = arith.constant 0 : i32
    %c0_i32_1 = arith.constant 0 : i32
    return %arg0, %c0_i32, %c0_i32_0 : i32, i32, i32
  }
  func.func @transform_18(%arg0: i32) -> (i32, i32, i32) {
    %c0_i32 = arith.constant 0 : i32
    %c0_i32_0 = arith.constant 0 : i32
    %c0_i32_1 = arith.constant 0 : i32
    return %arg0, %c0_i32, %c0_i32_0 : i32, i32, i32
  }
  func.func @transform_19(%arg0: i32) -> (i32, i32) {
    %c0_i32 = arith.constant 0 : i32
    %c0_i32_0 = arith.constant 0 : i32
    %c0_i32_1 = arith.constant 0 : i32
    return %c0_i32, %c0_i32_0 : i32, i32
  }
  func.func @transform_20(%arg0: i32) -> (i32, i32) {
    %c0_i32 = arith.constant 0 : i32
    %c0_i32_0 = arith.constant 0 : i32
    %c0_i32_1 = arith.constant 0 : i32
    return %c0_i32, %c0_i32_0 : i32, i32
  }
  func.func @transform_21(%arg0: i32) -> (i32, i32) {
    %c0_i32 = arith.constant 0 : i32
    %c0_i32_0 = arith.constant 0 : i32
    %c0_i32_1 = arith.constant 0 : i32
    return %c0_i32, %c0_i32_0 : i32, i32
  }
}

</mosaic_0001>

<bundles_post_ra>
// kernel: tpu_custom_call.1
= control target key start
LH: loop header
LB: loop body
LE: loop exit
PB: predicated region body
PF: predicated region fallthrough
CT: control target
= control target key end

     0   :  { %s6448_s0 = inlined_call_operand.vmem [shape: s32[16,1], index: 0, kind: input, shape index: {}]   ;;  %s6449_s1 = inlined_call_operand.hbm [shape: bf16[128,128], index: 1, kind: input, shape index: {}]   ;;  %s6450_s2 = inlined_call_operand.vmem [shape: f32[16,128], index: 2, kind: input, shape index: {}]   ;;  %s6451_s3 = inlined_call_operand.hbm [shape: bf16[2,128,384], index: 3, kind: input, shape index: {}]   ;;  %s6452_s4 = inlined_call_operand.vmem [shape: f32[2,1,384], index: 4, kind: input, shape index: {}]   ;;  %s6453_s5 = inlined_call_operand.hbm [shape: bf16[2,128,128], index: 5, kind: input, shape index: {}]   ;;  %s6454_s6 = inlined_call_operand.vmem [shape: f32[2,1,128], index: 6, kind: input, shape index: {}]   ;;  %s6455_s7 = inlined_call_operand.hbm [shape: bf16[2,128,128], index: 7, kind: input, shape index: {}]   ;;  %s6456_s8 = inlined_call_operand.vmem [shape: f32[2,1,128], index: 8, kind: input, shape index: {}]   ;;  %s6457_s9 = inlined_call_operand.hbm [shape: bf16[2,128,256], index: 9, kind: input, shape index: {}]   ;;  %s6458_s10 = inlined_call_operand.vmem [shape: f32[2,1,256], index: 10, kind: input, shape index: {}]   ;;  %s6459_s11 = inlined_call_operand.hbm [shape: bf16[2,128,128], index: 11, kind: input, shape index: {}]   ;;  %s6460_s12 = inlined_call_operand.vmem [shape: f32[2,1,128], index: 12, kind: input, shape index: {}]   ;;  %s6461_s13 = inlined_call_operand.vmem [shape: f32[2,3,128], index: 13, kind: input, shape index: {}]   ;;  %s6462_s14 = inlined_call_operand.vmem [shape: f32[2,3,128], index: 14, kind: input, shape index: {}]   ;;  %s6463_s15 = inlined_call_operand.hbm [shape: bf16[2,128,512], index: 15, kind: input, shape index: {}]   ;;  %s6464_s16 = inlined_call_operand.vmem [shape: f32[2,1,512], index: 16, kind: input, shape index: {}]   ;;  %s6465_s17 = inlined_call_operand.hbm [shape: bf16[2,512,128], index: 17, kind: input, shape index: {}]   ;;  %s6466_s18 = inlined_call_operand.vmem [shape: f32[2,1,128], index: 18, kind: input, shape index: {}]   ;;  %s6467_s19 = inlined_call_operand.hbm [shape: bf16[128,128], index: 19, kind: input, shape index: {}]   ;;  %s6468_s20 = inlined_call_operand.vmem [shape: f32[1,128], index: 20, kind: input, shape index: {}]   ;;  %s6469_s21 = inlined_call_operand.hbm [shape: f32[16,128], index: 21, kind: output, shape index: {}]  }
   0x1   :  { %6487 = sst [smem:[#allocation31_spill]] %s6448_s0 }
   0x2   :  { %6488 = sst [smem:[#allocation32_spill]] %s6449_s1 }
   0x3   :  { %6489 = sst [smem:[#allocation33_spill]] %s6450_s2 }
   0x4   :  { %6490 = sst [smem:[#allocation34_spill]] %s6451_s3 }
   0x5   :  { %6491 = sst [smem:[#allocation35_spill]] %s6452_s4 }
   0x6   :  { %6492 = sst [smem:[#allocation36_spill]] %s6453_s5 }
   0x7   :  { %6493 = sst [smem:[#allocation37_spill]] %s6454_s6 }
   0x8   :  { %6494 = sst [smem:[#allocation38_spill]] %s6455_s7 }
   0x9   :  { %6495 = sst [smem:[#allocation39_spill]] %s6456_s8 }
   0xa   :  { %6496 = sst [smem:[#allocation40_spill]] %s6457_s9 }
   0xb   :  { %6497 = sst [smem:[#allocation41_spill]] %s6458_s10 }
   0xc   :  { %6498 = sst [smem:[#allocation42_spill]] %s6459_s11 }
   0xd   :  { %6499 = sst [smem:[#allocation43_spill]] %s6460_s12 }
   0xe   :  { %6500 = sst [smem:[#allocation44_spill]] %s6461_s13 }
   0xf   :  { %6501 = sst [smem:[#allocation45_spill]] %s6462_s14 }
  0x10   :  { %6502 = sst [smem:[#allocation46_spill]] %s6463_s15 }
  0x11   :  { %6503 = sst [smem:[#allocation47_spill]] %s6464_s16 }
  0x12   :  { %6504 = sst [smem:[#allocation48_spill]] %s6465_s17 }
  0x13   :  { %6505 = sst [smem:[#allocation49_spill]] %s6466_s18 }
  0x14   :  { %6506 = sst [smem:[#allocation50_spill]] %s6467_s19 }
  0x15   :  { %6507 = sst [smem:[#allocation51_spill]] %s6468_s20 }
  0x16   :  { %6508 = sst [smem:[#allocation52_spill]] %s6469_s21 }
  0x17   :  { %26 = vsyncpa [#allocation5], 0 }
  0x18   :  { %27 = vsyncpa [#allocation8], 0 }
  0x19   :  { %29 = vsyncpa [#allocation8 + $0x1], 0 }
  0x1a   :  { %30 = vsyncpa [#allocation11], 0 }
  0x1b   :  { %32 = vsyncpa [#allocation11 + $0x1], 0 }
  0x1c   :  { %33 = vsyncpa [#allocation14], 0 }
  0x1d   :  { %35 = vsyncpa [#allocation14 + $0x1], 0 }
  0x1e   :  { %36 = vsyncpa [#allocation17], 0 }
  0x1f   :  { %38 = vsyncpa [#allocation17 + $0x1], 0 }
  0x20   :  { %39 = vsyncpa [#allocation6], 0  ;;  %s5529_s2 = smov 0   ;;  %s5531_s25 = smov 0  }
  0x21   :  { %s5533_s26 = smov 0   ;;  %s5535_s27 = smov 0  }
  0x22 LB: > { %6509 = sst [smem:[#allocation27_spill]] %s5394_s26  ;;  %s5548_s3 = sadd.s32 4294967295, %s5398_s27   ;;  %s5398_s27 = sphi %s5535_s27, %s6555_s27   ;;  %s5394_s26 = sphi %s5533_s26, %s6557_s26   ;;  %s5390_s25 = sphi %s5531_s25, %s6559_s25   ;;  %s5386_s2 = sphi %s5529_s2, %s6558_s2  }
  0x23   : > { %p128_p0 = scmp.ne.s32.totalorder %s5390_s25, %s5386_s2  ;;  %p129_p1 = scmp.eq.s32.totalorder %s5548_s3, 0 }
  0x24   : > { %p3970_p2 = scmp.ge.s32.totalorder %s5398_s27, 1  ;;  %p592_p3 = scmp.lt.s32.totalorder %s5398_s27, 3 }
  0x25   : > { %p3971_p4 = scmp.ne.s32.totalorder %s5548_s3, 0  ;;  %p5557_p5 = por %p129_p1, %p128_p0 }
  0x26   : > { %p5561_p6 = pnand %p3970_p2, %p592_p3  ;;  %s6513_s19 = sld [smem:[#allocation50_spill]] }
  0x27   : > { %s6510_s28 = scalar_select %p5557_p5, 1, 0 }
  0x28   : > { %p4804_p7 = pneg %p5561_p6  ;;  %s5400_s5 = smov [#allocation18]  }
  0x29   : > { %6511 = sst [smem:[#allocation28_spill]] %s6510_s28  ;;  %s625_s22 = sshll.u32 %s5400_s5, 4  ;;  %s626_s22 = int_to_ptr.vmem [resolvable:$true] %s625_s22 }
  0x2a   : > { %p5572_p8 = pnand %p4804_p7, %p129_p1  ;;  %s5577_s1 = sadd.s32 1, %s5398_s27  }
  0x2b   : > { %6515 = sst [smem:[#allocation29_spill]] %s5577_s1  ;;  %s6474_s24 = smov 64  }
  0x2c   : > { %s623_s30 = sshll.u32 %s6513_s19, 4  ;;  %s6476_s2 = smov 4   ;;  %s624_s30 = int_to_ptr.hbm [resolvable:$true] %s623_s30 }
  0x2d   : > { %4810 = dma.hbm_to_vmem [thread:$0]  (!%p5572_p8), %s624_s30, 1024, %s626_s22, [#allocation17], %s6474_s24, %s6474_s24, %s6476_s2  }
  0x2e   : > { %s112_s0 = ssub.s32 %s5398_s27, %s5577_s1  ;;  %s115_s4 = sadd.s32 1, %s5394_s26 }
  0x2f   : > { %p113_p9 = scmp.eq.s32.totalorder %s112_s0, 0  ;;  %p122_p10 = scmp.ne.s32.totalorder %s5394_s26, %s5390_s25 }
  0x30   : > { %p123_p11 = scmp.eq.s32.totalorder %s5398_s27, 0  ;;  %p4835_p12 = scmp.lt.s32.totalorder %s5398_s27, 2 }
  0x31   : > { %s5592_s5 = scalar_select %p113_p9, %s5394_s26, %s115_s4  }
  0x32   : > { %p124_p13 = por %p123_p11, %p122_p10  ;;  %s5595_s19 = sand.u32 1, %s5398_s27  }
  0x33   : > { %6516 = sst [smem:[#allocation30_spill]] %s5592_s5  ;;  %s5598_s21 = sand.u32 1, %s5394_s26  }
  0x34   : > { %s4774_s20 = smul.u32 192, %s5598_s21  ;;  %p5601_p0 = pnand %p4835_p12, %p124_p13 }
  0x35   : > { %s4775_s30 = smul.u32 192, %s5398_s27  ;;  %s6518_s24 = sld [smem:[#allocation34_spill]] }
  0x36   : > { %s646_s4 = scalar_lea.vmem [#allocation7], %s4774_s20  ;;  %p5612_p3 = pneg %p5601_p0 }
  0x37   : > { %s654_s5 = sshll.u32 %s646_s4, 4  ;;  %s655_s5 = int_to_ptr.vmem [resolvable:$true] %s654_s5 }
  0x3b   : > { %s651_s2 = scalar_lea.hbm %s6518_s24, %s4775_s30 }
  0x3c   : > { %s652_s1 = sshll.u32 %s651_s2, 4  ;;  %s5079_s2 = scalar_lea.hbm %s6518_s24, 384  ;;  %s653_s1 = int_to_ptr.hbm [resolvable:$true] %s652_s1 }
  0x3d   : > { %s5072_s26 = sshra.s32 %s653_s1, 4  ;;  %s5073_s26 = int_to_ptr.hbm [resolvable:$true] %s5072_s26 }
  0x3e   : > { %s5074_s14 = scalar_lea.hbm %s5073_s26, 192  ;;  %p5080_p10 = scmp.lt.s32.totalorder %s5073_s26, %s6518_s24 }
  0x3f   : > { %p5075_p2 = scmp.ne.s32.totalorder %s5073_s26, %s5074_s14  ;;  %p5081_p11 = scmp.lt.s32.totalorder %s5079_s2, %s5074_s14 }
  0x41   : > { %p5077_p7 = pnand %p5612_p3, %p5075_p2  ;;  %p5082_p12 = por %p5081_p11, %p5080_p10 }
  0x43   : > { %p5078_p9 = pneg %p5077_p7 }
  0x45   : > { %p5083_p13 = pnand %p5082_p12, %p5078_p9 }
  0x47   : > { %5086 = shalt.err (!%p5083_p13)
}
  0x48   : > { %s5403_s4 = smov 192   ;;  %s5404_s16 = smov 12  }
  0x49   : > { %s6520_s12 = scalar_lea.sflag [#allocation8], %s5595_s19  ;;  %s5629_s30 = sshll.u32 %s5598_s21, 6 }
  0x4a   : > { %4814 = dma.hbm_to_vmem [thread:$0]  (!%p5601_p0), %s653_s1, 3072, %s655_s5, %s6520_s12, %s5403_s4, %s5403_s4, %s5404_s16  }
  0x4b   : > { %s5632_s20 = sshll.u32 %s5398_s27, 6  ;;  %s6521_s7 = sld [smem:[#allocation38_spill]] }
  0x4c   : > { %s703_s22 = scalar_lea.vmem [#allocation10], %s5629_s30  ;;  %s6484_s10 = scalar_lea.sflag [#allocation11], %s5595_s19 }
  0x4d   : > { %s711_s0 = sshll.u32 %s703_s22, 4  ;;  %s712_s0 = int_to_ptr.vmem [resolvable:$true] %s711_s0 }
  0x51   : > { %s708_s2 = scalar_lea.hbm %s6521_s7, %s5632_s20  ;;  %s5109_s1 = scalar_lea.hbm %s6521_s7, 128 }
  0x52   : > { %s709_s24 = sshll.u32 %s708_s2, 4  ;;  %s710_s24 = int_to_ptr.hbm [resolvable:$true] %s709_s24 }
  0x53   : > { %s5102_s8 = sshra.s32 %s710_s24, 4  ;;  %s5103_s8 = int_to_ptr.hbm [resolvable:$true] %s5102_s8 }
  0x54   : > { %s5104_s6 = scalar_lea.hbm %s5103_s8, 64  ;;  %p5110_p10 = scmp.lt.s32.totalorder %s5103_s8, %s6521_s7 }
  0x55   : > { %p5105_p2 = scmp.ne.s32.totalorder %s5103_s8, %s5104_s6  ;;  %p5111_p11 = scmp.lt.s32.totalorder %s5109_s1, %s5104_s6 }
  0x57   : > { %p5107_p7 = pnand %p5105_p2, %p5612_p3  ;;  %p5112_p12 = por %p5111_p11, %p5110_p10 }
  0x59   : > { %p5108_p9 = pneg %p5107_p7 }
  0x5b   : > { %p5113_p13 = pnand %p5112_p12, %p5108_p9 }
  0x5d   : > { %5116 = shalt.err (!%p5113_p13)
}
  0x5e   : > { %s6522_s14 = smov 4   ;;  %s6523_s26 = smov 64  }
  0x5f   : > { %4820 = dma.hbm_to_vmem [thread:$0]  (!%p5601_p0), %s710_s24, 1024, %s712_s0, %s6484_s10, %s6523_s26, %s6523_s26, %s6522_s14  }
  0x60   : > { %s6524_s11 = sld [smem:[#allocation42_spill]]  ;;  %s760_s12 = scalar_lea.vmem [#allocation13], %s5629_s30 }
  0x61   : > { %s768_s16 = sshll.u32 %s760_s12, 4  ;;  %s6485_s1 = scalar_lea.sflag [#allocation14], %s5595_s19  ;;  %s769_s16 = int_to_ptr.vmem [resolvable:$true] %s768_s16 }
  0x66   : > { %s765_s8 = scalar_lea.hbm %s6524_s11, %s5632_s20  ;;  %s5139_s24 = scalar_lea.hbm %s6524_s11, 128 }
  0x67   : > { %s766_s6 = sshll.u32 %s765_s8, 4  ;;  %s767_s6 = int_to_ptr.hbm [resolvable:$true] %s766_s6 }
  0x68   : > { %s5132_s5 = sshra.s32 %s767_s6, 4  ;;  %s5133_s5 = int_to_ptr.hbm [resolvable:$true] %s5132_s5 }
  0x69   : > { %s5134_s4 = scalar_lea.hbm %s5133_s5, 64  ;;  %p5140_p10 = scmp.lt.s32.totalorder %s5133_s5, %s6524_s11 }
  0x6a   : > { %p5135_p2 = scmp.ne.s32.totalorder %s5133_s5, %s5134_s4  ;;  %p5141_p11 = scmp.lt.s32.totalorder %s5139_s24, %s5134_s4 }
  0x6c   : > { %p5137_p7 = pnand %p5135_p2, %p5612_p3  ;;  %p5142_p12 = por %p5141_p11, %p5140_p10 }
  0x6e   : > { %p5138_p9 = pneg %p5137_p7 }
  0x70   : > { %p5143_p13 = pnand %p5142_p12, %p5138_p9 }
  0x72   : > { %5146 = shalt.err (!%p5143_p13)
}
  0x73   : > { %4826 = dma.hbm_to_vmem [thread:$0]  (!%p5601_p0), %s767_s6, 1024, %s769_s16, %s6485_s1, %s6523_s26, %s6523_s26, %s6522_s14  }
  0x74   : > { %s6525_s22 = sld [smem:[#allocation32_spill]]  ;;  %s5405_s12 = smov [#allocation4]  }
  0x75   : > { %s608_s5 = sshll.u32 %s5405_s12, 4  ;;  %s6526_s0 = sld [smem:[#allocation36_spill]]  ;;  %s609_s5 = int_to_ptr.vmem [resolvable:$true] %s608_s5 }
  0x76   : > { %s675_s10 = scalar_lea.vmem [#allocation9], %s5629_s30  ;;  %s3981_s7 = sshll.u32 %s5598_s21, 7 }
  0x77   : > { %s683_s6 = sshll.u32 %s675_s10, 4  ;;  %s684_s6 = int_to_ptr.vmem [resolvable:$true] %s683_s6 }
  0x7a   : > { %s606_s8 = sshll.u32 %s6525_s22, 4  ;;  %s607_s8 = int_to_ptr.hbm [resolvable:$true] %s606_s8 }
  0x7b   : > { %4807 = dma.hbm_to_vmem [thread:$0]  (!%p5572_p8), %s607_s8, 1024, %s609_s5, [#allocation5], %s6523_s26, %s6523_s26, %s6522_s14  }
  0x7c   : > { %s680_s2 = scalar_lea.hbm %s6526_s0, %s5632_s20  ;;  %s5199_s8 = scalar_lea.hbm %s6526_s0, 128 }
  0x7d   : > { %s681_s16 = sshll.u32 %s680_s2, 4  ;;  %s682_s16 = int_to_ptr.hbm [resolvable:$true] %s681_s16 }
  0x7e   : > { %s5192_s28 = sshra.s32 %s682_s16, 4  ;;  %s5193_s28 = int_to_ptr.hbm [resolvable:$true] %s5192_s28 }
  0x7f   : > { %s5194_s22 = scalar_lea.hbm %s5193_s28, 64  ;;  %p5200_p8 = scmp.lt.s32.totalorder %s5193_s28, %s6526_s0 }
  0x80   : > { %p5195_p2 = scmp.ne.s32.totalorder %s5193_s28, %s5194_s22  ;;  %p5201_p10 = scmp.lt.s32.totalorder %s5199_s8, %s5194_s22 }
  0x82   : > { %p5197_p7 = pnand %p5195_p2, %p5612_p3  ;;  %p5202_p11 = por %p5201_p10, %p5200_p8 }
  0x84   : > { %p5198_p9 = pneg %p5197_p7 }
  0x86   : > { %p5203_p12 = pnand %p5202_p11, %p5198_p9 }
  0x88   : > { %5206 = shalt.err (!%p5203_p12)
}
  0x89   : > { %s6527_s10 = scalar_lea.sflag [#allocation8], %s5595_s19  ;;  %s4626_s30 = sshll.u32 %s5398_s27, 7 }
  0x8a   : > { %4817 = dma.hbm_to_vmem [thread:$0]  (!%p5601_p0), %s682_s16, 1024, %s684_s6, %s6527_s10, %s6523_s26, %s6523_s26, %s6522_s14  }
  0x8b   : > { %s6528_s9 = sld [smem:[#allocation40_spill]]  ;;  %s731_s28 = scalar_lea.vmem [#allocation12], %s3981_s7 }
  0x8c   : > { %s739_s22 = sshll.u32 %s731_s28, 4  ;;  %s3987_s12 = sshll.u32 %s5598_s21, 8  ;;  %s740_s22 = int_to_ptr.vmem [resolvable:$true] %s739_s22 }
  0x91   : > { %s736_s2 = scalar_lea.hbm %s6528_s9, %s4626_s30  ;;  %s5229_s16 = scalar_lea.hbm %s6528_s9, 256 }
  0x92   : > { %s737_s23 = sshll.u32 %s736_s2, 4  ;;  %s738_s23 = int_to_ptr.hbm [resolvable:$true] %s737_s23 }
  0x93   : > { %s5222_s8 = sshra.s32 %s738_s23, 4  ;;  %s5223_s8 = int_to_ptr.hbm [resolvable:$true] %s5222_s8 }
  0x94   : > { %s5224_s5 = scalar_lea.hbm %s5223_s8, 128  ;;  %p5230_p9 = scmp.lt.s32.totalorder %s5223_s8, %s6528_s9 }
  0x95   : > { %p5225_p13 = scmp.ne.s32.totalorder %s5223_s8, %s5224_s5  ;;  %p5231_p8 = scmp.lt.s32.totalorder %s5229_s16, %s5224_s5 }
  0x97   : > { %p5227_p2 = pnand %p5225_p13, %p5612_p3  ;;  %p5232_p10 = por %p5231_p8, %p5230_p9 }
  0x99   : > { %p5228_p7 = pneg %p5227_p2 }
  0x9b   : > { %p5233_p11 = pnand %p5232_p10, %p5228_p7 }
  0x9d   : > { %5236 = shalt.err (!%p5233_p11)
}
  0x9e   : > { %s5406_s7 = smov 128   ;;  %s5407_s30 = smov 8  }
  0x9f   : > { %s6529_s24 = scalar_lea.sflag [#allocation11], %s5595_s19  ;;  %s4628_s2 = sshll.u32 %s5398_s27, 8 }
  0xa0   : > { %4823 = dma.hbm_to_vmem [thread:$0]  (!%p5601_p0), %s738_s23, 2048, %s740_s22, %s6529_s24, %s5406_s7, %s5406_s7, %s5407_s30  }
  0xa1   : > { %s6530_s15 = sld [smem:[#allocation46_spill]]  ;;  %s802_s8 = scalar_lea.vmem [#allocation15], %s3987_s12 }
  0xa2   : > { %s810_s5 = sshll.u32 %s802_s8, 4  ;;  %s811_s5 = int_to_ptr.vmem [resolvable:$true] %s810_s5 }
  0xa7   : > { %s807_s6 = scalar_lea.hbm %s6530_s15, %s4628_s2  ;;  %s5259_s27 = scalar_lea.hbm %s6530_s15, 512 }
  0xa8   : > { %s808_s16 = sshll.u32 %s807_s6, 4  ;;  %s809_s16 = int_to_ptr.hbm [resolvable:$true] %s808_s16 }
  0xa9   : > { %s5252_s10 = sshra.s32 %s809_s16, 4  ;;  %s5253_s10 = int_to_ptr.hbm [resolvable:$true] %s5252_s10 }
  0xaa   : > { %s5254_s20 = scalar_lea.hbm %s5253_s10, 256  ;;  %p5260_p7 = scmp.lt.s32.totalorder %s5253_s10, %s6530_s15 }
  0xab   : > { %p5255_p12 = scmp.ne.s32.totalorder %s5253_s10, %s5254_s20  ;;  %p5261_p9 = scmp.lt.s32.totalorder %s5259_s27, %s5254_s20 }
  0xad   : > { %p5257_p13 = pnand %p5255_p12, %p5612_p3  ;;  %p5262_p8 = por %p5261_p9, %p5260_p7 }
  0xaf   : > { %p5258_p2 = pneg %p5257_p13 }
  0xb1   : > { %p5263_p10 = pnand %p5262_p8, %p5258_p2 }
  0xb3   : > { %5266 = shalt.err (!%p5263_p10)
}
  0xb4   : > { %s5408_s30 = smov 256   ;;  %s5409_s24 = smov 16  }
  0xb5   : > { %s6531_s28 = scalar_lea.sflag [#allocation14], %s5595_s19  ;;  %s6532_s17 = sld [smem:[#allocation48_spill]] }
  0xb6   : > { %4829 = dma.hbm_to_vmem [thread:$0]  (!%p5601_p0), %s809_s16, 4096, %s811_s5, %s6531_s28, %s5408_s30, %s5408_s30, %s5409_s24  }
  0xb7   : > { %s831_s10 = scalar_lea.vmem [#allocation16], %s3987_s12  ;;  %s828_s22 = scalar_lea.sflag [#allocation17], %s5595_s19 }
  0xb8   : > { %s839_s20 = sshll.u32 %s831_s10, 4  ;;  %s840_s20 = int_to_ptr.vmem [resolvable:$true] %s839_s20 }
  0xbb   : > { %s836_s6 = scalar_lea.hbm %s6532_s17, %s4628_s2  ;;  %s5289_s16 = scalar_lea.hbm %s6532_s17, 512 }
  0xbc   : > { %s837_s8 = sshll.u32 %s836_s6, 4  ;;  %s838_s8 = int_to_ptr.hbm [resolvable:$true] %s837_s8 }
  0xbd   : > { %s5282_s27 = sshra.s32 %s838_s8, 4  ;;  %s5283_s27 = int_to_ptr.hbm [resolvable:$true] %s5282_s27 }
  0xbe   : > { %s5284_s23 = scalar_lea.hbm %s5283_s27, 256  ;;  %p5290_p2 = scmp.lt.s32.totalorder %s5283_s27, %s6532_s17 }
  0xbf   : > { %p5285_p11 = scmp.ne.s32.totalorder %s5283_s27, %s5284_s23  ;;  %p5291_p7 = scmp.lt.s32.totalorder %s5289_s16, %s5284_s23 }
  0xc1   : > { %p5287_p12 = pnand %p5285_p11, %p5612_p3  ;;  %p5292_p9 = por %p5291_p7, %p5290_p2 }
  0xc3   : > { %p5288_p13 = pneg %p5287_p12 }
  0xc5   : > { %p5293_p8 = pnand %p5292_p9, %p5288_p13 }
  0xc7   : > { %5296 = shalt.err (!%p5293_p8)
}
  0xc8   : > { %4832 = dma.hbm_to_vmem [thread:$0]  (!%p5601_p0), %s838_s8, 4096, %s840_s20, %s828_s22, %s6523_s26, %s6523_s26, %s6522_s14  }
  0xc9   : > { %857 = sbr.rel (%p5561_p6) target bundleno = 3924 (0xf54), region = 104 }
  0xce   : > { %5357 = dma.done.wait (%p129_p1), [#allocation5], 1024  }
  0xcf   : > { %5359 = vsyncadd (%p129_p1), [#allocation5], 4294966272  ;;  %s864_s19 = sand.u32 1, %s5548_s3   ;;  %s866_s21 = sand.u32 1, %s5390_s25  }
  0xd0   : > { %s4776_s12 = smul.u32 192, %s866_s21  ;;  %s865_s18 = scalar_lea.sflag [#allocation8], %s864_s19 }
  0xd2   : > { %s5767_s24 = scalar_lea.vmem [#allocation7], %s4776_s12 }
  0xd3   : > { %5361 = dma.done.wait (%p5557_p5), %s865_s18, 4096  }
  0xd4   : > { %5363 = vsyncadd (%p5557_p5), %s865_s18, 4294963200  ;;  %s3995_s29 = sshll.u32 %s866_s21, 6  ;;  %s885_s26 = scalar_lea.sflag [#allocation11], %s864_s19 }
  0xd5   : > { %s5773_s14 = scalar_lea.vmem [#allocation9], %s3995_s29  ;;  %s5775_s28 = scalar_lea.vmem [#allocation10], %s3995_s29 }
  0xd6   : > { %5365 = dma.done.wait (%p5557_p5), %s885_s26, 3072  }
  0xd7   : > { %5367 = vsyncadd (%p5557_p5), %s885_s26, 4294964224  ;;  %s3997_s1 = sshll.u32 %s866_s21, 7  ;;  %s905_s6 = scalar_lea.sflag [#allocation14], %s864_s19 }
  0xd8   : > { %s5781_s4 = scalar_lea.vmem [#allocation12], %s3997_s1  ;;  %s5783_s8 = scalar_lea.vmem [#allocation13], %s3995_s29 }
  0xd9   : > { %5369 = dma.done.wait (%p5557_p5), %s905_s6, 5120  }
  0xda   : > { %5371 = vsyncadd (%p5557_p5), %s905_s6, 4294962176  ;;  %s3999_s10 = sshll.u32 %s866_s21, 8  ;;  %s925_s22 = scalar_lea.sflag [#allocation17], %s864_s19 }
  0xdb   : > { %s5789_s20 = scalar_lea.vmem [#allocation15], %s3999_s10  ;;  %s5791_s27 = scalar_lea.vmem [#allocation16], %s3999_s10 }
  0xdc   : > { %5373 = dma.done.wait (%p5557_p5), %s925_s22, 4096  }
  0xdd   : > { %5375 = vsyncadd (%p5557_p5), %s925_s22, 4294963200 }
  0xde   : > { %5377 = dma.done.wait (%p129_p1), [#allocation17], 1024  }
  0xdf   : > { %5379 = vsyncadd (%p129_p1), [#allocation17], 4294966272  ;;  %p1050_p6 = scmp.lt.s32.totalorder %s5548_s3, 1  ;;  %s6534_s30 = sld [smem:[#allocation37_spill]] }
  0xe0   : > { %s6535_s21 = sld [smem:[#allocation39_spill]] }
  0xe1   : > { %s5803_s23 = scalar_select %p1050_p6, %s5548_s3, 1 }
  0xe2   : > { %s6536_s1 = sld [smem:[#allocation35_spill]] }
  0xe3   : > { %s4777_s7 = smul.u32 3, %s5803_s23  ;;  %s4002_s18 = sshll.u32 %s5803_s23, 1 }
  0xe4   : > { %s6537_s0 = sld [smem:[#allocation41_spill]]  ;;  %s5830_s16 = sshll.u32 %s5803_s23, 2 }
  0xe5   : > { %s1056_s2 = scalar_lea.vmem %s6534_s30, %s5803_s23  ;;  %s6539_s19 = sld [smem:[#allocation44_spill]] }
  0xe6   : > { %s1059_s12 = scalar_lea.vmem %s6535_s21, %s5803_s23  ;;  %s6540_s26 = sld [smem:[#allocation45_spill]] }
  0xe7   : > { %s6541_s10 = sld [smem:[#allocation47_spill]] }
  0xe8   : > { %s5818_s6 = scalar_lea.vmem %s6536_s1, %s4777_s7  ;;  %s6542_s22 = sld [smem:[#allocation49_spill]] }
  0xea   : > { %s5823_s9 = scalar_lea.vmem %s6537_s0, %s4002_s18  ;;  %1086 = sbr.rel (%p3971_p4) target bundleno = 505 (0x1f9), region = 144 }
  0xeb   : > { %s5836_s21 = scalar_lea.vmem %s6539_s19, %s5830_s16  ;;  %s6543_s19 = sld [smem:[#allocation31_spill]] (!%p3971_p4) }
  0xec   : > { %s5842_s1 = scalar_lea.vmem %s6540_s26, %s5830_s16  ;;  %s6544_s18 = sld [smem:[#allocation33_spill]] (!%p3971_p4) }
  0xed   : > { %s1078_s11 = scalar_lea.vmem %s6541_s10, %s5830_s16 }
  0xee   : > { %s1081_s5 = scalar_lea.vmem %s6542_s22, %s5803_s23 }
  0xef   : > { %v4637_v1 = vld [vmem:[#allocation4 + $0x38] sm:$0xff]  ;;  %v5410_v2 = vmov 0   ;;  %v4636_v3 = vld [vmem:[#allocation4 + $0x30] sm:$0xff]  ;;  %v4635_v4 = vld [vmem:[#allocation4 + $0x28] sm:$0xff]  ;;  %v1089_v12 = vlaneseq  ;;  %v5411_v15 = vmov 1.0|1.0  }
  0xf0   : > { %4891 = vset.pattern.permute.xlu0 %v5410_v2  ;;  %1170 = vmatpush.bf16.msra.mxu0 %v4637_v1  ;;  %v4634_v6 = vld [vmem:[#allocation4 + $0x20] sm:$0xff]  ;;  %v4633_v7 = vld [vmem:[#allocation4 + $0x18] sm:$0xff]  ;;  %v4632_v8 = vld [vmem:[#allocation4 + $0x10] sm:$0xff] }
  0xf1   : > { %v1087_v0 = vld [vmem:[%s6543_s19] sm:$0xff]  ;;  %v1088_v5 = vld [vmem:[%s6543_s19 + $0x8] sm:$0xff]  ;;  %v1090_v13 = vand.u32 127, %v1089_v12 }
  0xf2   : > { %1092 = vperm.xlu0 %4891, %v1087_v0   ;;  %v4631_v9 = vld [vmem:[#allocation4 + $0x8] sm:$0xff]  ;;  %v4630_v10 = vld [vmem:[#allocation4] sm:$0xff] }
  0xf3   : > { %v1120_v16 = vld [vmem:[%s6544_s18] sm:$0xff]  ;;  %v1121_v19 = vld [vmem:[%s6544_s18 + $0x8] sm:$0xff] }
  0xf4   : > { %1171 = vmatpush.bf16.msra.mxu0 %v4636_v3 }
  0xf8   : > { %1172 = vmatpush.bf16.msra.mxu0 %v4635_v4 }
  0xfa   : > { %1095 = vperm.xlu0 %4891, %v1088_v5  }
  0xfc   : > { %1173 = vmatpush.bf16.msra.mxu0 %v4634_v6 }
 0x100   : > { %1174 = vmatpush.bf16.msra.mxu0 %v4633_v7 }
 0x104   : > { %1175 = vmatpush.bf16.msra.mxu0 %v4632_v8 }
 0x108   : > { %1176 = vmatpush.bf16.msra.mxu0 %v4631_v9 }
 0x10c   : > { %1177 = vmatpush.bf16.msra.mxu0 %v4630_v10 }
 0x164   : > { %v1093_v11 = vpop.permute.xlu0 %1092 }
 0x165   : > { %vm1097_vm0 = vcmp.eq.s32.totalorder %v1090_v13, %v1093_v11 }
 0x16c   : > { %v1096_v14 = vpop.permute.xlu0 %1095 }
 0x16d   : > { %vm1098_vm1 = vcmp.eq.s32.totalorder %v1090_v13, %v1096_v14 }
 0x16e   : > { %vm4041_vm2 = vmpackc.low %vm1098_vm1, %vm1097_vm0 }
 0x16f   : > { %4042 = vmatmul.msk.bf16.vlgmr.msra.gmra.mxu0 %vm4041_vm2, %v5411_v15 }
 0x1ec   : > { %v1179_v17 = vpop.f32.mrf.mxu0 }
 0x1ed   : > { %v1180_v18 = vadd.f32 %v1179_v17, %v1120_v16 }
 0x1ef   : > { %1184 = vst [vmem:[#allocation2] sm:$0xff] %v1180_v18 }
 0x1f0   : > { %1186 = vst [vmem:[#allocation3 + $0x8] sm:$0xff] %v1180_v18 }
 0x1f4   : > { %v1181_v20 = vpop.f32.mrf.mxu0 }
 0x1f5   : > { %v1182_v21 = vadd.f32 %v1181_v20, %v1121_v19 }
 0x1f7   : > { %1185 = vst [vmem:[#allocation2 + $0x8] sm:$0xff] %v1182_v21 }
 0x1f8   : > { %1187 = vst [vmem:[#allocation3] sm:$0xff] %v1182_v21 }
 0x1f9 PF: > { %v4129_v22 = vld [vmem:[%s5767_s24 + $0xa8] sm:$0xf]  ;;  %v4660_v23 = vld [vmem:[%s5767_s24 + $0xb0] sm:$0xf0]  ;;  %v4659_v24 = vld [vmem:[%s5767_s24 + $0xac] sm:$0xf] }
 0x1fa   : > { %v4130_v25 = vor.u32 %v4660_v23, %v4129_v22  ;;  %v4131_v26 = vld [vmem:[%s5767_s24 + $0xb4] sm:$0xf0]  ;;  %v4117_v27 = vld [vmem:[%s5767_s24 + $0x90] sm:$0xf]  ;;  %v4657_v28 = vld [vmem:[%s5767_s24 + $0x98] sm:$0xf0] }
 0x1fb   : > { %v4134_v29 = vor.u32 %v4659_v24, %v4131_v26  ;;  %v4656_v30 = vld [vmem:[%s5767_s24 + $0x94] sm:$0xf]  ;;  %v4119_v31 = vld [vmem:[%s5767_s24 + $0x9c] sm:$0xf0]  ;;  %v4118_v32 = vor.u32 %v4657_v28, %v4117_v27  ;;  %v4105_v34 = vld [vmem:[%s5767_s24 + $0x78] sm:$0xf] }
 0x1fc   : > { %1368 = vmatpush.bf16.msra.mxu0 %v4130_v25  ;;  %v4122_v33 = vor.u32 %v4656_v30, %v4119_v31  ;;  %v4654_v35 = vld [vmem:[%s5767_s24 + $0x80] sm:$0xf0]  ;;  %v4653_v36 = vld [vmem:[%s5767_s24 + $0x7c] sm:$0xf]  ;;  %v4107_v37 = vld [vmem:[%s5767_s24 + $0x84] sm:$0xf0] }
 0x1fd   : > { %1382 = vmatpush.bf16.msra.mxu1 %v4134_v29  ;;  %v4106_v38 = vor.u32 %v4654_v35, %v4105_v34  ;;  %v4110_v39 = vor.u32 %v4653_v36, %v4107_v37  ;;  %v4093_v40 = vld [vmem:[%s5767_s24 + $0x60] sm:$0xf]  ;;  %v4651_v41 = vld [vmem:[%s5767_s24 + $0x68] sm:$0xf0]  ;;  %v4650_v42 = vld [vmem:[%s5767_s24 + $0x64] sm:$0xf] }
 0x1fe   : > { %v4095_v43 = vld [vmem:[%s5767_s24 + $0x6c] sm:$0xf0]  ;;  %v4094_v44 = vor.u32 %v4651_v41, %v4093_v40  ;;  %v4081_v45 = vld [vmem:[%s5767_s24 + $0x48] sm:$0xf]  ;;  %v4648_v47 = vld [vmem:[%s5767_s24 + $0x50] sm:$0xf0] }
 0x1ff   : > { %v4098_v46 = vor.u32 %v4650_v42, %v4095_v43  ;;  %v4647_v48 = vld [vmem:[%s5767_s24 + $0x4c] sm:$0xf]  ;;  %v4083_v49 = vld [vmem:[%s5767_s24 + $0x54] sm:$0xf0]  ;;  %v4082_v50 = vor.u32 %v4648_v47, %v4081_v45  ;;  %v4069_v52 = vld [vmem:[%s5767_s24 + $0x30] sm:$0xf] }
 0x200   : > { %1369 = vmatpush.bf16.msra.mxu0 %v4118_v32  ;;  %v4086_v51 = vor.u32 %v4647_v48, %v4083_v49  ;;  %v4645_v53 = vld [vmem:[%s5767_s24 + $0x38] sm:$0xf0]  ;;  %v4644_v54 = vld [vmem:[%s5767_s24 + $0x34] sm:$0xf]  ;;  %v4071_v55 = vld [vmem:[%s5767_s24 + $0x3c] sm:$0xf0] }
 0x201   : > { %1383 = vmatpush.bf16.msra.mxu1 %v4122_v33  ;;  %v4070_v56 = vor.u32 %v4645_v53, %v4069_v52  ;;  %v4074_v57 = vor.u32 %v4644_v54, %v4071_v55  ;;  %v4057_v58 = vld [vmem:[%s5767_s24 + $0x18] sm:$0xf]  ;;  %v4642_v59 = vld [vmem:[%s5767_s24 + $0x20] sm:$0xf0]  ;;  %v4641_v60 = vld [vmem:[%s5767_s24 + $0x1c] sm:$0xf] }
 0x202   : > { %v4059_v61 = vld [vmem:[%s5767_s24 + $0x24] sm:$0xf0]  ;;  %v4058_v62 = vor.u32 %v4642_v59, %v4057_v58  ;;  %v4045_v0 = vld [vmem:[%s5767_s24] sm:$0xf]  ;;  %v4639_v1 = vld [vmem:[%s5767_s24 + $0x8] sm:$0xf0] }
 0x203   : > { %v4062_v63 = vor.u32 %v4641_v60, %v4059_v61  ;;  %v4638_v2 = vld [vmem:[%s5767_s24 + $0x4] sm:$0xf]  ;;  %v4047_v3 = vld [vmem:[%s5767_s24 + $0xc] sm:$0xf0]  ;;  %v4046_v4 = vor.u32 %v4639_v1, %v4045_v0  ;;  %v5900_v6 = vld [vmem:[#allocation2 + $0x8] sm:$0xff]  ;;  %vm1511_vm3 = vcmask 261120  }
 0x204   : > { %1370 = vmatpush.bf16.msra.mxu0 %v4106_v38  ;;  %v5898_v5 = vld [vmem:[#allocation2] sm:$0xff]  ;;  %v4050_v7 = vor.u32 %v4638_v2, %v4047_v3  ;;  %v4137_v12 = vld [vmem:[%s5767_s24 + $0xb0] sm:$0xf]  ;;  %v4661_v13 = vld [vmem:[%s5767_s24 + $0xb8] sm:$0xf0]  ;;  %s5413_s17 = smov 96  }
 0x205   : > { %1384 = vmatpush.bf16.msra.mxu1 %v4110_v39  ;;  %v5904_v8 = vpack.c.bf16 %v5900_v6, %v5898_v5  ;;  %v5909_v9 = vld [vmem:[%s5818_s6] sm:$0x7]  ;;  %v4125_v14 = vld [vmem:[%s5767_s24 + $0x98] sm:$0xf]  ;;  %v4138_v15 = vor.u32 %v4661_v13, %v4137_v12  ;;  %v4658_v16 = vld [vmem:[%s5767_s24 + $0xa0] sm:$0xf0] }
 0x206   : > { %v1234_v10 = vperm.slane %v5909_v9, 0  ;;  %v1235_v11 = vperm.slane %v5909_v9, 1  ;;  %v4126_v20 = vor.u32 %v4658_v16, %v4125_v14  ;;  %v4113_v22 = vld [vmem:[%s5767_s24 + $0x80] sm:$0xf]  ;;  %v4655_v23 = vld [vmem:[%s5767_s24 + $0x88] sm:$0xf0] }
 0x207   : > { %1396 = vmatpush.bf16.msra.mxu2 %v4138_v15  ;;  %s5412_s6 = smov 64   ;;  %v4114_v25 = vor.u32 %v4655_v23, %v4113_v22  ;;  %v4101_v27 = vld [vmem:[%s5767_s24 + $0x68] sm:$0xf]  ;;  %v4652_v28 = vld [vmem:[%s5767_s24 + $0x70] sm:$0xf0]  ;;  %s5414_s22 = smov 32  }
 0x208   : > { %1371 = vmatpush.bf16.msra.mxu0 %v4094_v44  ;;  %v4102_v30 = vor.u32 %v4652_v28, %v4101_v27  ;;  %v4089_v32 = vld [vmem:[%s5767_s24 + $0x50] sm:$0xf]  ;;  %v4649_v33 = vld [vmem:[%s5767_s24 + $0x58] sm:$0xf0]  ;;  %v4077_v39 = vld [vmem:[%s5767_s24 + $0x38] sm:$0xf] }
 0x209   : > { %1385 = vmatpush.bf16.msra.mxu1 %v4098_v46  ;;  %v4090_v37 = vor.u32 %v4649_v33, %v4089_v32  ;;  %v4646_v40 = vld [vmem:[%s5767_s24 + $0x40] sm:$0xf0]  ;;  %v4065_v44 = vld [vmem:[%s5767_s24 + $0x20] sm:$0xf]  ;;  %v4643_v45 = vld [vmem:[%s5767_s24 + $0x28] sm:$0xf0] }
 0x20a   : > { %v4078_v42 = vor.u32 %v4646_v40, %v4077_v39  ;;  %v4066_v46 = vor.u32 %v4643_v45, %v4065_v44  ;;  %v4053_v47 = vld [vmem:[%s5767_s24 + $0x8] sm:$0xf]  ;;  %v4640_v48 = vld [vmem:[%s5767_s24 + $0x10] sm:$0xf0]  ;;  %vm1674_vm5 = vcmask 64512   ;;  %vm1774_vm6 = vcmask 1043456  }
 0x20b   : > { %1397 = vmatpush.bf16.msra.mxu2 %v4126_v20  ;;  %v4054_v49 = vor.u32 %v4640_v48, %v4053_v47  ;;  %vm1950_vm7 = vcmask 523264   ;;  %vm1953_vm8 = vcmask 785408   ;;  %p4587_p1 = scmp.ne.s32.totalorder %s5548_s3, 1 }
 0x20c   : > { %1372 = vmatpush.bf16.msra.mxu0 %v4082_v50  ;;  %s6553_s7 = sld [smem:[#allocation51_spill]] (!%p4587_p1) }
 0x20d   : > { %1386 = vmatpush.bf16.msra.mxu1 %v4086_v51 }
 0x20f   : > { %1398 = vmatpush.bf16.msra.mxu2 %v4114_v25 }
 0x210   : > { %1373 = vmatpush.bf16.msra.mxu0 %v4070_v56 }
 0x211   : > { %1387 = vmatpush.bf16.msra.mxu1 %v4074_v57 }
 0x213   : > { %1399 = vmatpush.bf16.msra.mxu2 %v4102_v30 }
 0x214   : > { %1374 = vmatpush.bf16.msra.mxu0 %v4058_v62 }
 0x215   : > { %1388 = vmatpush.bf16.msra.mxu1 %v4062_v63 }
 0x217   : > { %1400 = vmatpush.bf16.msra.mxu2 %v4090_v37 }
 0x218   : > { %1375 = vmatpush.bf16.msra.mxu0 %v4046_v4 }
 0x219   : > { %1389 = vmatpush.bf16.msra.mxu1 %v4050_v7 }
 0x21b   : > { %1376 = vmatmul.bf16.vlgmr.msra.gmra.mxu0 %v5904_v8  ;;  %1401 = vmatpush.bf16.msra.mxu2 %v4078_v42 }
 0x21c   : > { %1390 = vmatmul.bf16.vlgmr.msra.gmra.mxu1 %v5904_v8 }
 0x21f   : > { %1402 = vmatpush.bf16.msra.mxu2 %v4066_v46 }
 0x223   : > { %1403 = vmatpush.bf16.msra.mxu2 %v4054_v49 }
 0x226   : > { %1404 = vmatmul.bf16.vlgmr.msra.gmra.mxu2 %v5904_v8 }
 0x298   : > { %v1377_v17 = vpop.f32.mrf.mxu0 }
 0x299   : > { %v1378_v18 = vadd.f32 %v1377_v17, %v1234_v10  ;;  %v1391_v19 = vpop.f32.mrf.mxu1 }
 0x29a   : > { %v1392_v21 = vadd.f32 %v1391_v19, %v1235_v11 }
 0x29b   : > { %1435 = vrot.lane.b32.xlu1 %v1378_v18, %s5412_s6  ;;  %v1447_v35 = vpack.c.bf16 %v1378_v18, %v1378_v18 }
 0x29c   : > { %1463 = vrot.lane.b32.xlu0 %v1392_v21, %s5412_s6  ;;  %v1475_v24 = vpack.c.bf16 %v1392_v21, %v1392_v21 }
 0x29e   : > { %v1516_v26 = vsel %vm1511_vm3, %v1475_v24, 0 }
 0x29f   : > { %1525 = vmatpush.bf16.xpose.msra.mxu3 %v1516_v26 }
 0x2a0   : > { %v1379_v41 = vpop.f32.mrf.mxu0 }
 0x2a1   : > { %v1393_v29 = vpop.f32.mrf.mxu1  ;;  %v1380_v43 = vadd.f32 %v1379_v41, %v1234_v10 }
 0x2a2   : > { %v1394_v31 = vadd.f32 %v1393_v29, %v1235_v11  ;;  %v1192_v11 = vlaneseq  ;;  %v1236_v29 = vperm.slane %v5909_v9, 2 }
 0x2a3   : > { %v1448_v50 = vpack.c.bf16 %v1380_v43, %v1380_v43 }
 0x2a4   : > { %1465 = vrot.lane.b32.xlu2 %v1394_v31, %s5412_s6  ;;  %1457 = vrot.lane.b32.xlu0 %v1392_v21, %s5413_s17  ;;  %v4892_v34 = vpack.i.bf16 %v1394_v31, %v1378_v18  ;;  %v1476_v36 = vpack.c.bf16 %v1394_v31, %v1394_v31  ;;  %v1193_v13 = vshrl.u32 %v1192_v11, 7  ;;  %v1195_v14 = vand.u32 127, %v1192_v11 }
 0x2a6   : > { %4893 = vrot.lane.b32.xlu1 %v4892_v34, %s5413_s17  ;;  %4139 = vmatmul.msk.bf16.vlgmr.msra.gmra.mxu3 %vm1511_vm3, %v1447_v35  ;;  %v1535_v38 = vsel %vm1511_vm3, %v1476_v36, 0  ;;  %vm5953_vm4 = vcmp.gt.s32.totalorder %v1195_v14, %v1193_v13 }
 0x2a7   : > { %1544 = vmatpush.bf16.xpose.msrb.mxu3 %v1535_v38 }
 0x2a9   : > { %v1405_v33 = vpop.f32.mrf.mxu2 }
 0x2aa   : > { %v5968_v34 = vadd.f32 %v1405_v33, %v1236_v29 }
 0x2ac   : > { %1469 = vrot.lane.b32.xlu2 %v1392_v21, %s5414_s22  ;;  %1431 = vrot.lane.b32.xlu0 %v1380_v43, %s5413_s17  ;;  %v1503_v35 = vpack.c.bf16 %v5968_v34, %v5968_v34 }
 0x2ae   : > { %1437 = vrot.lane.b32.xlu1 %v1380_v43, %s5412_s6  ;;  %v1776_v36 = vsel %vm1774_vm6, %v1503_v35, 0 }
 0x2af   : > { %1785 = vmatpush.bf16.msrb.mxu1 %v1776_v36 }
 0x2b1   : > { %v1407_v38 = vpop.f32.mrf.mxu2 }
 0x2b2   : > { %v5973_v9 = vadd.f32 %v1407_v38, %v1236_v29 }
 0x2b4   : > { %1471 = vrot.lane.b32.xlu0 %v1394_v31, %s5414_s22  ;;  %1441 = vrot.lane.b32.xlu2 %v1378_v18, %s5414_s22  ;;  %v1504_v39 = vpack.c.bf16 %v5973_v9, %v5973_v9 }
 0x2b6   : > { %1443 = vrot.lane.b32.xlu1 %v1380_v43, %s5414_s22  ;;  %4140 = vmatmul.msk.bf16.vlgmr.msrb.gmra.mxu3 %vm1511_vm3, %v1448_v50  ;;  %v1795_v40 = vsel %vm1774_vm6, %v1504_v39, 0 }
 0x2fe   : > { %v1466_v51 = vpop.permute.xlu2 %1465 }
 0x2ff   : > { %v1480_v52 = vpack.c.bf16 %v1466_v51, %v1466_v51 }
 0x301   : > { %v1611_v57 = vsel %vm1511_vm3, %v1480_v52, 0 }
 0x306   : > { %v1470_v58 = vpop.permute.xlu2 %1469 }
 0x307   : > { %v1481_v59 = vpack.c.bf16 %v1470_v58, %v1470_v58 }
 0x309   : > { %v1630_v2 = vsel %vm1511_vm3, %v1481_v59, 0 }
 0x30d   : > { %v1436_v54 = vpop.permute.xlu1 %1435 }
 0x30e   : > { %v1464_v53 = vpop.permute.xlu0 %1463  ;;  %v1451_v61 = vpack.c.bf16 %v1436_v54, %v1436_v54  ;;  %v1442_v24 = vpop.permute.xlu2 %1441 }
 0x30f   : > { %v1479_v55 = vpack.c.bf16 %v1464_v53, %v1464_v53  ;;  %v1453_v25 = vpack.c.bf16 %v1442_v24, %v1442_v24 }
 0x311   : > { %v1592_v56 = vsel %vm1511_vm3, %v1479_v55, 0 }
 0x312   : > { %1601 = vmatpush.bf16.xpose.msrb.mxu2 %v1592_v56 }
 0x316   : > { %v1458_v60 = vpop.permute.xlu0 %1457 }
 0x317   : > { %v1477_v62 = vpack.c.bf16 %v1458_v60, %v1458_v60 }
 0x318   : > { %v4894_v63 = vpop.permute.xlu1 %4893 }
 0x319   : > { %v1554_v0 = vsel %vm1511_vm3, %v1477_v62, 0  ;;  %v4896_v1 = vunpack.i.h.bf16 %v4894_v63  ;;  %4143 = vmatmul.msk.bf16.vlgmr.msrb.gmra.mxu2 %vm1511_vm3, %v1451_v61  ;;  %v4895_v4 = vunpack.i.l.bf16 %v4894_v63 }
 0x31a   : > { %1620 = vmatpush.bf16.xpose.msra.mxu2 %v1611_v57  ;;  %1563 = vmatpush.bf16.xpose.msra.mxu3 %v1554_v0 }
 0x31b   : > { %v1478_v3 = vpack.c.bf16 %v4896_v1, %v4896_v1  ;;  %v1449_v10 = vpack.c.bf16 %v4895_v4, %v4895_v4 }
 0x31d   : > { %v1573_v7 = vsel %vm1511_vm3, %v1478_v3, 0 }
 0x31e   : > { %v1432_v8 = vpop.permute.xlu0 %1431  ;;  %1582 = vmatpush.bf16.xpose.msrb.mxu0 %v1573_v7 }
 0x31f   : > { %v1450_v12 = vpack.c.bf16 %v1432_v8, %v1432_v8  ;;  %v4897_v8 = vpack.i.bf16 %v5973_v9, %v5968_v34 }
 0x320   : > { %v1438_v15 = vpop.permute.xlu1 %1437 }
 0x321   : > { %4141 = vmatmul.msk.bf16.vlgmr.msra.gmra.mxu3 %vm1511_vm3, %v1449_v10  ;;  %v1452_v17 = vpack.c.bf16 %v1438_v15, %v1438_v15 }
 0x322   : > { %1639 = vmatpush.bf16.xpose.msrb.mxu3 %v1630_v2  ;;  %1804 = vmatpush.bf16.msrb.mxu2 %v1795_v40 }
 0x325   : > { %4142 = vmatmul.msk.bf16.vlgmr.msrb.gmra.mxu0 %vm1511_vm3, %v1450_v12 }
 0x326   : > { %v1472_v16 = vpop.permute.xlu0 %1471 }
 0x327   : > { %v1482_v18 = vpack.c.bf16 %v1472_v16, %v1472_v16 }
 0x328   : > { %v1444_v26 = vpop.permute.xlu1 %1443 }
 0x329   : > { %v1649_v20 = vsel %vm1511_vm3, %v1482_v18, 0  ;;  %v1527_v21 = vpop.f32.mrf.mxu3  ;;  %4144 = vmatmul.msk.bf16.vlgmr.msra.gmra.mxu2 %vm1511_vm3, %v1452_v17  ;;  %v1454_v28 = vpack.c.bf16 %v1444_v26, %v1444_v26 }
 0x32a   : > { %v1666_v22 = vsel %vm5953_vm4, -1e+30, %v1527_v21  ;;  %1658 = vmatpush.bf16.xpose.msra.mxu0 %v1649_v20 }
 0x32b   : > { %v1675_v23 = vsel %vm1674_vm5, %v1666_v22, -inf }
 0x32c   : > { %1676 = vmax.xlane.f32.xlu1 %v1675_v23 }
 0x331   : > { %v1529_v27 = vpop.f32.mrf.mxu3  ;;  %4145 = vmatmul.msk.bf16.vlgmr.msrb.gmra.mxu3 %vm1511_vm3, %v1453_v25 }
 0x335   : > { %4146 = vmatmul.msk.bf16.vlgmr.msra.gmra.mxu0 %vm1511_vm3, %v1454_v28 }
 0x339   : > { %v1546_v30 = vpop.f32.mrf.mxu3 }
 0x33a   : > { %v1667_v31 = vsel %vm5953_vm4, -1e+30, %v1546_v30 }
 0x33b   : > { %v1678_v32 = vsel %vm1674_vm5, %v1667_v31, -inf }
 0x33c   : > { %1679 = vmax.xlane.f32.xlu2 %v1678_v32 }
 0x341   : > { %v1548_v37 = vpop.f32.mrf.mxu3 }
 0x39c   : > { %v1603_v41 = vpop.f32.mrf.mxu2 }
 0x39d   : > { %v5980_v42 = vsel %vm5953_vm4, -1e+30, %v1603_v41 }
 0x39e   : > { %v1687_v43 = vsel %vm1674_vm5, %v5980_v42, -inf }
 0x39f   : > { %1688 = vmax.xlane.f32.xlu1 %v1687_v43  ;;  %v1677_v51 = vpop.xlane.xlu1 %1676 }
 0x3a0   : > { %v1699_v55 = vsub.f32 %v1666_v22, %v1677_v51 }
 0x3a2   : > { %v1584_v44 = vpop.f32.mrf.mxu0  ;;  %v1707_v58 = vmul.f32 1.442695, %v1699_v55 }
 0x3a3   : > { %v1669_v45 = vsel %vm5953_vm4, -1e+30, %v1584_v44 }
 0x3a4   : > { %v1565_v46 = vpop.f32.mrf.mxu3  ;;  %v1605_v47 = vpop.f32.mrf.mxu2  ;;  %v1684_v48 = vsel %vm1674_vm5, %v1669_v45, -inf  ;;  %4961 = vpow2.f32 %v1707_v58 }
 0x3a5   : > { %v1668_v49 = vsel %vm5953_vm4, -1e+30, %v1565_v46  ;;  %1685 = vmax.xlane.f32.xlu2 %v1684_v48 }
 0x3a6   : > { %v1681_v50 = vsel %vm1674_vm5, %v1668_v49, -inf }
 0x3a7   : > { %1682 = vmax.xlane.f32.xlu0 %v1681_v50 }
 0x3aa   : > { %v1586_v52 = vpop.f32.mrf.mxu0  ;;  %v4962_v3 = vpop.eup %4961 }
 0x3ab   : > { %v1723_v7 = vsel %vm1674_vm5, %v4962_v3, 0.0 }
 0x3ac   : > { %v1567_v53 = vpop.f32.mrf.mxu3  ;;  %v1622_v54 = vpop.f32.mrf.mxu2 }
 0x3ad   : > { %v1671_v56 = vsel %vm5953_vm4, -1e+30, %v1622_v54 }
 0x3ae   : > { %v1690_v57 = vsel %vm1674_vm5, %v1671_v56, -inf }
 0x3af   : > { %1691 = vmax.xlane.f32.xlu2 %v1690_v57  ;;  %v1680_v10 = vpop.xlane.xlu2 %1679 }
 0x3b0   : > { %v1700_v11 = vsub.f32 %v1667_v31, %v1680_v10 }
 0x3b2   : > { %v1660_v59 = vpop.f32.mrf.mxu0  ;;  %v1709_v12 = vmul.f32 1.442695, %v1700_v11 }
 0x3b3   : > { %v1673_v60 = vsel %vm5953_vm4, -1e+30, %v1660_v59 }
 0x3b4   : > { %v1624_v61 = vpop.f32.mrf.mxu2  ;;  %v1641_v62 = vpop.f32.mrf.mxu3  ;;  %v1696_v0 = vsel %vm1674_vm5, %v1673_v60, -inf  ;;  %4963 = vpow2.f32 %v1709_v12 }
 0x3b5   : > { %v1672_v63 = vsel %vm5953_vm4, -1e+30, %v1641_v62 }
 0x3b6   : > { %v1693_v1 = vsel %vm1674_vm5, %v1672_v63, -inf }
 0x3b7   : > { %1697 = vmax.xlane.f32.xlu2 %v1696_v0  ;;  %1694 = vmax.xlane.f32.xlu0 %v1693_v1 }
 0x3ba   : > { %v1662_v2 = vpop.f32.mrf.mxu0  ;;  %v6003_v13 = vpop.eup %4963 }
 0x3bb   : > { %v1726_v14 = vsel %vm1674_vm5, %v6003_v13, 0.0 }
 0x3bc   : > { %v1643_v4 = vpop.f32.mrf.mxu3 }
 0x3bf   : > { %1724 = vadd.xlane.f32.xlu2 %v1723_v7 }
 0x3cb   : > { %4898 = vrot.lane.b32.xlu0 %v4897_v8, %s5413_s17 }
 0x3f5   : > { %1727 = vadd.xlane.f32.xlu0 %v1726_v14 }
 0x409   : > { %1497 = vrot.lane.b32.xlu0 %v5968_v34, %s5414_s22 }
 0x411   : > { %1499 = vrot.lane.b32.xlu0 %v5973_v9, %s5414_s22 }
 0x412   : > { %v1689_v21 = vpop.xlane.xlu1 %1688 }
 0x413   : > { %v1703_v25 = vsub.f32 %v5980_v42, %v1689_v21 }
 0x415   : > { %v1715_v28 = vmul.f32 1.442695, %v1703_v25 }
 0x418   : > { %v1686_v15 = vpop.xlane.xlu2 %1685 }
 0x419   : > { %v1702_v18 = vsub.f32 %v1669_v45, %v1686_v15 }
 0x41a   : > { %v1683_v16 = vpop.xlane.xlu0 %1682 }
 0x41b   : > { %v1701_v17 = vsub.f32 %v1668_v49, %v1683_v16  ;;  %v1713_v20 = vmul.f32 1.442695, %v1702_v18 }
 0x41d   : > { %v1711_v19 = vmul.f32 1.442695, %v1701_v17 }
 0x41f   : > { %4965 = vpow2.f32 %v1711_v19 }
 0x420   : > { %4967 = vpow2.f32 %v1713_v20 }
 0x422   : > { %v1692_v22 = vpop.xlane.xlu2 %1691 }
 0x423   : > { %v1704_v23 = vsub.f32 %v1671_v56, %v1692_v22  ;;  %v4902_v56 = vpack.i.bf16 %v5968_v34, %v5973_v9 }
 0x425   : > { %v6011_v24 = vpop.eup %4965  ;;  %v1717_v26 = vmul.f32 1.442695, %v1704_v23 }
 0x426   : > { %v1729_v27 = vsel %vm1674_vm5, %v6011_v24, 0.0  ;;  %v6016_v31 = vpop.eup %4967 }
 0x427   : > { %4969 = vpow2.f32 %v1717_v26  ;;  %1730 = vadd.xlane.f32.xlu1 %v1729_v27  ;;  %v1732_v36 = vsel %vm1674_vm5, %v6016_v31, 0.0 }
 0x428   : > { %4971 = vpow2.f32 %v1715_v28 }
 0x42a   : > { %v1698_v29 = vpop.xlane.xlu2 %1697  ;;  %v1695_v30 = vpop.xlane.xlu0 %1694 }
 0x42b   : > { %v1705_v33 = vsub.f32 %v1672_v63, %v1695_v30  ;;  %v1706_v40 = vsub.f32 %v1673_v60, %v1698_v29 }
 0x42d   : > { %v6018_v32 = vpop.eup %4969  ;;  %v1719_v37 = vmul.f32 1.442695, %v1705_v33  ;;  %v1721_v43 = vmul.f32 1.442695, %v1706_v40 }
 0x42e   : > { %v1738_v35 = vsel %vm1674_vm5, %v6018_v32, 0.0  ;;  %v6024_v39 = vpop.eup %4971 }
 0x42f   : > { %1739 = vadd.xlane.f32.xlu2 %v1738_v35  ;;  %1733 = vadd.xlane.f32.xlu1 %v1732_v36  ;;  %v1735_v41 = vsel %vm1674_vm5, %v6024_v39, 0.0 }
 0x432   : > { %v1725_v38 = vpop.xlane.xlu2 %1724 }
 0x433   : > { %4973 = vrcp.f32 %v1725_v38 }
 0x434   : > { %4975 = vpow2.f32 %v1719_v37 }
 0x435   : > { %4977 = vpow2.f32 %v1721_v43 }
 0x437   : > { %1736 = vadd.xlane.f32.xlu1 %v1735_v41 }
 0x439   : > { %v4974_v42 = vpop.eup %4973 }
 0x43a   : > { %v1755_v44 = vmul.f32 %v4974_v42, %v4962_v3  ;;  %v6028_v45 = vpop.eup %4975  ;;  %v4669_v42 = vld [vmem:[%s5773_s14 + $0x38] sm:$0xff] }
 0x43b   : > { %v1741_v50 = vsel %vm1674_vm5, %v6028_v45, 0.0  ;;  %v6035_v55 = vpop.eup %4977 }
 0x43c   : > { %v1763_v46 = vpack.c.bf16 %v1755_v44, %v1755_v44  ;;  %v1744_v57 = vsel %vm1674_vm5, %v6035_v55, 0.0 }
 0x43d   : > { %v4899_v47 = vpop.permute.xlu0 %4898 }
 0x43e   : > { %v4901_v48 = vunpack.i.h.bf16 %v4899_v47  ;;  %v4900_v49 = vunpack.i.l.bf16 %v4899_v47  ;;  %4147 = vmatmul.msk.bf16.vlgmr.msrb.gmra.mxu1 %vm1674_vm5, %v1763_v46  ;;  %v4667_v47 = vld [vmem:[%s5773_s14 + $0x28] sm:$0xff] }
 0x43f   : > { %1742 = vadd.xlane.f32.xlu1 %v1741_v50  ;;  %v4666_v50 = vld [vmem:[%s5773_s14 + $0x20] sm:$0xff] }
 0x440   : > { %v1506_v51 = vpack.c.bf16 %v4901_v48, %v4901_v48  ;;  %v1505_v52 = vpack.c.bf16 %v4900_v49, %v4900_v49 }
 0x442   : > { %v1814_v53 = vsel %vm1774_vm6, %v1505_v52, 0  ;;  %v1833_v54 = vsel %vm1774_vm6, %v1506_v51, 0 }
 0x443   : > { %1823 = vmatpush.bf16.msra.mxu3 %v1814_v53  ;;  %1842 = vmatpush.bf16.msrb.mxu0 %v1833_v54 }
 0x447   : > { %4903 = vrot.lane.b32.xlu2 %v4902_v56, %s5412_s6  ;;  %1745 = vadd.xlane.f32.xlu1 %v1744_v57 }
 0x468   : > { %v1728_v58 = vpop.xlane.xlu0 %1727 }
 0x469   : > { %4979 = vrcp.f32 %v1728_v58 }
 0x46f   : > { %v4980_v59 = vpop.eup %4979 }
 0x470   : > { %v1756_v60 = vmul.f32 %v4980_v59, %v6003_v13 }
 0x472   : > { %v1764_v61 = vpack.c.bf16 %v1756_v60, %v1756_v60  ;;  %v4665_v60 = vld [vmem:[%s5773_s14 + $0x18] sm:$0xff] }
 0x474   : > { %4148 = vmatmul.msk.bf16.vlgmr.msrb.gmra.mxu2 %vm1674_vm5, %v1764_v61  ;;  %v4664_v61 = vld [vmem:[%s5773_s14 + $0x10] sm:$0xff] }
 0x47b   : > { %v1498_v62 = vpop.permute.xlu0 %1497 }
 0x47c   : > { %v1509_v63 = vpack.c.bf16 %v1498_v62, %v1498_v62  ;;  %v4663_v62 = vld [vmem:[%s5773_s14 + $0x8] sm:$0xff] }
 0x47e   : > { %v1890_v0 = vsel %vm1774_vm6, %v1509_v63, 0  ;;  %v4662_v63 = vld [vmem:[%s5773_s14] sm:$0xff] }
 0x47f   : > { %1899 = vmatpush.bf16.msrb.mxu3 %v1890_v0 }
 0x483   : > { %v1500_v34 = vpop.permute.xlu0 %1499 }
 0x484   : > { %v1510_v9 = vpack.c.bf16 %v1500_v34, %v1500_v34 }
 0x486   : > { %v1909_v1 = vsel %vm1774_vm6, %v1510_v9, 0 }
 0x487   : > { %1918 = vmatpush.bf16.msra.mxu0 %v1909_v1 }
 0x49a   : > { %v1731_v2 = vpop.xlane.xlu1 %1730 }
 0x49b   : > { %4981 = vrcp.f32 %v1731_v2 }
 0x4a1   : > { %v4982_v3 = vpop.eup %4981 }
 0x4a2   : > { %v1757_v4 = vmul.f32 %v4982_v3, %v6011_v24  ;;  %v1740_v7 = vpop.xlane.xlu2 %1739  ;;  %v1734_v8 = vpop.xlane.xlu1 %1733 }
 0x4a3   : > { %4983 = vrcp.f32 %v1740_v7 }
 0x4a4   : > { %v1765_v10 = vpack.c.bf16 %v1757_v4, %v1757_v4  ;;  %4985 = vrcp.f32 %v1734_v8 }
 0x4a6   : > { %4149 = vmatmul.msk.bf16.vlgmr.msra.gmra.mxu3 %vm1674_vm5, %v1765_v10 }
 0x4a9   : > { %v4984_v11 = vpop.eup %4983 }
 0x4aa   : > { %v4986_v12 = vpop.eup %4985  ;;  %v4904_v13 = vpop.permute.xlu2 %4903  ;;  %v1760_v18 = vmul.f32 %v4984_v11, %v6018_v32 }
 0x4ab   : > { %v1737_v14 = vpop.xlane.xlu1 %1736  ;;  %v1758_v15 = vmul.f32 %v4986_v12, %v6016_v31  ;;  %v4906_v16 = vunpack.i.h.bf16 %v4904_v13  ;;  %v4905_v17 = vunpack.i.l.bf16 %v4904_v13 }
 0x4ac   : > { %4987 = vrcp.f32 %v1737_v14  ;;  %v1768_v25 = vpack.c.bf16 %v1760_v18, %v1760_v18 }
 0x4ad   : > { %v1766_v19 = vpack.c.bf16 %v1758_v15, %v1758_v15  ;;  %v1507_v20 = vpack.c.bf16 %v4906_v16, %v4906_v16  ;;  %v1508_v21 = vpack.c.bf16 %v4905_v17, %v4905_v17  ;;  %v4957_v17 = vld [vmem:[%s1056_s2] ss:$0 sm:$0xff] }
 0x4af   : > { %4150 = vmatmul.msk.bf16.vlgmr.msrb.gmra.mxu0 %vm1674_vm5, %v1766_v19  ;;  %v1852_v22 = vsel %vm1774_vm6, %v1507_v20, 0  ;;  %v1871_v23 = vsel %vm1774_vm6, %v1508_v21, 0 }
 0x4b0   : > { %1861 = vmatpush.bf16.msra.mxu1 %v1852_v22  ;;  %1880 = vmatpush.bf16.msra.mxu2 %v1871_v23 }
 0x4b2   : > { %v4988_v24 = vpop.eup %4987 }
 0x4b3   : > { %v1759_v26 = vmul.f32 %v4988_v24, %v6024_v39  ;;  %v1743_v27 = vpop.xlane.xlu1 %1742  ;;  %4152 = vmatmul.msk.bf16.vlgmr.msra.gmra.mxu2 %vm1674_vm5, %v1768_v25  ;;  %v5415_v24 = vmov 128.0  }
 0x4b4   : > { %4989 = vrcp.f32 %v1743_v27  ;;  %2008 = vmatpush.bf16.msrb.mxu1 %v4669_v42  ;;  %v4277_v27 = vld [vmem:[%s5781_s4 + $0x70] sm:$0xf]  ;;  %v4685_v42 = vld [vmem:[%s5781_s4 + $0x34] sm:$0xf0] }
 0x4b5   : > { %v1767_v28 = vpack.c.bf16 %v1759_v26, %v1759_v26 }
 0x4b7   : > { %4151 = vmatmul.msk.bf16.vlgmr.msra.gmra.mxu1 %vm1674_vm5, %v1767_v28  ;;  %v4693_v28 = vld [vmem:[%s5781_s4 + $0x74] sm:$0xf0] }
 0x4ba   : > { %v4990_v29 = vpop.eup %4989 }
 0x4bb   : > { %v1761_v30 = vmul.f32 %v4990_v29, %v6028_v45  ;;  %v1746_v31 = vpop.xlane.xlu1 %1745  ;;  %v1787_v32 = vpop.f32.mrf.mxu1  ;;  %v4668_v45 = vld [vmem:[%s5773_s14 + $0x30] sm:$0xff]  ;;  %v4269_v29 = vld [vmem:[%s5781_s4 + $0x60] sm:$0xf] }
 0x4bc   : > { %4991 = vrcp.f32 %v1746_v31  ;;  %2009 = vmatpush.bf16.msrb.mxu1 %v4668_v45  ;;  %v4237_v45 = vld [vmem:[%s5781_s4 + $0x20] sm:$0xf] }
 0x4bd   : > { %v1769_v33 = vpack.c.bf16 %v1761_v30, %v1761_v30  ;;  %4993 = vrcp.f32 %v5415_v24  ;;  %v4278_v30 = vor.u32 %v4693_v28, %v4277_v27  ;;  %v1197_v27 = vld [vmem:[%s5836_s21] sm:$0x7] }
 0x4bf   : > { %4153 = vmatmul.msk.bf16.vlgmr.msrb.gmra.mxu3 %vm1674_vm5, %v1769_v33  ;;  %v4261_v33 = vld [vmem:[%s5781_s4 + $0x50] sm:$0xf] }
 0x4c0   : > { %2010 = vmatpush.bf16.msrb.mxu1 %v4667_v47  ;;  %2263 = vmatpush.bf16.msra.mxu3 %v4278_v30  ;;  %v2071_v30 = vperm.slane %v1197_v27, 0 }
 0x4c2   : > { %v4992_v35 = vpop.eup %4991 }
 0x4c3   : > { %v1762_v36 = vmul.f32 %v4992_v35, %v6035_v55  ;;  %v1789_v37 = vpop.f32.mrf.mxu1  ;;  %v4994_v25 = vpop.eup %4993 }
 0x4c4   : > { %2011 = vmatpush.bf16.msrb.mxu1 %v4666_v50  ;;  %v2029_v26 = vmul.f32 128.0, %v4994_v25  ;;  %v4253_v37 = vld [vmem:[%s5781_s4 + $0x40] sm:$0xf]  ;;  %vm2033_vm9 = vweird.f32 %v4994_v25 }
 0x4c5   : > { %v1770_v38 = vpack.c.bf16 %v1762_v36, %v1762_v36 }
 0x4c6   : > { %v2030_v31 = vsub.f32 1.0, %v2029_v26 }
 0x4c7   : > { %4154 = vmatmul.msk.bf16.vlgmr.msra.gmra.mxu0 %vm1674_vm5, %v1770_v38  ;;  %v4687_v38 = vld [vmem:[%s5781_s4 + $0x44] sm:$0xf0] }
 0x4c8   : > { %2012 = vmatpush.bf16.msrb.mxu1 %v4665_v60  ;;  %v2031_v35 = vmul.f32 %v4994_v25, %v2030_v31  ;;  %v4679_v60 = vld [vmem:[%s5781_s4 + $0x4] sm:$0xf0]  ;;  %v1198_v31 = vld [vmem:[%s5842_s1] sm:$0x7] }
 0x4cc   : > { %2013 = vmatpush.bf16.msrb.mxu1 %v4664_v61  ;;  %v4677_v61 = vld [vmem:[%s5775_s28 + $0x38] sm:$0xff] }
 0x4cd   : > { %2146 = vmatpush.bf16.msrb.mxu2 %v4677_v61 }
 0x4d0   : > { %2014 = vmatpush.bf16.msrb.mxu1 %v4663_v62 }
 0x4d4   : > { %2015 = vmatpush.bf16.msrb.mxu1 %v4662_v63  ;;  %v1190_v63 = vld [vmem:[#allocation3 + $0x8] sm:$0xff] }
 0x4f7   : > { %v1806_v39 = vpop.f32.mrf.mxu2 }
 0x4ff   : > { %v1808_v40 = vpop.f32.mrf.mxu2 }
 0x500   : > { %v4254_v40 = vor.u32 %v4687_v38, %v4253_v37 }
 0x529   : > { %v1825_v41 = vpop.f32.mrf.mxu3 }
 0x52c   : > { %v1844_v43 = vpop.f32.mrf.mxu0 }
 0x52d   : > { %v4907_v44 = vpack.i.bf16 %v1844_v43, %v1825_v41  ;;  %v4245_v41 = vld [vmem:[%s5781_s4 + $0x30] sm:$0xf] }
 0x52f   : > { %4908 = vrot.lane.b32.xlu1 %v4907_v44, %s5414_s22  ;;  %v4246_v44 = vor.u32 %v4685_v42, %v4245_v41 }
 0x531   : > { %v1827_v46 = vpop.f32.mrf.mxu3 }
 0x532   : > { %v4683_v46 = vld [vmem:[%s5781_s4 + $0x24] sm:$0xf0] }
 0x534   : > { %v1863_v48 = vpop.f32.mrf.mxu1  ;;  %v1846_v49 = vpop.f32.mrf.mxu0 }
 0x535   : > { %v4238_v49 = vor.u32 %v4683_v46, %v4237_v45 }
 0x536   : > { %v1882_v51 = vpop.f32.mrf.mxu2 }
 0x537   : > { %v4912_v52 = vpack.i.bf16 %v1882_v51, %v1863_v48 }
 0x539   : > { %4913 = vrot.lane.b32.xlu0 %v4912_v52, %s5412_s6 }
 0x53c   : > { %v1865_v53 = vpop.f32.mrf.mxu1 }
 0x53e   : > { %v1884_v54 = vpop.f32.mrf.mxu2 }
 0x542   : > { %v1901_v55 = vpop.f32.mrf.mxu3 }
 0x544   : > { %v1920_v56 = vpop.f32.mrf.mxu0 }
 0x545   : > { %v4917_v57 = vpack.i.bf16 %v1920_v56, %v1901_v55  ;;  %v4229_v56 = vld [vmem:[%s5781_s4 + $0x10] sm:$0xf] }
 0x547   : > { %4918 = vrot.lane.b32.xlu2 %v4917_v57, %s5413_s17  ;;  %v4681_v57 = vld [vmem:[%s5781_s4 + $0x14] sm:$0xf0] }
 0x54a   : > { %v1903_v58 = vpop.f32.mrf.mxu3 }
 0x54b   : > { %v4230_v58 = vor.u32 %v4681_v57, %v4229_v56  ;;  %v4692_v56 = vld [vmem:[%s5781_s4 + $0x74] sm:$0xf]  ;;  %v4279_v57 = vld [vmem:[%s5781_s4 + $0x78] sm:$0xf0] }
 0x54c   : > { %v1922_v59 = vpop.f32.mrf.mxu0 }
 0x54d   : > { %v4221_v59 = vld [vmem:[%s5781_s4] sm:$0xf] }
 0x54e   : > { %v4222_v62 = vor.u32 %v4679_v60, %v4221_v59 }
 0x5a1   : > { %v4909_v0 = vpop.permute.xlu1 %4908  ;;  %v4919_v1 = vpop.permute.xlu2 %4918 }
 0x5a2   : > { %v4911_v34 = vunpack.i.h.bf16 %v4909_v0  ;;  %v4910_v9 = vunpack.i.l.bf16 %v4909_v0  ;;  %v4921_v10 = vunpack.i.h.bf16 %v4919_v1  ;;  %v4920_v11 = vunpack.i.l.bf16 %v4919_v1  ;;  %v1191_v0 = vld [vmem:[#allocation3] sm:$0xff]  ;;  %v4675_v1 = vld [vmem:[%s5775_s28 + $0x28] sm:$0xff] }
 0x5a4   : > { %v1949_v7 = vsel %vm1511_vm3, %v1806_v39, %v4911_v34  ;;  %v1948_v8 = vsel %vm1511_vm3, %v1787_v32, %v4910_v9  ;;  %v2032_v39 = vadd.f32 %v4994_v25, %v2031_v35  ;;  %v6109_v34 = vpack.c.bf16 %v1191_v0, %v1190_v63  ;;  %v4676_v9 = vld [vmem:[%s5775_s28 + $0x30] sm:$0xff]  ;;  %v4690_v63 = vld [vmem:[%s5781_s4 + $0x64] sm:$0xf]  ;;  %v4271_v0 = vld [vmem:[%s5781_s4 + $0x68] sm:$0xf0] }
 0x5a5   : > { %2147 = vmatpush.bf16.msrb.mxu2 %v4676_v9  ;;  %v2074_v35 = vperm.slane %v1198_v31, 0  ;;  %v4274_v9 = vor.u32 %v4690_v63, %v4271_v0 }
 0x5a6   : > { %v6094_v43 = vsel %vm2033_vm9, %v4994_v25, %v2032_v39 }
 0x5a9   : > { %2148 = vmatpush.bf16.msrb.mxu2 %v4675_v1  ;;  %v4688_v1 = vld [vmem:[%s5781_s4 + $0x54] sm:$0xf] }
 0x5ab   : > { %v4914_v2 = vpop.permute.xlu0 %4913 }
 0x5ac   : > { %v4916_v3 = vunpack.i.h.bf16 %v4914_v2  ;;  %v4915_v4 = vunpack.i.l.bf16 %v4914_v2  ;;  %v4674_v2 = vld [vmem:[%s5775_s28 + $0x20] sm:$0xff] }
 0x5ad   : > { %2149 = vmatpush.bf16.msrb.mxu2 %v4674_v2  ;;  %v4263_v2 = vld [vmem:[%s5781_s4 + $0x58] sm:$0xf0] }
 0x5ae   : > { %v1951_v12 = vsel %vm1950_vm7, %v1948_v8, %v4915_v4  ;;  %v1952_v13 = vsel %vm1950_vm7, %v1949_v7, %v4916_v3  ;;  %v4673_v3 = vld [vmem:[%s5775_s28 + $0x18] sm:$0xff]  ;;  %v4672_v4 = vld [vmem:[%s5775_s28 + $0x10] sm:$0xff]  ;;  %v4671_v7 = vld [vmem:[%s5775_s28 + $0x8] sm:$0xff] }
 0x5af   : > { %v1954_v14 = vsel %vm1953_vm8, %v1951_v12, %v4920_v11  ;;  %v1955_v15 = vsel %vm1953_vm8, %v1952_v13, %v4921_v10  ;;  %v4670_v11 = vld [vmem:[%s5775_s28] sm:$0xff] }
 0x5b0   : > { %v1956_v16 = vpack.c.bf16 %v1955_v15, %v1954_v14 }
 0x5b1   : > { %2150 = vmatpush.bf16.msrb.mxu2 %v4673_v3  ;;  %v4266_v3 = vor.u32 %v4688_v1, %v4263_v2 }
 0x5b2   : > { %2016 = vmatmul.bf16.vlgmr.msrb.gmra.mxu1 %v1956_v16 }
 0x5b5   : > { %2151 = vmatpush.bf16.msrb.mxu2 %v4672_v4  ;;  %v4686_v4 = vld [vmem:[%s5781_s4 + $0x44] sm:$0xf] }
 0x5b9   : > { %2152 = vmatpush.bf16.msrb.mxu2 %v4671_v7  ;;  %v4255_v7 = vld [vmem:[%s5781_s4 + $0x48] sm:$0xf0] }
 0x5bd   : > { %2153 = vmatpush.bf16.msrb.mxu2 %v4670_v11 }
 0x62f   : > { %v2017_v18 = vpop.f32.mrf.mxu1 }
 0x630   : > { %v2018_v19 = vadd.f32 %v4957_v17, %v2017_v18 }
 0x632   : > { %v2022_v20 = vadd.f32 %v2018_v19, %v5898_v5  ;;  %v4691_v5 = vld [vmem:[%s5781_s4 + $0x64] sm:$0xf0] }
 0x633   : > { %v4270_v32 = vor.u32 %v4691_v5, %v4269_v29 }
 0x634   : > { %2024 = vadd.xlane.f32.xlu0 %v2022_v20 }
 0x635   : > { %2264 = vmatpush.bf16.msra.mxu3 %v4270_v32 }
 0x637   : > { %v2019_v21 = vpop.f32.mrf.mxu1 }
 0x638   : > { %v2020_v22 = vadd.f32 %v4957_v17, %v2019_v21 }
 0x63a   : > { %v2023_v23 = vadd.f32 %v2020_v22, %v5900_v6  ;;  %v4689_v6 = vld [vmem:[%s5781_s4 + $0x54] sm:$0xf0] }
 0x63b   : > { %v4262_v36 = vor.u32 %v4689_v6, %v4261_v33 }
 0x63c   : > { %2026 = vadd.xlane.f32.xlu2 %v2023_v23 }
 0x63d   : > { %2265 = vmatpush.bf16.msra.mxu3 %v4262_v36 }
 0x641   : > { %2266 = vmatpush.bf16.msra.mxu3 %v4254_v40  ;;  %v6131_v40 = vld [vmem:[%s5823_s9] sm:$0x3] }
 0x642   : > { %v2179_v41 = vperm.slane %v6131_v40, 0  ;;  %v2180_v63 = vperm.slane %v6131_v40, 1 }
 0x645   : > { %2267 = vmatpush.bf16.msra.mxu3 %v4246_v44 }
 0x649   : > { %2268 = vmatpush.bf16.msra.mxu3 %v4238_v49 }
 0x64d   : > { %2269 = vmatpush.bf16.msra.mxu3 %v4230_v58  ;;  %v4282_v58 = vor.u32 %v4692_v56, %v4279_v57 }
 0x64f   : > { %2277 = vmatpush.bf16.msrb.mxu0 %v4282_v58 }
 0x651   : > { %2270 = vmatpush.bf16.msra.mxu3 %v4222_v62 }
 0x653   : > { %2278 = vmatpush.bf16.msrb.mxu0 %v4274_v9 }
 0x654   : > { %2271 = vmatmul.bf16.vlgmr.msra.gmra.mxu3 %v6109_v34 }
 0x657   : > { %2279 = vmatpush.bf16.msrb.mxu0 %v4266_v3 }
 0x6a7   : > { %v2025_v47 = vpop.xlane.xlu0 %2024 }
 0x6a8   : > { %v2035_v48 = vmul.f32 %v6094_v43, %v2025_v47 }
 0x6aa   : > { %v2037_v50 = vsub.f32 %v2022_v20, %v2035_v48 }
 0x6ac   : > { %v2039_v51 = vmul.f32 %v2037_v50, %v2037_v50 }
 0x6ae   : > { %2041 = vadd.xlane.f32.xlu1 %v2039_v51  ;;  %v4958_v51 = vld [vmem:[%s1059_s12] ss:$0 sm:$0xff]  ;;  %s6549_s12 = sld [smem:[#allocation43_spill]] }
 0x6af   : > { %v2027_v52 = vpop.xlane.xlu2 %2026 }
 0x6b0   : > { %v2036_v53 = vmul.f32 %v6094_v43, %v2027_v52 }
 0x6b2   : > { %v6100_v54 = vsub.f32 %v2023_v23, %v2036_v53 }
 0x6b4   : > { %v2040_v55 = vmul.f32 %v6100_v54, %v6100_v54  ;;  %s6550_s13 = scalar_lea.vmem %s6549_s12, %s5803_s23 }
 0x6b6   : > { %2043 = vadd.xlane.f32.xlu0 %v2040_v55 }
 0x6d7   : > { %v2272_v42 = vpop.f32.mrf.mxu3 }
 0x6d8   : > { %v2273_v44 = vadd.f32 %v2272_v42, %v2179_v41 }
 0x6da   : > { %2338 = vrot.lane.b32.xlu2 %v2273_v44, %s5413_s17  ;;  %v2356_v45 = vpack.c.bf16 %v2273_v44, %v2273_v44 }
 0x6dc   : > { %v2396_v46 = vsel %vm1511_vm3, %v2356_v45, 0 }
 0x6dd   : > { %2405 = vmatpush.bf16.xpose.msra.mxu1 %v2396_v46 }
 0x6df   : > { %v2274_v47 = vpop.f32.mrf.mxu3 }
 0x6e0   : > { %v2275_v48 = vadd.f32 %v2274_v47, %v2179_v41 }
 0x6e2   : > { %2346 = vrot.lane.b32.xlu1 %v2275_v48, %s5412_s6  ;;  %2350 = vrot.lane.b32.xlu2 %v2273_v44, %s5414_s22  ;;  %v2357_v49 = vpack.c.bf16 %v2275_v48, %v2275_v48 }
 0x6ea   : > { %2352 = vrot.lane.b32.xlu1 %v2275_v48, %s5414_s22 }
 0x721   : > { %v2042_v8 = vpop.xlane.xlu1 %2041 }
 0x722   : > { %v2045_v10 = vmul.f32 %v2042_v8, %v6094_v43  ;;  %v4258_v8 = vor.u32 %v4686_v4, %v4255_v7 }
 0x724   : > { %v2047_v12 = vadd.f32 1e-05, %v2045_v10  ;;  %2280 = vmatpush.bf16.msrb.mxu0 %v4258_v8 }
 0x726   : > { %4995 = vrsqrt.f32 %v2047_v12  ;;  %vm2055_vm11 = vweird.f32 %v2047_v12 }
 0x729   : > { %v2044_v13 = vpop.xlane.xlu0 %2043 }
 0x72a   : > { %v2046_v14 = vmul.f32 %v2044_v13, %v6094_v43  ;;  %v4684_v13 = vld [vmem:[%s5781_s4 + $0x34] sm:$0xf] }
 0x72c   : > { %v4996_v15 = vpop.eup %4995  ;;  %v2048_v16 = vadd.f32 1e-05, %v2046_v14  ;;  %v4247_v14 = vld [vmem:[%s5781_s4 + $0x38] sm:$0xf0] }
 0x72d   : > { %v2050_v17 = vmul.f32 %v4996_v15, %v2047_v12  ;;  %vm2056_vm10 = vweird.f32 %v4996_v15 }
 0x72e   : > { %4997 = vrsqrt.f32 %v2048_v16  ;;  %vm2057_vm12 = vmor %vm2055_vm11, %vm2056_vm10  ;;  %vm2065_vm14 = vweird.f32 %v2048_v16 }
 0x72f   : > { %v2051_v18 = vmul.f32 %v4996_v15, %v2050_v17 }
 0x731   : > { %v2052_v19 = vmul.f32 0.5, %v2051_v18 }
 0x733   : > { %v2053_v20 = vsub.f32 1.5, %v2052_v19 }
 0x734   : > { %v4998_v21 = vpop.eup %4997  ;;  %v2339_v10 = vpop.permute.xlu2 %2338 }
 0x735   : > { %v2054_v22 = vmul.f32 %v4996_v15, %v2053_v20  ;;  %v2060_v23 = vmul.f32 %v4998_v21, %v2048_v16  ;;  %vm2066_vm13 = vweird.f32 %v4998_v21  ;;  %v2358_v11 = vpack.c.bf16 %v2339_v10, %v2339_v10 }
 0x736   : > { %vm2067_vm15 = vmor %vm2065_vm14, %vm2066_vm13 }
 0x737   : > { %v2061_v24 = vmul.f32 %v4998_v21, %v2060_v23  ;;  %v2058_v25 = vsel %vm2057_vm12, %v4996_v15, %v2054_v22  ;;  %v2434_v12 = vsel %vm1511_vm3, %v2358_v11, 0  ;;  %v4250_v15 = vor.u32 %v4684_v13, %v4247_v14  ;;  %v4682_v22 = vld [vmem:[%s5781_s4 + $0x24] sm:$0xf]  ;;  %v4239_v23 = vld [vmem:[%s5781_s4 + $0x28] sm:$0xf0] }
 0x738   : > { %v2069_v29 = vmul.f32 %v2058_v25, %v2037_v50  ;;  %v2415_v50 = vsel %vm1511_vm3, %v2357_v49, 0  ;;  %2443 = vmatpush.bf16.xpose.msrb.mxu3 %v2434_v12  ;;  %v4680_v25 = vld [vmem:[%s5781_s4 + $0x14] sm:$0xf] }
 0x739   : > { %v2062_v26 = vmul.f32 0.5, %v2061_v24  ;;  %2424 = vmatpush.bf16.xpose.msra.mxu2 %v2415_v50  ;;  %2281 = vmatpush.bf16.msrb.mxu0 %v4250_v15  ;;  %v4242_v24 = vor.u32 %v4682_v22, %v4239_v23 }
 0x73a   : > { %v2072_v6 = vmul.f32 %v2071_v30, %v2069_v29  ;;  %v4223_v29 = vld [vmem:[%s5781_s4 + $0x8] sm:$0xf0] }
 0x73b   : > { %v2063_v28 = vsub.f32 1.5, %v2062_v26  ;;  %v4231_v26 = vld [vmem:[%s5781_s4 + $0x18] sm:$0xf0] }
 0x73c   : > { %v6124_v37 = vadd.f32 %v2074_v35, %v2072_v6  ;;  %v2351_v16 = vpop.permute.xlu2 %2350  ;;  %v4234_v27 = vor.u32 %v4680_v25, %v4231_v26 }
 0x73d   : > { %v2064_v5 = vmul.f32 %v4998_v21, %v2063_v28  ;;  %v2362_v17 = vpack.c.bf16 %v2351_v16, %v2351_v16  ;;  %2282 = vmatpush.bf16.msrb.mxu0 %v4242_v24  ;;  %v4678_v28 = vld [vmem:[%s5781_s4 + $0x4] sm:$0xf] }
 0x73f   : > { %v2068_v32 = vsel %vm2067_vm15, %v4998_v21, %v2064_v5  ;;  %v2510_v18 = vsel %vm1511_vm3, %v2362_v17, 0 }
 0x740   : > { %v2070_v33 = vmul.f32 %v2068_v32, %v6100_v54  ;;  %2519 = vmatpush.bf16.xpose.msra.mxu3 %v2510_v18 }
 0x741   : > { %2283 = vmatpush.bf16.msrb.mxu0 %v4234_v27 }
 0x742   : > { %v2073_v36 = vmul.f32 %v2071_v30, %v2070_v33  ;;  %v4226_v30 = vor.u32 %v4678_v28, %v4223_v29 }
 0x744   : > { %v6126_v38 = vadd.f32 %v2074_v35, %v2073_v36 }
 0x745   : > { %2284 = vmatpush.bf16.msrb.mxu0 %v4226_v30 }
 0x746   : > { %v2077_v39 = vpack.c.bf16 %v6126_v38, %v6124_v37 }
 0x748   : > { %2154 = vmatmul.bf16.vlgmr.msrb.gmra.mxu2 %v2077_v39  ;;  %2285 = vmatmul.bf16.vlgmr.msrb.gmra.mxu0 %v6109_v34 }
 0x754   : > { %v2347_v19 = vpop.permute.xlu1 %2346 }
 0x755   : > { %v2361_v20 = vpack.c.bf16 %v2347_v19, %v2347_v19 }
 0x757   : > { %v2491_v21 = vsel %vm1511_vm3, %v2361_v20, 0 }
 0x758   : > { %2500 = vmatpush.bf16.xpose.msrb.mxu2 %v2491_v21 }
 0x75c   : > { %v2353_v41 = vpop.permute.xlu1 %2352 }
 0x75d   : > { %v2363_v46 = vpack.c.bf16 %v2353_v41, %v2353_v41 }
 0x75f   : > { %v2529_v49 = vsel %vm1511_vm3, %v2363_v46, 0 }
 0x7cb   : > { %v2155_v52 = vpop.f32.mrf.mxu2 }
 0x7cc   : > { %v2156_v53 = vadd.f32 %v4958_v51, %v2155_v52 }
 0x7ce   : > { %v2328_v54 = vpack.c.bf16 %v2156_v53, %v2156_v53  ;;  %v4922_v55 = vpack.i.bf16 %v2275_v48, %v2156_v53 }
 0x7d0   : > { %4923 = vrot.lane.b32.xlu0 %v4922_v55, %s5413_s17  ;;  %4283 = vmatmul.msk.bf16.vlgmr.msra.gmra.mxu1 %vm1511_vm3, %v2328_v54 }
 0x7d3   : > { %v2157_v59 = vpop.f32.mrf.mxu2 }
 0x7d4   : > { %v2158_v60 = vadd.f32 %v4958_v51, %v2157_v59 }
 0x7d6   : > { %v2329_v61 = vpack.c.bf16 %v2158_v60, %v2158_v60  ;;  %v4927_v62 = vpack.i.bf16 %v2273_v44, %v2158_v60 }
 0x7d8   : > { %2312 = vrot.lane.b32.xlu0 %v2158_v60, %s5413_s17  ;;  %4284 = vmatmul.msk.bf16.vlgmr.msra.gmra.mxu2 %vm1511_vm3, %v2329_v61 }
 0x7d9   : > { %4928 = vrot.lane.b32.xlu2 %v4927_v62, %s5412_s6  ;;  %v2286_v62 = vpop.f32.mrf.mxu0 }
 0x7da   : > { %v6185_v0 = vadd.f32 %v2286_v62, %v2180_v63 }
 0x7dc   : > { %v2384_v2 = vpack.c.bf16 %v6185_v0, %v6185_v0 }
 0x7de   : > { %v2644_v4 = vsel %vm1774_vm6, %v2384_v2, 0 }
 0x7e0   : > { %2322 = vrot.lane.b32.xlu0 %v2156_v53, %s5414_s22 }
 0x7e1   : > { %2316 = vrot.lane.b32.xlu2 %v2156_v53, %s5412_s6  ;;  %v2288_v9 = vpop.f32.mrf.mxu0 }
 0x7e2   : > { %v6187_v1 = vadd.f32 %v2288_v9, %v2180_v63 }
 0x7e4   : > { %v2385_v3 = vpack.c.bf16 %v6187_v1, %v6187_v1 }
 0x7e6   : > { %v2663_v7 = vsel %vm1774_vm6, %v2385_v3, 0 }
 0x7e7   : > { %2672 = vmatpush.bf16.msra.mxu2 %v2663_v7 }
 0x7e8   : > { %2324 = vrot.lane.b32.xlu0 %v2158_v60, %s5414_s22 }
 0x833   : > { %v4929_v5 = vpop.permute.xlu2 %4928 }
 0x834   : > { %v4931_v31 = vunpack.i.h.bf16 %v4929_v5  ;;  %v4930_v32 = vunpack.i.l.bf16 %v4929_v5  ;;  %v4932_v5 = vpack.i.bf16 %v6187_v1, %v6185_v0 }
 0x836   : > { %v2360_v33 = vpack.c.bf16 %v4931_v31, %v4931_v31  ;;  %v2333_v6 = vpack.c.bf16 %v4930_v32, %v4930_v32 }
 0x838   : > { %4288 = vmatmul.msk.bf16.vlgmr.msrb.gmra.mxu2 %vm1511_vm3, %v2333_v6  ;;  %v2472_v35 = vsel %vm1511_vm3, %v2360_v33, 0 }
 0x839   : > { %2481 = vmatpush.bf16.xpose.msrb.mxu1 %v2472_v35 }
 0x83b   : > { %v2317_v36 = vpop.permute.xlu2 %2316 }
 0x83c   : > { %v2332_v39 = vpack.c.bf16 %v2317_v36, %v2317_v36 }
 0x840   : > { %4287 = vmatmul.msk.bf16.vlgmr.msrb.gmra.mxu1 %vm1511_vm3, %v2332_v39 }
 0x841   : > { %2653 = vmatpush.bf16.msra.mxu1 %v2644_v4 }
 0x842   : > { %v4924_v42 = vpop.permute.xlu0 %4923 }
 0x843   : > { %v4926_v44 = vunpack.i.h.bf16 %v4924_v42  ;;  %v4925_v45 = vunpack.i.l.bf16 %v4924_v42 }
 0x845   : > { %v2359_v34 = vpack.c.bf16 %v4926_v44, %v4926_v44  ;;  %v2330_v47 = vpack.c.bf16 %v4925_v45, %v4925_v45 }
 0x847   : > { %4285 = vmatmul.msk.bf16.vlgmr.msrb.gmra.mxu3 %vm1511_vm3, %v2330_v47  ;;  %v2453_v48 = vsel %vm1511_vm3, %v2359_v34, 0 }
 0x848   : > { %2462 = vmatpush.bf16.xpose.msra.mxu0 %v2453_v48 }
 0x84a   : > { %v2313_v50 = vpop.permute.xlu0 %2312 }
 0x84b   : > { %v2331_v51 = vpack.c.bf16 %v2313_v50, %v2313_v50 }
 0x84d   : > { %v2407_v52 = vpop.f32.mrf.mxu1 }
 0x84e   : > { %v2544_v53 = vsel %vm1674_vm5, %v2407_v52, -inf }
 0x84f   : > { %4286 = vmatmul.msk.bf16.vlgmr.msra.gmra.mxu0 %vm1511_vm3, %v2331_v51  ;;  %2545 = vmax.xlane.f32.xlu0 %v2544_v53 }
 0x850   : > { %2538 = vmatpush.bf16.xpose.msrb.mxu0 %v2529_v49 }
 0x852   : > { %v2323_v54 = vpop.permute.xlu0 %2322 }
 0x853   : > { %v2334_v55 = vpack.c.bf16 %v2323_v54, %v2323_v54 }
 0x855   : > { %v2409_v56 = vpop.f32.mrf.mxu1 }
 0x857   : > { %4289 = vmatmul.msk.bf16.vlgmr.msra.gmra.mxu3 %vm1511_vm3, %v2334_v55 }
 0x85a   : > { %v2325_v57 = vpop.permute.xlu0 %2324 }
 0x85b   : > { %v2426_v58 = vpop.f32.mrf.mxu2  ;;  %v2335_v60 = vpack.c.bf16 %v2325_v57, %v2325_v57 }
 0x85c   : > { %v2547_v59 = vsel %vm1674_vm5, %v2426_v58, -inf }
 0x85d   : > { %2548 = vmax.xlane.f32.xlu1 %v2547_v59 }
 0x85f   : > { %4290 = vmatmul.msk.bf16.vlgmr.msrb.gmra.mxu0 %vm1511_vm3, %v2335_v60 }
 0x863   : > { %v2428_v61 = vpop.f32.mrf.mxu2 }
 0x8bb   : > { %v2502_v8 = vpop.f32.mrf.mxu2 }
 0x8bc   : > { %v2559_v18 = vsel %vm1674_vm5, %v2502_v8, -inf }
 0x8bd   : > { %v2483_v10 = vpop.f32.mrf.mxu1 }
 0x8be   : > { %v2556_v21 = vsel %vm1674_vm5, %v2483_v10, -inf }
 0x8c2   : > { %v2546_v16 = vpop.xlane.xlu0 %2545 }
 0x8c3   : > { %v2504_v40 = vpop.f32.mrf.mxu2  ;;  %v2568_v19 = vsub.f32 %v2407_v52, %v2546_v16 }
 0x8c5   : > { %v2485_v11 = vpop.f32.mrf.mxu1  ;;  %v2576_v22 = vmul.f32 1.442695, %v2568_v19 }
 0x8c7   : > { %4999 = vpow2.f32 %v2576_v22 }
 0x8ca   : > { %v2445_v12 = vpop.f32.mrf.mxu3 }
 0x8cb   : > { %v2550_v13 = vsel %vm1674_vm5, %v2445_v12, -inf }
 0x8cc   : > { %v2464_v14 = vpop.f32.mrf.mxu0  ;;  %2551 = vmax.xlane.f32.xlu2 %v2550_v13 }
 0x8cd   : > { %v2553_v15 = vsel %vm1674_vm5, %v2464_v14, -inf  ;;  %v5000_v27 = vpop.eup %4999 }
 0x8ce   : > { %2554 = vmax.xlane.f32.xlu1 %v2553_v15  ;;  %v2592_v30 = vsel %vm1674_vm5, %v5000_v27, 0.0 }
 0x8d0   : > { %v2549_v31 = vpop.xlane.xlu1 %2548 }
 0x8d1   : > { %v2569_v32 = vsub.f32 %v2426_v58, %v2549_v31 }
 0x8d2   : > { %v2447_v17 = vpop.f32.mrf.mxu3 }
 0x8d3   : > { %v2578_v33 = vmul.f32 1.442695, %v2569_v32 }
 0x8d4   : > { %v2466_v20 = vpop.f32.mrf.mxu0  ;;  %2560 = vmax.xlane.f32.xlu2 %v2559_v18  ;;  %v4937_v18 = vpack.i.bf16 %v6185_v0, %v6187_v1 }
 0x8d5   : > { %5001 = vpow2.f32 %v2578_v33 }
 0x8d6   : > { %2557 = vmax.xlane.f32.xlu1 %v2556_v21 }
 0x8da   : > { %v2521_v23 = vpop.f32.mrf.mxu3 }
 0x8db   : > { %v2562_v24 = vsel %vm1674_vm5, %v2521_v23, -inf  ;;  %v6205_v6 = vpop.eup %5001 }
 0x8dc   : > { %v2540_v25 = vpop.f32.mrf.mxu0  ;;  %2563 = vmax.xlane.f32.xlu0 %v2562_v24  ;;  %v2595_v35 = vsel %vm1674_vm5, %v6205_v6, 0.0 }
 0x8dd   : > { %v2565_v26 = vsel %vm1674_vm5, %v2540_v25, -inf }
 0x8de   : > { %2566 = vmax.xlane.f32.xlu2 %v2565_v26 }
 0x8e2   : > { %v2523_v28 = vpop.f32.mrf.mxu3 }
 0x8e4   : > { %v2542_v29 = vpop.f32.mrf.mxu0 }
 0x8e6   : > { %2593 = vadd.xlane.f32.xlu2 %v2592_v30 }
 0x8f0   : > { %4933 = vrot.lane.b32.xlu0 %v4932_v5, %s5413_s17 }
 0x91a   : > { %2596 = vadd.xlane.f32.xlu0 %v2595_v35 }
 0x92e   : > { %2378 = vrot.lane.b32.xlu0 %v6185_v0, %s5414_s22 }
 0x936   : > { %2380 = vrot.lane.b32.xlu0 %v6187_v1, %s5414_s22 }
 0x93f   : > { %v2552_v36 = vpop.xlane.xlu2 %2551 }
 0x940   : > { %v2570_v39 = vsub.f32 %v2445_v12, %v2552_v36 }
 0x941   : > { %v2555_v41 = vpop.xlane.xlu1 %2554 }
 0x942   : > { %v2580_v42 = vmul.f32 1.442695, %v2570_v39  ;;  %v2571_v44 = vsub.f32 %v2464_v14, %v2555_v41 }
 0x944   : > { %5003 = vpow2.f32 %v2580_v42  ;;  %v2582_v45 = vmul.f32 1.442695, %v2571_v44 }
 0x946   : > { %5005 = vpow2.f32 %v2582_v45 }
 0x947   : > { %v2561_v46 = vpop.xlane.xlu2 %2560 }
 0x948   : > { %v2573_v34 = vsub.f32 %v2502_v8, %v2561_v46 }
 0x949   : > { %v2558_v47 = vpop.xlane.xlu1 %2557 }
 0x94a   : > { %v6213_v48 = vpop.eup %5003  ;;  %v2586_v49 = vmul.f32 1.442695, %v2573_v34  ;;  %v2572_v50 = vsub.f32 %v2483_v10, %v2558_v47 }
 0x94b   : > { %v2598_v51 = vsel %vm1674_vm5, %v6213_v48, 0.0 }
 0x94c   : > { %5007 = vpow2.f32 %v2586_v49  ;;  %2599 = vadd.xlane.f32.xlu1 %v2598_v51  ;;  %v2584_v52 = vmul.f32 1.442695, %v2572_v50  ;;  %v6217_v54 = vpop.eup %5005 }
 0x94d   : > { %v2601_v59 = vsel %vm1674_vm5, %v6217_v54, 0.0 }
 0x94e   : > { %5009 = vpow2.f32 %v2584_v52 }
 0x94f   : > { %v2564_v53 = vpop.xlane.xlu0 %2563 }
 0x950   : > { %v2574_v55 = vsub.f32 %v2521_v23, %v2564_v53 }
 0x951   : > { %v2567_v56 = vpop.xlane.xlu2 %2566 }
 0x952   : > { %v6219_v57 = vpop.eup %5007  ;;  %v2588_v60 = vmul.f32 1.442695, %v2574_v55  ;;  %v2575_v63 = vsub.f32 %v2540_v25, %v2567_v56 }
 0x953   : > { %v2607_v58 = vsel %vm1674_vm5, %v6219_v57, 0.0 }
 0x954   : > { %2608 = vadd.xlane.f32.xlu2 %v2607_v58  ;;  %2602 = vadd.xlane.f32.xlu1 %v2601_v59  ;;  %v6225_v61 = vpop.eup %5009  ;;  %5011 = vpow2.f32 %v2588_v60  ;;  %v2590_v2 = vmul.f32 1.442695, %v2575_v63 }
 0x955   : > { %v2604_v9 = vsel %vm1674_vm5, %v6225_v61, 0.0 }
 0x959   : > { %v2594_v62 = vpop.xlane.xlu2 %2593 }
 0x95a   : > { %5013 = vrcp.f32 %v2594_v62  ;;  %v6229_v3 = vpop.eup %5011 }
 0x95b   : > { %5015 = vpow2.f32 %v2590_v2  ;;  %v2610_v12 = vsel %vm1674_vm5, %v6229_v3, 0.0 }
 0x95c   : > { %2605 = vadd.xlane.f32.xlu1 %v2604_v9 }
 0x960   : > { %v5014_v4 = vpop.eup %5013 }
 0x961   : > { %v2624_v7 = vmul.f32 %v5014_v4, %v5000_v27  ;;  %v6236_v17 = vpop.eup %5015 }
 0x962   : > { %v4934_v8 = vpop.permute.xlu0 %4933  ;;  %v2613_v19 = vsel %vm1674_vm5, %v6236_v17, 0.0 }
 0x963   : > { %v2632_v10 = vpack.c.bf16 %v2624_v7, %v2624_v7  ;;  %v4936_v40 = vunpack.i.h.bf16 %v4934_v8  ;;  %v4935_v11 = vunpack.i.l.bf16 %v4934_v8  ;;  %v4700_v8 = vld [vmem:[%s5783_s8 + $0x30] sm:$0xff] }
 0x964   : > { %2611 = vadd.xlane.f32.xlu1 %v2610_v12 }
 0x965   : > { %v2387_v13 = vpack.c.bf16 %v4936_v40, %v4936_v40  ;;  %v2386_v14 = vpack.c.bf16 %v4935_v11, %v4935_v11  ;;  %4291 = vmatmul.msk.bf16.vlgmr.msra.gmra.mxu1 %vm1674_vm5, %v2632_v10  ;;  %v4699_v40 = vld [vmem:[%s5783_s8 + $0x28] sm:$0xff] }
 0x967   : > { %v2682_v15 = vsel %vm1774_vm6, %v2386_v14, 0  ;;  %v2701_v16 = vsel %vm1774_vm6, %v2387_v13, 0  ;;  %v4698_v13 = vld [vmem:[%s5783_s8 + $0x20] sm:$0xff] }
 0x968   : > { %2691 = vmatpush.bf16.msrb.mxu3 %v2682_v15  ;;  %2710 = vmatpush.bf16.msra.mxu0 %v2701_v16 }
 0x96c   : > { %4938 = vrot.lane.b32.xlu2 %v4937_v18, %s5412_s6  ;;  %2614 = vadd.xlane.f32.xlu1 %v2613_v19 }
 0x98d   : > { %v2597_v20 = vpop.xlane.xlu0 %2596 }
 0x98e   : > { %5017 = vrcp.f32 %v2597_v20 }
 0x994   : > { %v5018_v21 = vpop.eup %5017 }
 0x995   : > { %v2625_v22 = vmul.f32 %v5018_v21, %v6205_v6 }
 0x997   : > { %v2633_v23 = vpack.c.bf16 %v2625_v22, %v2625_v22 }
 0x999   : > { %4292 = vmatmul.msk.bf16.vlgmr.msra.gmra.mxu2 %vm1674_vm5, %v2633_v23  ;;  %v4697_v23 = vld [vmem:[%s5783_s8 + $0x18] sm:$0xff] }
 0x9a0   : > { %v2379_v24 = vpop.permute.xlu0 %2378 }
 0x9a1   : > { %v2390_v25 = vpack.c.bf16 %v2379_v24, %v2379_v24  ;;  %v4696_v24 = vld [vmem:[%s5783_s8 + $0x10] sm:$0xff] }
 0x9a3   : > { %v2758_v26 = vsel %vm1774_vm6, %v2390_v25, 0  ;;  %v4695_v25 = vld [vmem:[%s5783_s8 + $0x8] sm:$0xff] }
 0x9a4   : > { %2767 = vmatpush.bf16.msra.mxu3 %v2758_v26  ;;  %v4694_v26 = vld [vmem:[%s5783_s8] sm:$0xff] }
 0x9a8   : > { %v2381_v0 = vpop.permute.xlu0 %2380 }
 0x9a9   : > { %v2391_v1 = vpack.c.bf16 %v2381_v0, %v2381_v0 }
 0x9ab   : > { %v2777_v27 = vsel %vm1774_vm6, %v2391_v1, 0 }
 0x9ac   : > { %2786 = vmatpush.bf16.msrb.mxu0 %v2777_v27 }
 0x9bf   : > { %v2600_v28 = vpop.xlane.xlu1 %2599 }
 0x9c0   : > { %5019 = vrcp.f32 %v2600_v28 }
 0x9c6   : > { %v5020_v29 = vpop.eup %5019 }
 0x9c7   : > { %v2626_v30 = vmul.f32 %v5020_v29, %v6213_v48  ;;  %v2609_v5 = vpop.xlane.xlu2 %2608  ;;  %v2603_v31 = vpop.xlane.xlu1 %2602 }
 0x9c8   : > { %5021 = vrcp.f32 %v2609_v5 }
 0x9c9   : > { %v2634_v32 = vpack.c.bf16 %v2626_v30, %v2626_v30  ;;  %5023 = vrcp.f32 %v2603_v31 }
 0x9cb   : > { %4293 = vmatmul.msk.bf16.vlgmr.msrb.gmra.mxu3 %vm1674_vm5, %v2634_v32 }
 0x9ce   : > { %v5022_v33 = vpop.eup %5021 }
 0x9cf   : > { %v5024_v6 = vpop.eup %5023  ;;  %v4939_v35 = vpop.permute.xlu2 %4938  ;;  %v2629_v44 = vmul.f32 %v5022_v33, %v6219_v57 }
 0x9d0   : > { %v2606_v36 = vpop.xlane.xlu1 %2605  ;;  %v2627_v39 = vmul.f32 %v5024_v6, %v6217_v54  ;;  %v4941_v41 = vunpack.i.h.bf16 %v4939_v35  ;;  %v4940_v42 = vunpack.i.l.bf16 %v4939_v35 }
 0x9d1   : > { %5025 = vrcp.f32 %v2606_v36  ;;  %v2637_v50 = vpack.c.bf16 %v2629_v44, %v2629_v44  ;;  %v4959_v44 = vld [vmem:[%s6550_s13] ss:$0 sm:$0xff] }
 0x9d2   : > { %v2635_v45 = vpack.c.bf16 %v2627_v39, %v2627_v39  ;;  %v2388_v46 = vpack.c.bf16 %v4941_v41, %v4941_v41  ;;  %v2389_v34 = vpack.c.bf16 %v4940_v42, %v4940_v42 }
 0x9d4   : > { %4294 = vmatmul.msk.bf16.vlgmr.msra.gmra.mxu0 %vm1674_vm5, %v2635_v45  ;;  %v2720_v47 = vsel %vm1774_vm6, %v2388_v46, 0  ;;  %v2739_v48 = vsel %vm1774_vm6, %v2389_v34, 0 }
 0x9d5   : > { %2729 = vmatpush.bf16.msrb.mxu1 %v2720_v47  ;;  %2748 = vmatpush.bf16.msrb.mxu2 %v2739_v48 }
 0x9d7   : > { %v5026_v49 = vpop.eup %5025 }
 0x9d8   : > { %v2628_v51 = vmul.f32 %v5026_v49, %v6225_v61  ;;  %v2612_v52 = vpop.xlane.xlu1 %2611  ;;  %4296 = vmatmul.msk.bf16.vlgmr.msrb.gmra.mxu2 %vm1674_vm5, %v2637_v50 }
 0x9d9   : > { %5027 = vrcp.f32 %v2612_v52 }
 0x9da   : > { %v2636_v53 = vpack.c.bf16 %v2628_v51, %v2628_v51 }
 0x9dc   : > { %4295 = vmatmul.msk.bf16.vlgmr.msrb.gmra.mxu1 %vm1674_vm5, %v2636_v53 }
 0x9df   : > { %v5028_v54 = vpop.eup %5027 }
 0x9e0   : > { %v2630_v55 = vmul.f32 %v5028_v54, %v6229_v3  ;;  %v2615_v56 = vpop.xlane.xlu1 %2614  ;;  %v4701_v3 = vld [vmem:[%s5783_s8 + $0x38] sm:$0xff] }
 0x9e1   : > { %5029 = vrcp.f32 %v2615_v56  ;;  %2874 = vmatpush.bf16.msra.mxu1 %v4701_v3  ;;  %v4445_v56 = vld [vmem:[%s5789_s20 + $0xe0] sm:$0xf]  ;;  %v4455_v3 = vld [vmem:[%s5789_s20 + $0xf8] sm:$0xf0] }
 0x9e2   : > { %v2638_v57 = vpack.c.bf16 %v2630_v55, %v2630_v55  ;;  %v2655_v58 = vpop.f32.mrf.mxu1 }
 0x9e4   : > { %4297 = vmatmul.msk.bf16.vlgmr.msra.gmra.mxu3 %vm1674_vm5, %v2638_v57  ;;  %v4732_v57 = vld [vmem:[%s5789_s20 + $0xec] sm:$0xf0] }
 0x9e5   : > { %2875 = vmatpush.bf16.msra.mxu1 %v4700_v8  ;;  %v4728_v8 = vld [vmem:[%s5789_s20 + $0xcc] sm:$0xf0] }
 0x9e7   : > { %v5030_v59 = vpop.eup %5029 }
 0x9e8   : > { %v2631_v60 = vmul.f32 %v5030_v59, %v6236_v17  ;;  %v4446_v59 = vor.u32 %v4732_v57, %v4445_v56  ;;  %v4712_v56 = vld [vmem:[%s5789_s20 + $0x4c] sm:$0xf0]  ;;  %v4710_v57 = vld [vmem:[%s5789_s20 + $0x44] sm:$0xf] }
 0x9e9   : > { %2876 = vmatpush.bf16.msra.mxu1 %v4699_v40 }
 0x9ea   : > { %v2639_v61 = vpack.c.bf16 %v2631_v60, %v2631_v60  ;;  %v2657_v62 = vpop.f32.mrf.mxu1  ;;  %v4447_v60 = vld [vmem:[%s5789_s20 + $0xf0] sm:$0xf0]  ;;  %3139 = vmatpush.bf16.msra.mxu2 %v4446_v59 }
 0x9eb   : > { %v4733_v62 = vld [vmem:[%s5789_s20 + $0xf4] sm:$0xf0]  ;;  %v4367_v59 = vld [vmem:[%s5789_s20 + $0x50] sm:$0xf0] }
 0x9ec   : > { %4298 = vmatmul.msk.bf16.vlgmr.msrb.gmra.mxu0 %vm1674_vm5, %v2639_v61  ;;  %v4453_v61 = vld [vmem:[%s5789_s20 + $0xe8] sm:$0xf] }
 0x9ed   : > { %2877 = vmatpush.bf16.msra.mxu1 %v4698_v13  ;;  %v4729_v13 = vld [vmem:[%s5789_s20 + $0xd4] sm:$0xf0] }
 0x9f1   : > { %2878 = vmatpush.bf16.msra.mxu1 %v4697_v23  ;;  %v4415_v23 = vld [vmem:[%s5789_s20 + $0xb0] sm:$0xf0] }
 0x9f5   : > { %2879 = vmatpush.bf16.msra.mxu1 %v4696_v24  ;;  %v4421_v24 = vld [vmem:[%s5789_s20 + $0xa8] sm:$0xf] }
 0x9f9   : > { %2880 = vmatpush.bf16.msra.mxu1 %v4695_v25  ;;  %v4725_v25 = vld [vmem:[%s5789_s20 + $0xb4] sm:$0xf0] }
 0x9fd   : > { %2881 = vmatpush.bf16.msra.mxu1 %v4694_v26 }
 0xa1c   : > { %v2674_v63 = vpop.f32.mrf.mxu2 }
 0xa24   : > { %v2676_v9 = vpop.f32.mrf.mxu2 }
 0xa25   : > { %v4454_v9 = vor.u32 %v4733_v62, %v4453_v61  ;;  %v4713_v61 = vld [vmem:[%s5789_s20 + $0x54] sm:$0xf0]  ;;  %v4370_v62 = vor.u32 %v4710_v57, %v4367_v59 }
 0xa27   : > { %3167 = vmatpush.bf16.msra.mxu0 %v4454_v9  ;;  %v4711_v9 = vld [vmem:[%s5789_s20 + $0x4c] sm:$0xf] }
 0xa4e   : > { %v2693_v2 = vpop.f32.mrf.mxu3 }
 0xa51   : > { %v2712_v4 = vpop.f32.mrf.mxu0 }
 0xa52   : > { %v4942_v7 = vpack.i.bf16 %v2712_v4, %v2693_v2  ;;  %v4731_v2 = vld [vmem:[%s5789_s20 + $0xec] sm:$0xf] }
 0xa53   : > { %v4458_v4 = vor.u32 %v4731_v2, %v4455_v3  ;;  %v4375_v2 = vld [vmem:[%s5789_s20 + $0x58] sm:$0xf0] }
 0xa54   : > { %4943 = vrot.lane.b32.xlu1 %v4942_v7, %s5414_s22  ;;  %v4429_v7 = vld [vmem:[%s5789_s20 + $0xc0] sm:$0xf]  ;;  %v4378_v3 = vor.u32 %v4711_v9, %v4375_v2 }
 0xa55   : > { %3181 = vmatpush.bf16.msrb.mxu1 %v4458_v4  ;;  %v4430_v40 = vor.u32 %v4728_v8, %v4429_v7  ;;  %v4349_v4 = vld [vmem:[%s5789_s20 + $0x20] sm:$0xf]  ;;  %v4708_v7 = vld [vmem:[%s5789_s20 + $0x2c] sm:$0xf0]  ;;  %v4706_v8 = vld [vmem:[%s5789_s20 + $0x24] sm:$0xf] }
 0xa56   : > { %v2695_v10 = vpop.f32.mrf.mxu3 }
 0xa57   : > { %v4726_v10 = vld [vmem:[%s5789_s20 + $0xc4] sm:$0xf]  ;;  %3140 = vmatpush.bf16.msra.mxu2 %v4430_v40  ;;  %v4351_v40 = vld [vmem:[%s5789_s20 + $0x30] sm:$0xf0] }
 0xa59   : > { %v2731_v11 = vpop.f32.mrf.mxu1  ;;  %v2714_v12 = vpop.f32.mrf.mxu0 }
 0xa5a   : > { %v4437_v12 = vld [vmem:[%s5789_s20 + $0xc8] sm:$0xf] }
 0xa5b   : > { %v2750_v14 = vpop.f32.mrf.mxu2 }
 0xa5c   : > { %v4947_v15 = vpack.i.bf16 %v2750_v14, %v2731_v11  ;;  %v4431_v11 = vld [vmem:[%s5789_s20 + $0xd0] sm:$0xf0] }
 0xa5d   : > { %v4434_v14 = vor.u32 %v4726_v10, %v4431_v11  ;;  %v4350_v10 = vor.u32 %v4708_v7, %v4349_v4  ;;  %v4357_v11 = vld [vmem:[%s5789_s20 + $0x28] sm:$0xf] }
 0xa5e   : > { %4948 = vrot.lane.b32.xlu0 %v4947_v15, %s5412_s6  ;;  %v4438_v15 = vor.u32 %v4729_v13, %v4437_v12  ;;  %v4709_v12 = vld [vmem:[%s5789_s20 + $0x34] sm:$0xf0] }
 0xa60   : > { %3168 = vmatpush.bf16.msra.mxu0 %v4438_v15  ;;  %v4358_v15 = vor.u32 %v4709_v12, %v4357_v11 }
 0xa61   : > { %v2733_v16 = vpop.f32.mrf.mxu1 }
 0xa62   : > { %v4727_v16 = vld [vmem:[%s5789_s20 + $0xcc] sm:$0xf] }
 0xa63   : > { %v2752_v17 = vpop.f32.mrf.mxu2 }
 0xa64   : > { %v4439_v17 = vld [vmem:[%s5789_s20 + $0xd8] sm:$0xf0] }
 0xa67   : > { %v2769_v18 = vpop.f32.mrf.mxu3 }
 0xa69   : > { %v2788_v19 = vpop.f32.mrf.mxu0 }
 0xa6a   : > { %v4952_v20 = vpack.i.bf16 %v2788_v19, %v2769_v18  ;;  %v4442_v18 = vor.u32 %v4727_v16, %v4439_v17  ;;  %v4413_v19 = vld [vmem:[%s5789_s20 + $0xa0] sm:$0xf]  ;;  %v4707_v16 = vld [vmem:[%s5789_s20 + $0x2c] sm:$0xf]  ;;  %v4359_v17 = vld [vmem:[%s5789_s20 + $0x38] sm:$0xf0] }
 0xa6c   : > { %4953 = vrot.lane.b32.xlu2 %v4952_v20, %s5413_s17  ;;  %v4724_v20 = vld [vmem:[%s5789_s20 + $0xac] sm:$0xf0]  ;;  %3182 = vmatpush.bf16.msrb.mxu1 %v4442_v18  ;;  %v4333_v18 = vld [vmem:[%s5789_s20] sm:$0xf] }
 0xa6f   : > { %v2771_v21 = vpop.f32.mrf.mxu3 }
 0xa70   : > { %v4722_v21 = vld [vmem:[%s5789_s20 + $0xa4] sm:$0xf] }
 0xa71   : > { %v2790_v22 = vpop.f32.mrf.mxu0  ;;  %v4418_v26 = vor.u32 %v4722_v21, %v4415_v23  ;;  %v4704_v21 = vld [vmem:[%s5789_s20 + $0xc] sm:$0xf0]  ;;  %v4335_v23 = vld [vmem:[%s5789_s20 + $0x10] sm:$0xf0] }
 0xa72   : > { %v4414_v22 = vor.u32 %v4724_v20, %v4413_v19  ;;  %v4362_v20 = vor.u32 %v4707_v16, %v4359_v17  ;;  %v4752_v16 = vld [vmem:[%s5791_s27 + $0x90] sm:$0xff] }
 0xa73   : > { %v4760_v17 = vld [vmem:[%s5791_s27 + $0xd0] sm:$0xff] }
 0xa74   : > { %3141 = vmatpush.bf16.msra.mxu2 %v4414_v22  ;;  %v4702_v22 = vld [vmem:[%s5789_s20 + $0x4] sm:$0xf] }
 0xac6   : > { %v4944_v0 = vpop.permute.xlu1 %4943  ;;  %v4954_v28 = vpop.permute.xlu2 %4953 }
 0xac7   : > { %v4946_v1 = vunpack.i.h.bf16 %v4944_v0  ;;  %v4945_v27 = vunpack.i.l.bf16 %v4944_v0  ;;  %v4956_v31 = vunpack.i.h.bf16 %v4954_v28  ;;  %v4955_v32 = vunpack.i.l.bf16 %v4954_v28 }
 0xac8   : > { %v4422_v0 = vor.u32 %v4725_v25, %v4421_v24  ;;  %v4334_v24 = vor.u32 %v4704_v21, %v4333_v18  ;;  %v4338_v25 = vor.u32 %v4702_v22, %v4335_v23  ;;  %v4737_v18 = vld [vmem:[%s5791_s27 + $0x18] sm:$0xff]  ;;  %v4759_v21 = vld [vmem:[%s5791_s27 + $0xc8] sm:$0xff]  ;;  %v4736_v22 = vld [vmem:[%s5791_s27 + $0x10] sm:$0xff] }
 0xac9   : > { %v2817_v33 = vsel %vm1511_vm3, %v2674_v63, %v4946_v1  ;;  %v2816_v6 = vsel %vm1511_vm3, %v2655_v58, %v4945_v27  ;;  %v4730_v58 = vld [vmem:[%s5789_s20 + $0xe4] sm:$0xf]  ;;  %v4723_v1 = vld [vmem:[%s5789_s20 + $0xac] sm:$0xf]  ;;  %v4423_v27 = vld [vmem:[%s5789_s20 + $0xb8] sm:$0xf0] }
 0xaca   : > { %v4450_v63 = vor.u32 %v4730_v58, %v4447_v60  ;;  %v4426_v28 = vor.u32 %v4723_v1, %v4423_v27  ;;  %3169 = vmatpush.bf16.msra.mxu0 %v4422_v0  ;;  %v4373_v60 = vld [vmem:[%s5789_s20 + $0x48] sm:$0xf]  ;;  %v4705_v0 = vld [vmem:[%s5789_s20 + $0x14] sm:$0xf0]  ;;  %v4703_v1 = vld [vmem:[%s5789_s20 + $0xc] sm:$0xf] }
 0xacb   : > { %v4744_v23 = vld [vmem:[%s5791_s27 + $0x50] sm:$0xff] }
 0xacc   : > { %3153 = vmatpush.bf16.msrb.mxu3 %v4450_v63  ;;  %3183 = vmatpush.bf16.msrb.mxu1 %v4426_v28  ;;  %v4374_v63 = vor.u32 %v4713_v61, %v4373_v60 }
 0xad0   : > { %v4949_v29 = vpop.permute.xlu0 %4948  ;;  %3154 = vmatpush.bf16.msrb.mxu3 %v4434_v14  ;;  %v4354_v14 = vor.u32 %v4706_v8, %v4351_v40  ;;  %v6382_v8 = vld [vmem:[%s5842_s1] sm:$0x7] }
 0xad1   : > { %v4951_v30 = vunpack.i.h.bf16 %v4949_v29  ;;  %v4950_v5 = vunpack.i.l.bf16 %v4949_v29  ;;  %v4397_v29 = vld [vmem:[%s5789_s20 + $0x80] sm:$0xf] }
 0xad3   : > { %v2819_v35 = vsel %vm1950_vm7, %v2817_v33, %v4951_v30  ;;  %v2818_v36 = vsel %vm1950_vm7, %v2816_v6, %v4950_v5  ;;  %v4720_v30 = vld [vmem:[%s5789_s20 + $0x8c] sm:$0xf0]  ;;  %v4718_v5 = vld [vmem:[%s5789_s20 + $0x84] sm:$0xf]  ;;  %v4405_v33 = vld [vmem:[%s5789_s20 + $0x88] sm:$0xf] }
 0xad4   : > { %v2820_v39 = vsel %vm1953_vm8, %v2818_v36, %v4955_v32  ;;  %v2821_v41 = vsel %vm1953_vm8, %v2819_v35, %v4956_v31  ;;  %3155 = vmatpush.bf16.msrb.mxu3 %v4418_v26  ;;  %v4398_v31 = vor.u32 %v4720_v30, %v4397_v29  ;;  %v4399_v32 = vld [vmem:[%s5789_s20 + $0x90] sm:$0xf0]  ;;  %v4721_v6 = vld [vmem:[%s5789_s20 + $0x94] sm:$0xf0]  ;;  %v4341_v26 = vld [vmem:[%s5789_s20 + $0x8] sm:$0xf] }
 0xad5   : > { %v2822_v42 = vpack.c.bf16 %v2821_v41, %v2820_v39  ;;  %v4402_v35 = vor.u32 %v4718_v5, %v4399_v32  ;;  %v4406_v36 = vor.u32 %v4721_v6, %v4405_v33  ;;  %v4719_v39 = vld [vmem:[%s5789_s20 + $0x8c] sm:$0xf]  ;;  %v4407_v41 = vld [vmem:[%s5789_s20 + $0x98] sm:$0xf0]  ;;  %v4342_v28 = vor.u32 %v4705_v0, %v4341_v26 }
 0xad6   : > { %3142 = vmatpush.bf16.msra.mxu2 %v4398_v31  ;;  %v4343_v29 = vld [vmem:[%s5789_s20 + $0x18] sm:$0xf0]  ;;  %v4735_v26 = vld [vmem:[%s5791_s27 + $0x8] sm:$0xff] }
 0xad7   : > { %2882 = vmatmul.bf16.vlgmr.msra.gmra.mxu1 %v2822_v42  ;;  %v4410_v42 = vor.u32 %v4719_v39, %v4407_v41  ;;  %3170 = vmatpush.bf16.msra.mxu0 %v4406_v36  ;;  %v4346_v30 = vor.u32 %v4703_v1, %v4343_v29  ;;  %v4757_v31 = vld [vmem:[%s5791_s27 + $0xb8] sm:$0xff]  ;;  %v4756_v36 = vld [vmem:[%s5791_s27 + $0xb0] sm:$0xff]  ;;  %v4743_v0 = vld [vmem:[%s5791_s27 + $0x48] sm:$0xff] }
 0xad8   : > { %3156 = vmatpush.bf16.msrb.mxu3 %v4402_v35  ;;  %v4765_v32 = vld [vmem:[%s5791_s27 + $0xf8] sm:$0xff]  ;;  %v4764_v39 = vld [vmem:[%s5791_s27 + $0xf0] sm:$0xff]  ;;  %v4734_v1 = vld [vmem:[%s5791_s27] sm:$0xff] }
 0xad9   : > { %3184 = vmatpush.bf16.msrb.mxu1 %v4410_v42  ;;  %v4741_v6 = vld [vmem:[%s5791_s27 + $0x38] sm:$0xff] }
 0xada   : > { %v4749_v35 = vld [vmem:[%s5791_s27 + $0x78] sm:$0xff] }
 0xb54   : > { %v2883_v45 = vpop.f32.mrf.mxu1 }
 0xb55   : > { %v2884_v46 = vadd.f32 %v4959_v44, %v2883_v45  ;;  %v4716_v45 = vld [vmem:[%s5789_s20 + $0x6c] sm:$0xf0] }
 0xb57   : > { %v2888_v34 = vadd.f32 %v2884_v46, %v6124_v37  ;;  %v4714_v46 = vld [vmem:[%s5789_s20 + $0x64] sm:$0xf] }
 0xb59   : > { %2890 = vadd.xlane.f32.xlu0 %v2888_v34 }
 0xb5c   : > { %v2885_v47 = vpop.f32.mrf.mxu1 }
 0xb5d   : > { %v2886_v48 = vadd.f32 %v4959_v44, %v2885_v47  ;;  %v4381_v44 = vld [vmem:[%s5789_s20 + $0x60] sm:$0xf]  ;;  %v4383_v47 = vld [vmem:[%s5789_s20 + $0x70] sm:$0xf0] }
 0xb5f   : > { %v2889_v49 = vadd.f32 %v2886_v48, %v6126_v38  ;;  %v4389_v48 = vld [vmem:[%s5789_s20 + $0x68] sm:$0xf] }
 0xb61   : > { %2892 = vadd.xlane.f32.xlu2 %v2889_v49 }
 0xbcc   : > { %v2891_v50 = vpop.xlane.xlu0 %2890 }
 0xbcd   : > { %v2894_v51 = vmul.f32 %v2891_v50, %v6094_v43  ;;  %v4386_v50 = vor.u32 %v4714_v46, %v4383_v47  ;;  %v4755_v47 = vld [vmem:[%s5791_s27 + $0xa8] sm:$0xff] }
 0xbcf   : > { %v6286_v52 = vsub.f32 %v2888_v34, %v2894_v51  ;;  %v4382_v34 = vor.u32 %v4716_v45, %v4381_v44  ;;  %3157 = vmatpush.bf16.msrb.mxu3 %v4386_v50  ;;  %v4740_v44 = vld [vmem:[%s5791_s27 + $0x30] sm:$0xff]  ;;  %v4747_v50 = vld [vmem:[%s5791_s27 + $0x68] sm:$0xff] }
 0xbd0   : > { %v4748_v45 = vld [vmem:[%s5791_s27 + $0x70] sm:$0xff] }
 0xbd1   : > { %v2898_v37 = vmul.f32 %v6286_v52, %v6286_v52  ;;  %3143 = vmatpush.bf16.msra.mxu2 %v4382_v34 }
 0xbd3   : > { %2900 = vadd.xlane.f32.xlu1 %v2898_v37  ;;  %v4715_v37 = vld [vmem:[%s5789_s20 + $0x6c] sm:$0xf]  ;;  %3158 = vmatpush.bf16.msrb.mxu3 %v4370_v62 }
 0xbd4   : > { %v2893_v53 = vpop.xlane.xlu2 %2892 }
 0xbd5   : > { %v2895_v54 = vmul.f32 %v2893_v53, %v6094_v43  ;;  %v4391_v53 = vld [vmem:[%s5789_s20 + $0x78] sm:$0xf0] }
 0xbd7   : > { %v6291_v55 = vsub.f32 %v2889_v49, %v2895_v54  ;;  %v4717_v49 = vld [vmem:[%s5789_s20 + $0x74] sm:$0xf0]  ;;  %v4394_v54 = vor.u32 %v4715_v37, %v4391_v53  ;;  %3159 = vmatpush.bf16.msrb.mxu3 %v4354_v14  ;;  %v4754_v53 = vld [vmem:[%s5791_s27 + $0xa0] sm:$0xff] }
 0xbd8   : > { %v4390_v51 = vor.u32 %v4717_v49, %v4389_v48  ;;  %v4763_v48 = vld [vmem:[%s5791_s27 + $0xe8] sm:$0xff]  ;;  %v4738_v14 = vld [vmem:[%s5791_s27 + $0x20] sm:$0xff] }
 0xbd9   : > { %v2899_v38 = vmul.f32 %v6291_v55, %v6291_v55  ;;  %3185 = vmatpush.bf16.msrb.mxu1 %v4394_v54  ;;  %v4739_v49 = vld [vmem:[%s5791_s27 + $0x28] sm:$0xff]  ;;  %v4762_v54 = vld [vmem:[%s5791_s27 + $0xe0] sm:$0xff] }
 0xbda   : > { %3171 = vmatpush.bf16.msra.mxu0 %v4390_v51 }
 0xbdb   : > { %2902 = vadd.xlane.f32.xlu0 %v2899_v38  ;;  %v4365_v38 = vld [vmem:[%s5789_s20 + $0x40] sm:$0xf]  ;;  %3160 = vmatpush.bf16.msrb.mxu3 %v4338_v25 }
 0xbdc   : > { %v4366_v58 = vor.u32 %v4712_v56, %v4365_v38  ;;  %v4758_v25 = vld [vmem:[%s5791_s27 + $0xc0] sm:$0xff] }
 0xbdd   : > { %3186 = vmatpush.bf16.msrb.mxu1 %v4378_v3 }
 0xbde   : > { %3144 = vmatpush.bf16.msra.mxu2 %v4366_v58  ;;  %3172 = vmatpush.bf16.msra.mxu0 %v4374_v63  ;;  %v6377_v63 = vld [vmem:[%s5836_s21] sm:$0x7] }
 0xbdf   : > { %3481 = vmatpush.bf16.msra.mxu3 %v4749_v35  ;;  %v2930_v9 = vperm.slane %v6377_v63, 1 }
 0xbe1   : > { %3187 = vmatpush.bf16.msrb.mxu1 %v4362_v20  ;;  %v4751_v20 = vld [vmem:[%s5791_s27 + $0x88] sm:$0xff] }
 0xbe2   : > { %3145 = vmatpush.bf16.msra.mxu2 %v4350_v10  ;;  %3173 = vmatpush.bf16.msra.mxu0 %v4358_v15  ;;  %v2933_v10 = vperm.slane %v6382_v8, 1  ;;  %v4746_v15 = vld [vmem:[%s5791_s27 + $0x60] sm:$0xff] }
 0xbe3   : > { %3482 = vmatpush.bf16.msra.mxu3 %v4748_v45 }
 0xbe5   : > { %3188 = vmatpush.bf16.msrb.mxu1 %v4346_v30 }
 0xbe6   : > { %3146 = vmatpush.bf16.msra.mxu2 %v4334_v24  ;;  %3174 = vmatpush.bf16.msra.mxu0 %v4342_v28  ;;  %v4750_v24 = vld [vmem:[%s5791_s27 + $0x80] sm:$0xff] }
 0xbe7   : > { %3483 = vmatpush.bf16.msra.mxu3 %v4747_v50  ;;  %v2969_v28 = vld [vmem:[%s1078_s11] sm:$0xf] }
 0xbe9   : > { %3509 = vmatpush.bf16.msra.mxu1 %v4765_v32 }
 0xbea   : > { %3495 = vmatpush.bf16.msrb.mxu0 %v4757_v31  ;;  %3467 = vmatpush.bf16.msrb.mxu2 %v4741_v6  ;;  %v2974_v31 = vperm.slane %v2969_v28, 3 }
 0xbeb   : > { %3484 = vmatpush.bf16.msra.mxu3 %v4746_v15 }
 0xbed   : > { %3510 = vmatpush.bf16.msra.mxu1 %v4764_v39  ;;  %v2972_v39 = vperm.slane %v2969_v28, 1 }
 0xbee   : > { %3496 = vmatpush.bf16.msrb.mxu0 %v4756_v36  ;;  %3468 = vmatpush.bf16.msrb.mxu2 %v4740_v44  ;;  %v2971_v36 = vperm.slane %v2969_v28, 0 }
 0xbf1   : > { %3511 = vmatpush.bf16.msra.mxu1 %v4763_v48 }
 0xbf2   : > { %3497 = vmatpush.bf16.msrb.mxu0 %v4755_v47  ;;  %3469 = vmatpush.bf16.msrb.mxu2 %v4739_v49 }
 0xbf5   : > { %3512 = vmatpush.bf16.msra.mxu1 %v4762_v54 }
 0xbf6   : > { %3498 = vmatpush.bf16.msrb.mxu0 %v4754_v53  ;;  %3470 = vmatpush.bf16.msrb.mxu2 %v4738_v14 }
 0xbfa   : > { %3471 = vmatpush.bf16.msrb.mxu2 %v4737_v18 }
 0xbfe   : > { %3472 = vmatpush.bf16.msrb.mxu2 %v4736_v22 }
 0xc02   : > { %3473 = vmatpush.bf16.msrb.mxu2 %v4735_v26 }
 0xc06   : > { %3474 = vmatpush.bf16.msrb.mxu2 %v4734_v1 }
 0xc46   : > { %v2901_v13 = vpop.xlane.xlu1 %2900 }
 0xc47   : > { %v2904_v19 = vmul.f32 %v2901_v13, %v6094_v43  ;;  %v4761_v13 = vld [vmem:[%s5791_s27 + $0xd8] sm:$0xff] }
 0xc48   : > { %3513 = vmatpush.bf16.msra.mxu1 %v4761_v13 }
 0xc49   : > { %v2906_v27 = vadd.f32 1e-05, %v2904_v19  ;;  %v4745_v19 = vld [vmem:[%s5791_s27 + $0x58] sm:$0xff] }
 0xc4a   : > { %3485 = vmatpush.bf16.msra.mxu3 %v4745_v19 }
 0xc4b   : > { %5031 = vrsqrt.f32 %v2906_v27  ;;  %vm2914_vm1 = vweird.f32 %v2906_v27 }
 0xc4c   : > { %3514 = vmatpush.bf16.msra.mxu1 %v4760_v17 }
 0xc4e   : > { %v2903_v5 = vpop.xlane.xlu0 %2902  ;;  %3486 = vmatpush.bf16.msra.mxu3 %v4744_v23 }
 0xc4f   : > { %v2905_v33 = vmul.f32 %v2903_v5, %v6094_v43  ;;  %v2973_v5 = vperm.slane %v2969_v28, 2 }
 0xc50   : > { %3515 = vmatpush.bf16.msra.mxu1 %v4759_v21 }
 0xc51   : > { %v5032_v41 = vpop.eup %5031  ;;  %v2907_v42 = vadd.f32 1e-05, %v2905_v33 }
 0xc52   : > { %v2909_v46 = vmul.f32 %v5032_v41, %v2906_v27  ;;  %vm2915_vm0 = vweird.f32 %v5032_v41  ;;  %3487 = vmatpush.bf16.msra.mxu3 %v4743_v0  ;;  %v4742_v27 = vld [vmem:[%s5791_s27 + $0x40] sm:$0xff] }
 0xc53   : > { %5033 = vrsqrt.f32 %v2907_v42  ;;  %vm2916_vm2 = vmor %vm2914_vm1, %vm2915_vm0  ;;  %vm2924_vm4 = vweird.f32 %v2907_v42 }
 0xc54   : > { %v2910_v34 = vmul.f32 %v5032_v41, %v2909_v46  ;;  %3516 = vmatpush.bf16.msra.mxu1 %v4758_v25 }
 0xc56   : > { %v2911_v51 = vmul.f32 0.5, %v2910_v34  ;;  %3488 = vmatpush.bf16.msra.mxu3 %v4742_v27 }
 0xc58   : > { %v2912_v37 = vsub.f32 1.5, %v2911_v51 }
 0xc59   : > { %v5034_v38 = vpop.eup %5033 }
 0xc5a   : > { %v2913_v56 = vmul.f32 %v5032_v41, %v2912_v37  ;;  %v2919_v57 = vmul.f32 %v5034_v38, %v2907_v42  ;;  %vm2925_vm3 = vweird.f32 %v5034_v38 }
 0xc5b   : > { %vm2926_vm5 = vmor %vm2924_vm4, %vm2925_vm3 }
 0xc5c   : > { %v2920_v58 = vmul.f32 %v5034_v38, %v2919_v57  ;;  %v2917_v59 = vsel %vm2916_vm2, %v5032_v41, %v2913_v56 }
 0xc5d   : > { %v2928_v62 = vmul.f32 %v2917_v59, %v6286_v52 }
 0xc5e   : > { %v2921_v60 = vmul.f32 0.5, %v2920_v58 }
 0xc5f   : > { %v2931_v7 = vmul.f32 %v2930_v9, %v2928_v62 }
 0xc60   : > { %v2922_v61 = vsub.f32 1.5, %v2921_v60 }
 0xc61   : > { %v6385_v40 = vadd.f32 %v2933_v10, %v2931_v7 }
 0xc62   : > { %v2923_v2 = vmul.f32 %v5034_v38, %v2922_v61 }
 0xc64   : > { %v2927_v3 = vsel %vm2926_vm5, %v5034_v38, %v2923_v2 }
 0xc65   : > { %v2929_v4 = vmul.f32 %v2927_v3, %v6291_v55  ;;  %v4753_v55 = vld [vmem:[%s5791_s27 + $0x98] sm:$0xff] }
 0xc66   : > { %3499 = vmatpush.bf16.msrb.mxu0 %v4753_v55 }
 0xc67   : > { %v2932_v52 = vmul.f32 %v2930_v9, %v2929_v4  ;;  %v4960_v9 = vld [vmem:[%s1081_s5] ss:$0 sm:$0xff] }
 0xc69   : > { %v6387_v11 = vadd.f32 %v2933_v10, %v2932_v52 }
 0xc6a   : > { %3500 = vmatpush.bf16.msrb.mxu0 %v4752_v16 }
 0xc6b   : > { %v2936_v12 = vpack.c.bf16 %v6387_v11, %v6385_v40 }
 0xc6d   : > { %3147 = vmatmul.bf16.vlgmr.msra.gmra.mxu2 %v2936_v12  ;;  %3161 = vmatmul.bf16.vlgmr.msrb.gmra.mxu3 %v2936_v12 }
 0xc6e   : > { %3175 = vmatmul.bf16.vlgmr.msra.gmra.mxu0 %v2936_v12  ;;  %3189 = vmatmul.bf16.vlgmr.msrb.gmra.mxu1 %v2936_v12 }
 0xc6f   : > { %3501 = vmatpush.bf16.msrb.mxu0 %v4751_v20 }
 0xc73   : > { %3502 = vmatpush.bf16.msrb.mxu0 %v4750_v24 }
 0xceb   : > { %v3176_v29 = vpop.f32.mrf.mxu0  ;;  %v3190_v30 = vpop.f32.mrf.mxu1 }
 0xcec   : > { %v3177_v6 = vadd.f32 %v3176_v29, %v2973_v5  ;;  %v3191_v35 = vadd.f32 %v3190_v30, %v2974_v31 }
 0xcee   : > { %v3197_v46 = vmax.f32 %v3177_v6, 0.0  ;;  %v3198_v34 = vmax.f32 %v3191_v35, 0.0 }
 0xcf0   : > { %v3148_v32 = vpop.f32.mrf.mxu2  ;;  %v3162_v33 = vpop.f32.mrf.mxu3 }
 0xcf1   : > { %v3149_v49 = vadd.f32 %v3148_v32, %v2971_v36  ;;  %v3163_v50 = vadd.f32 %v3162_v33, %v2972_v39 }
 0xcf3   : > { %v3178_v41 = vpop.f32.mrf.mxu0  ;;  %v3192_v42 = vpop.f32.mrf.mxu1  ;;  %v3195_v57 = vmax.f32 %v3149_v49, 0.0  ;;  %v3196_v58 = vmax.f32 %v3163_v50, 0.0 }
 0xcf4   : > { %v3179_v44 = vadd.f32 %v3178_v41, %v2973_v5  ;;  %v3193_v45 = vadd.f32 %v3192_v42, %v2974_v31 }
 0xcf6   : > { %v3201_v47 = vmax.f32 %v3179_v44, 0.0  ;;  %v3202_v48 = vmax.f32 %v3193_v45, 0.0  ;;  %v3565_v44 = vperm.slane %v6377_v63, 2 }
 0xcf8   : > { %v3205_v51 = vpack.c.bf16 %v3201_v47, %v3197_v46  ;;  %v3206_v37 = vpack.c.bf16 %v3202_v48, %v3198_v34  ;;  %v3150_v53 = vpop.f32.mrf.mxu2  ;;  %v3164_v54 = vpop.f32.mrf.mxu3  ;;  %v3568_v34 = vperm.slane %v6382_v8, 2 }
 0xcf9   : > { %v3151_v38 = vadd.f32 %v3150_v53, %v2971_v36  ;;  %v3165_v56 = vadd.f32 %v3164_v54, %v2972_v39 }
 0xcfa   : > { %3503 = vmatmul.bf16.vlgmr.msrb.gmra.mxu0 %v3205_v51  ;;  %3517 = vmatmul.bf16.vlgmr.msra.gmra.mxu1 %v3206_v37 }
 0xcfb   : > { %v3199_v59 = vmax.f32 %v3151_v38, 0.0  ;;  %v3200_v60 = vmax.f32 %v3165_v56, 0.0 }
 0xcfd   : > { %v3203_v61 = vpack.c.bf16 %v3199_v59, %v3195_v57  ;;  %v3204_v62 = vpack.c.bf16 %v3200_v60, %v3196_v58 }
 0xcff   : > { %3475 = vmatmul.bf16.vlgmr.msrb.gmra.mxu2 %v3203_v61  ;;  %3489 = vmatmul.bf16.vlgmr.msra.gmra.mxu3 %v3204_v62 }
 0xd77   : > { %v3504_v7 = vpop.f32.mrf.mxu0  ;;  %v3518_v52 = vpop.f32.mrf.mxu1 }
 0xd7f   : > { %v3506_v18 = vpop.f32.mrf.mxu0  ;;  %v3520_v20 = vpop.f32.mrf.mxu1 }
 0xd82   : > { %v3476_v2 = vpop.f32.mrf.mxu2  ;;  %v3490_v3 = vpop.f32.mrf.mxu3 }
 0xd83   : > { %v3477_v4 = vadd.f32 %v4960_v9, %v3476_v2 }
 0xd85   : > { %v3491_v10 = vadd.f32 %v3490_v3, %v3477_v4 }
 0xd87   : > { %v3505_v12 = vadd.f32 %v3504_v7, %v3491_v10 }
 0xd89   : > { %v3519_v55 = vadd.f32 %v3518_v52, %v3505_v12 }
 0xd8a   : > { %v3478_v13 = vpop.f32.mrf.mxu2  ;;  %v3492_v16 = vpop.f32.mrf.mxu3 }
 0xd8b   : > { %v3479_v14 = vadd.f32 %v4960_v9, %v3478_v13  ;;  %v3523_v15 = vadd.f32 %v3519_v55, %v6385_v40 }
 0xd8d   : > { %v3493_v17 = vadd.f32 %v3492_v16, %v3479_v14  ;;  %3525 = vadd.xlane.f32.xlu2 %v3523_v15 }
 0xd8f   : > { %v3507_v19 = vadd.f32 %v3506_v18, %v3493_v17 }
 0xd91   : > { %v3521_v21 = vadd.f32 %v3520_v20, %v3507_v19 }
 0xd93   : > { %v3524_v22 = vadd.f32 %v3521_v21, %v6387_v11 }
 0xd95   : > { %3527 = vadd.xlane.f32.xlu0 %v3524_v22 }
 0xe00   : > { %v3526_v23 = vpop.xlane.xlu2 %3525 }
 0xe01   : > { %v3529_v24 = vmul.f32 %v3526_v23, %v6094_v43 }
 0xe03   : > { %v3531_v25 = vsub.f32 %v3523_v15, %v3529_v24 }
 0xe05   : > { %v3533_v26 = vmul.f32 %v3531_v25, %v3531_v25 }
 0xe07   : > { %3535 = vadd.xlane.f32.xlu2 %v3533_v26 }
 0xe08   : > { %v3528_v0 = vpop.xlane.xlu0 %3527 }
 0xe09   : > { %v3530_v1 = vmul.f32 %v3528_v0, %v6094_v43 }
 0xe0b   : > { %v3532_v40 = vsub.f32 %v3524_v22, %v3530_v1 }
 0xe0d   : > { %v3534_v27 = vmul.f32 %v3532_v40, %v3532_v40 }
 0xe0f   : > { %3537 = vadd.xlane.f32.xlu1 %v3534_v27 }
 0xe7a   : > { %v3536_v28 = vpop.xlane.xlu2 %3535 }
 0xe7b   : > { %v3539_v29 = vmul.f32 %v3536_v28, %v6094_v43 }
 0xe7d   : > { %v3541_v30 = vadd.f32 1e-05, %v3539_v29 }
 0xe7f   : > { %5035 = vrsqrt.f32 %v3541_v30  ;;  %vm3549_vm7 = vweird.f32 %v3541_v30 }
 0xe82   : > { %v3538_v5 = vpop.xlane.xlu1 %3537 }
 0xe83   : > { %v3540_v11 = vmul.f32 %v3538_v5, %v6094_v43 }
 0xe85   : > { %v5036_v31 = vpop.eup %5035  ;;  %v3542_v32 = vadd.f32 1e-05, %v3540_v11 }
 0xe86   : > { %v3544_v33 = vmul.f32 %v5036_v31, %v3541_v30  ;;  %vm3550_vm6 = vweird.f32 %v5036_v31 }
 0xe87   : > { %5037 = vrsqrt.f32 %v3542_v32  ;;  %vm3551_vm8 = vmor %vm3549_vm7, %vm3550_vm6  ;;  %vm3559_vm10 = vweird.f32 %v3542_v32 }
 0xe88   : > { %v3545_v6 = vmul.f32 %v5036_v31, %v3544_v33 }
 0xe8a   : > { %v3546_v35 = vmul.f32 0.5, %v3545_v6 }
 0xe8c   : > { %v3547_v36 = vsub.f32 1.5, %v3546_v35 }
 0xe8d   : > { %v5038_v39 = vpop.eup %5037 }
 0xe8e   : > { %v3548_v41 = vmul.f32 %v5036_v31, %v3547_v36  ;;  %v3554_v42 = vmul.f32 %v5038_v39, %v3542_v32  ;;  %vm3560_vm9 = vweird.f32 %v5038_v39 }
 0xe8f   : > { %vm3561_vm11 = vmor %vm3559_vm10, %vm3560_vm9 }
 0xe90   : > { %v3552_v45 = vsel %vm3551_vm8, %v5036_v31, %v3548_v41  ;;  %v3555_v46 = vmul.f32 %v5038_v39, %v3554_v42 }
 0xe91   : > { %v3563_v43 = vmul.f32 %v3552_v45, %v3531_v25 }
 0xe92   : > { %v3556_v47 = vmul.f32 0.5, %v3555_v46 }
 0xe93   : > { %v3566_v48 = vmul.f32 %v3565_v44, %v3563_v43 }
 0xe94   : > { %v3557_v49 = vsub.f32 1.5, %v3556_v47 }
 0xe95   : > { %v3569_v50 = vadd.f32 %v3568_v34, %v3566_v48 }
 0xe96   : > { %v3558_v51 = vmul.f32 %v5038_v39, %v3557_v49 }
 0xe97   : > { %3571 = vst [vmem:[#allocation2] sm:$0xff] %v3569_v50 }
 0xe98   : > { %v3562_v37 = vsel %vm3561_vm11, %v5038_v39, %v3558_v51 }
 0xe99   : > { %v3564_v53 = vmul.f32 %v3562_v37, %v3532_v40 }
 0xe9b   : > { %v3567_v54 = vmul.f32 %v3565_v44, %v3564_v53  ;;  %3576 = sbr.rel (%p4587_p1) target bundleno = 3913 (0xf49), region = 148 }
 0xe9d   : > { %v3570_v38 = vadd.f32 %v3568_v34, %v3567_v54 }
 0xe9f   : > { %3572 = vst [vmem:[#allocation2 + $0x8] sm:$0xff] %v3570_v38 }
 0xea0   : > { %v4773_v63 = vld [vmem:[#allocation18 + $0x38] sm:$0xff]  ;;  %v4772_v8 = vld [vmem:[#allocation18 + $0x30] sm:$0xff]  ;;  %v4771_v56 = vld [vmem:[#allocation18 + $0x28] sm:$0xff]  ;;  %v3577_v62 = vpack.c.bf16 %v3570_v38, %v3569_v50 }
 0xea1   : > { %3646 = vmatpush.bf16.msra.mxu0 %v4773_v63  ;;  %v4770_v57 = vld [vmem:[#allocation18 + $0x20] sm:$0xff]  ;;  %v4769_v58 = vld [vmem:[#allocation18 + $0x18] sm:$0xff]  ;;  %v4768_v59 = vld [vmem:[#allocation18 + $0x10] sm:$0xff] }
 0xea2   : > { %v4767_v60 = vld [vmem:[#allocation18 + $0x8] sm:$0xff]  ;;  %v4766_v61 = vld [vmem:[#allocation18] sm:$0xff] }
 0xea3   : > { %v5041_v9 = vld [vmem:[%s6553_s7] ss:$0 sm:$0xff] }
 0xea5   : > { %3647 = vmatpush.bf16.msra.mxu0 %v4772_v8 }
 0xea9   : > { %3648 = vmatpush.bf16.msra.mxu0 %v4771_v56 }
 0xead   : > { %3649 = vmatpush.bf16.msra.mxu0 %v4770_v57 }
 0xeb1   : > { %3650 = vmatpush.bf16.msra.mxu0 %v4769_v58 }
 0xeb5   : > { %3651 = vmatpush.bf16.msra.mxu0 %v4768_v59 }
 0xeb9   : > { %3652 = vmatpush.bf16.msra.mxu0 %v4767_v60 }
 0xebd   : > { %3653 = vmatpush.bf16.msra.mxu0 %v4766_v61 }
 0xec0   : > { %3654 = vmatmul.bf16.vlgmr.msra.gmra.mxu0 %v3577_v62 }
 0xf3d   : > { %v3655_v2 = vpop.f32.mrf.mxu0 }
 0xf3e   : > { %v3656_v3 = vadd.f32 %v5041_v9, %v3655_v2 }
 0xf40   : > { %3660 = vst [vmem:[#allocation19] sm:$0xff] %v3656_v3 }
 0xf45   : > { %v3657_v4 = vpop.f32.mrf.mxu0 }
 0xf46   : > { %v3658_v7 = vadd.f32 %v5041_v9, %v3657_v4 }
 0xf48   : > { %3661 = vst [vmem:[#allocation19 + $0x8] sm:$0xff] %v3658_v7 }
 0xf49 PF: > { %p4838_p4 = scmp.eq.s32.totalorder %s5548_s3, 1  ;;  %s5416_s29 = smov [#allocation19]  }
 0xf4a   : > { %s3667_s26 = sshll.u32 %s5416_s29, 4  ;;  %s6554_s15 = sld [smem:[#allocation52_spill]]  ;;  %s3668_s26 = int_to_ptr.vmem [resolvable:$true] %s3667_s26 }
 0xf4b   : > { %s5417_s17 = smov 128   ;;  %s5418_s22 = smov 8  }
 0xf50   : > { %s3669_s6 = sshll.u32 %s6554_s15, 4  ;;  %s3670_s6 = int_to_ptr.hbm [resolvable:$true] %s3669_s6 }
 0xf51   : > { %4801 = dma.vmem_to_hbm [thread:$0]  (%p4838_p4), %s3668_s26, 256, %s3670_s6, [#allocation6], %s5417_s17, %s5417_s17, %s5418_s22  }
 0xf52   : > { %5381 = dma.done.wait (%p4838_p4), [#allocation6], 256  }
 0xf53   : > { %5383 = vsyncadd (%p4838_p4), [#allocation6], 4294967040 }
 0xf54 PF: > { %s6555_s27 = sld [smem:[#allocation29_spill]]  ;;  %s6558_s2 = smov %s5390_s25 }
 0xf55   : > { %s6556_s24 = sld [smem:[#allocation27_spill]] }
 0xf56   : > { %s6557_s26 = sld [smem:[#allocation30_spill]] }
 0xf5a   : > { %p42_p5 = scmp.ge.s32.totalorder %s6555_s27, 4  }
 0xf5b   : > { %s6559_s25 = smov %s6556_s24 }
 0xf5c   :  { %44 = sbr.rel (!%p42_p5) target bundleno = 34 (0x22), region = 257 }
 0xf61   :  { %3686 = vsyncpa [#allocation5], 1 }
 0xf62   :  { %3688 = vsyncpa [#allocation5 + $0x1], 1 }
 0xf63   :  { %3689 = vsyncpa [#allocation8], 1 }
 0xf64   :  { %3691 = vsyncpa [#allocation8 + $0x1], 1 }
 0xf65   :  { %3692 = vsyncpa [#allocation11], 1 }
 0xf66   :  { %3694 = vsyncpa [#allocation11 + $0x1], 1 }
 0xf67   :  { %3695 = vsyncpa [#allocation14], 1 }
 0xf68   :  { %3697 = vsyncpa [#allocation14 + $0x1], 1 }
 0xf69   :  { %3698 = vsyncpa [#allocation17], 1 }
 0xf6a   :  { %3700 = vsyncpa [#allocation17 + $0x1], 1 }
 0xf6b   :  { %3701 = vsyncpa [#allocation6], 1 }
 0xf6c   :  { %3703 = vsyncpa [#allocation6 + $0x1], 1 }

</bundles_post_ra>
